<compile_context>
chip_gen: v6e
topology: v6e:2x2x1
jax: 0.10.0
libtpu: 0.0.40
codegen_flags: <defaults>
</compile_context>

<pallas_src>
import functools

import numpy as np
import jax
import jax.numpy as jnp
from jax.experimental import pallas as pl
from jax.experimental.pallas import tpu as pltpu


# Pinned matmul precision: HIGHEST reproduces the f32 PyTorch module within
# 1e-5 on every TPU generation.  Use Precision.DEFAULT (1 bf16 pass, ~3-6x
# less MXU work) if bf16 matmul numerics are acceptable for the deployment.
_MATMUL_PRECISION = jax.lax.Precision.HIGHEST


def _leaky_relu(x, slope=0.2):
    # For slope < 1, max(x, slope*x) == LeakyReLU(x): one VALU op, no select.
    return jnp.maximum(x, slope * x)


def _dot(a, b):
    return jnp.dot(a, b, preferred_element_type=jnp.float32,
                   precision=_MATMUL_PRECISION)


def _make_kernel(freqs, fast_trig):
    """Kernel factory: freqs / fast_trig are compile-time constants."""
    freqs = tuple(float(f) for f in freqs)

    def kernel(xT_ref, w1s_ref, w1c_ref, b1_ref, w2T_ref, b2_ref,
               w3T_ref, b3_ref, w4T_ref, b4_ref, out_ref):
        xT = xT_ref[...]                                  # (nin, TB), batch on lanes

        # Layer-1 pre-activation accumulated per frequency:
        #   h1 = sum_j W1s_j^T @ sin(f_j x^T) + W1c_j^T @ cos(f_j x^T) + b1
        # Only the base frequency hits the EUP when the schedule is an exact
        # 2x ladder; the rest use double-angle recurrences on the VPU.
        acc = None
        s = c = None
        for j, f in enumerate(freqs):
            if fast_trig and j > 0:
                s, c = 2.0 * s * c, 2.0 * c * c - 1.0     # sin(2a), cos(2a)
            else:
                arg = jnp.float32(f) * xT                 # scalar VPU multiply
                s, c = jnp.sin(arg), jnp.cos(arg)         # EUP
            term = _dot(w1s_ref[j], s) + _dot(w1c_ref[j], c)
            acc = term if acc is None else acc + term

        h = _leaky_relu(acc + b1_ref[...])
        h = _leaky_relu(_dot(w2T_ref[...], h) + b2_ref[...])
        h = _leaky_relu(_dot(w3T_ref[...], h) + b3_ref[...])
        out = _dot(w4T_ref[...], h) + b4_ref[...]

        out_ref[...] = out.astype(out_ref.dtype)

    return kernel


def _round_up(n, m):
    return ((n + m - 1) // m) * m


def _is_pow2_ladder(freqs):
    return all(float(freqs[j]) == 2.0 * float(freqs[j - 1])
               for j in range(1, len(freqs)))


def _choose_tb(batch, tb_request, nin, nout, nh):
    """Batch tile (lane axis).  Amortizes per-grid-step overhead, keeps >=2
    grid steps for v7x megacore sharding, and respects v7x's 64 MiB VMEM."""
    lane = 128
    min_pad = _round_up(batch, lane)
    tb = max(lane, min(_round_up(tb_request, lane), min_pad))
    # Keep the grid >= 2 steps when the batch spans >= 2 lane tiles so the
    # "parallel" batch axis can be split across v7x's two TensorCores.
    if min_pad >= 2 * lane:
        tb = min(tb, _round_up(min_pad // 2, lane))
    # VMEM cap (v7x = 64 MiB): double-buffered x/out tiles + layer
    # intermediates (h slabs, sin/cos temporaries) scale linearly with tb.
    per_col_bytes = 4 * (2 * (nin + nout) + 4 * nh + 4 * nin)
    max_tb = max(lane, (40 * 1024 * 1024 // per_col_bytes) // lane * lane)
    return min(tb, max_tb)


@functools.partial(jax.jit, static_argnames=("freqs", "tb", "fast_trig"))
def posenc_mlp(x, params, freqs=(0.5, 1.0, 2.0, 4.0, 8.0), tb=16384,
               fast_trig=None):
    """x: (B, nin) f32.  params: w{i} (fan_in, fan_out), b{i} (fan_out,).
    Returns (B, nout) f32 matching PosEncMLP.forward.

    fast_trig=None ("auto"): use double-angle recurrences when `freqs` is an
    exact 2x ladder; False forces direct sin/cos for every frequency."""
    B, nin = x.shape
    nf = len(freqs)
    pe_half = nf * nin
    nh = params["w2"].shape[0]
    nout = params["w4"].shape[1]

    if fast_trig is None:
        fast_trig = _is_pow2_ladder(freqs)

    # ---- kernel-layout parameter prep (traced once per shape under jit) ----
    w1 = params["w1"]                                   # (2*pe_half, nh)
    # Split W1 into sine / cosine halves and stack per frequency so the kernel
    # indexes a clean leading axis: w1s[j] is (nh, nin) for frequency j.
    w1s = w1[:pe_half].reshape(nf, nin, nh).transpose(0, 2, 1)   # (nf, nh, nin)
    w1c = w1[pe_half:].reshape(nf, nin, nh).transpose(0, 2, 1)   # (nf, nh, nin)
    b1 = params["b1"].reshape(nh, 1)
    w2T, b2 = params["w2"].T, params["b2"].reshape(nh, 1)
    w3T, b3 = params["w3"].T, params["b3"].reshape(nh, 1)
    w4T, b4 = params["w4"].T, params["b4"].reshape(nout, 1)

    # ---- batch tiling: batch lives on the 128-lane axis ----
    tb = _choose_tb(B, tb, nin, nout, nh)
    b_pad = _round_up(B, tb)
    xT = jnp.pad(x.T, ((0, 0), (0, b_pad - B)))

    # Constant index maps keep all weights resident in VMEM across grid steps.
    # (For large nh, add pipeline_mode=pl.Buffered(1) here to drop the dead
    #  second pipeline buffer on these constant blocks.)
    const2 = lambda shape: pl.BlockSpec(shape, lambda i: (0, 0))
    const3 = lambda shape: pl.BlockSpec(shape, lambda i: (0, 0, 0))

    outT = pl.pallas_call(
        _make_kernel(freqs, fast_trig),
        out_shape=jax.ShapeDtypeStruct((nout, b_pad), jnp.float32),
        grid_spec=pltpu.PrefetchScalarGridSpec(
            num_scalar_prefetch=0,
            grid=(b_pad // tb,),
            in_specs=[
                pl.BlockSpec((nin, tb), lambda i: (0, i)),   # x^T batch tile
                const3((nf, nh, nin)),                       # W1 sine blocks
                const3((nf, nh, nin)),                       # W1 cosine blocks
                const2((nh, 1)),                             # b1
                const2((nh, nh)), const2((nh, 1)),           # W2^T, b2
                const2((nh, nh)), const2((nh, 1)),           # W3^T, b3
                const2((nout, nh)), const2((nout, 1)),       # W4^T, b4
            ],
            out_specs=pl.BlockSpec((nout, tb), lambda i: (0, i)),
        ),
        compiler_params=pltpu.CompilerParams(
            dimension_semantics=("parallel",),
            vmem_limit_bytes=48 * 1024 * 1024,
        ),
    )(xT, w1s, w1c, b1, w2T, b2, w3T, b3, w4T, b4)

    return outT[:, :B].T


def make_params(key, nin, nout, nh, nf):
    """PyTorch nn.Linear-style init; w{i} stored (fan_in, fan_out)."""
    pe_dim = nin * nf * 2
    dims = [(pe_dim, nh), (nh, nh), (nh, nh), (nh, nout)]
    params = {}
    for idx, (fan_in, fan_out) in enumerate(dims, start=1):
        key, kw, kb = jax.random.split(key, 3)
        bound = 1.0 / np.sqrt(fan_in)
        params[f"w{idx}"] = jax.random.uniform(
            kw, (fan_in, fan_out), jnp.float32, -bound, bound)
        params[f"b{idx}"] = jax.random.uniform(
            kb, (fan_out,), jnp.float32, -bound, bound)
    return params


def posenc_mlp_ref(x, params, freqs):
    """Pure-JAX reference matching the PyTorch module semantics (f32)."""
    sines = [jnp.sin(x * f) for f in freqs]
    coses = [jnp.cos(x * f) for f in freqs]
    h = jnp.concatenate(sines + coses, axis=1)
    for idx in (1, 2, 3):
        h = jnp.dot(h, params[f"w{idx}"],
                    precision=_MATMUL_PRECISION) + params[f"b{idx}"]
        h = jnp.where(h >= 0, h, 0.2 * h)
    return jnp.dot(h, params["w4"], precision=_MATMUL_PRECISION) + params["b4"]


if __name__ == "__main__":
    nin, nout, nh = 2, 2, 32
    freqs = (0.5, 1.0, 2.0, 4.0, 8.0)

    key = jax.random.PRNGKey(0)
    key, kx1, kx2 = jax.random.split(key, 3)
    params = make_params(key, nin, nout, nh, len(freqs))

    # --- small batch (single grid step) ---
    B1 = 8
    x1 = jax.random.normal(kx1, (B1, nin), jnp.float32)
    ref1 = posenc_mlp_ref(x1, params, freqs)

    # Exact path: direct sin/cos for every frequency, tight tolerance.
    out_exact = jax.block_until_ready(
        posenc_mlp(x1, params, freqs=freqs, fast_trig=False))
    assert out_exact.shape == (B1, nout)
    np.testing.assert_allclose(np.asarray(out_exact), np.asarray(ref1),
                               rtol=1e-5, atol=1e-5)

    # Fast path (default): double-angle recurrence for the 2x ladder.
    out_fast = jax.block_until_ready(posenc_mlp(x1, params, freqs=freqs))
    np.testing.assert_allclose(np.asarray(out_fast), np.asarray(ref1),
                               rtol=1e-4, atol=1e-4)

    # --- larger batch: exercises multi-step grid, padding, resident weights ---
    B2 = 300
    x2 = jax.random.normal(kx2, (B2, nin), jnp.float32)
    ref2 = posenc_mlp_ref(x2, params, freqs)
    out2 = jax.block_until_ready(posenc_mlp(x2, params, freqs=freqs))
    assert out2.shape == (B2, nout)
    np.testing.assert_allclose(np.asarray(out2), np.asarray(ref2),
                               rtol=1e-4, atol=1e-4)

    print("KERNEL_OK")
</pallas_src>

<mosaic_0001>
module attributes {stable_mosaic.version = 11 : i64} {
  func.func @kernel(%arg0: i32, %arg1: memref<2x128xf32, #tpu.memory_space<vmem>>, %arg2: memref<5x32x2xf32, #tpu.memory_space<vmem>>, %arg3: memref<5x32x2xf32, #tpu.memory_space<vmem>>, %arg4: memref<32x1xf32, #tpu.memory_space<vmem>>, %arg5: memref<32x32xf32, #tpu.memory_space<vmem>>, %arg6: memref<32x1xf32, #tpu.memory_space<vmem>>, %arg7: memref<32x32xf32, #tpu.memory_space<vmem>>, %arg8: memref<32x1xf32, #tpu.memory_space<vmem>>, %arg9: memref<2x32xf32, #tpu.memory_space<vmem>>, %arg10: memref<2x1xf32, #tpu.memory_space<vmem>>, %arg11: memref<2x128xf32, #tpu.memory_space<vmem>>) attributes {dimension_semantics = [#tpu.dimension_semantics<parallel>], iteration_bounds = array<i64: 1>, scalar_prefetch = 0 : i64, scratch_operands = 0 : i64, tpu.core_type = #tpu.core_type<tc>, window_params = [{transform_indices = @transform_0, window_bounds = array<i64: 2, 128>}, {pipeline_mode = #tpu.pipeline_mode<synchronous>, transform_indices = @transform_1, window_bounds = array<i64: 5, 32, 2>}, {pipeline_mode = #tpu.pipeline_mode<synchronous>, transform_indices = @transform_2, window_bounds = array<i64: 5, 32, 2>}, {pipeline_mode = #tpu.pipeline_mode<synchronous>, transform_indices = @transform_3, window_bounds = array<i64: 32, 1>}, {pipeline_mode = #tpu.pipeline_mode<synchronous>, transform_indices = @transform_4, window_bounds = array<i64: 32, 32>}, {pipeline_mode = #tpu.pipeline_mode<synchronous>, transform_indices = @transform_5, window_bounds = array<i64: 32, 1>}, {pipeline_mode = #tpu.pipeline_mode<synchronous>, transform_indices = @transform_6, window_bounds = array<i64: 32, 32>}, {pipeline_mode = #tpu.pipeline_mode<synchronous>, transform_indices = @transform_7, window_bounds = array<i64: 32, 1>}, {pipeline_mode = #tpu.pipeline_mode<synchronous>, transform_indices = @transform_8, window_bounds = array<i64: 2, 32>}, {pipeline_mode = #tpu.pipeline_mode<synchronous>, transform_indices = @transform_9, window_bounds = array<i64: 2, 1>}, {transform_indices = @transform_10, window_bounds = array<i64: 2, 128>}]} {
    %c0 = arith.constant 0 : index
    %c0_0 = arith.constant 0 : index
    %0 = vector.load %arg1[%c0, %c0_0] : memref<2x128xf32, #tpu.memory_space<vmem>>, vector<2x128xf32>
    %cst = arith.constant 5.000000e-01 : f32
    %1 = vector.broadcast %cst : f32 to vector<2x128xf32>
    %2 = arith.mulf %1, %0 : vector<2x128xf32>
    %3 = math.sin %2 : vector<2x128xf32>
    %4 = math.cos %2 : vector<2x128xf32>
    %c0_1 = arith.constant 0 : index
    %c0_2 = arith.constant 0 : index
    %c0_3 = arith.constant 0 : index
    %5 = vector.load %arg2[%c0_1, %c0_2, %c0_3] : memref<5x32x2xf32, #tpu.memory_space<vmem>>, vector<1x32x2xf32>
    %6 = vector.shape_cast %5 : vector<1x32x2xf32> to vector<32x2xf32>
    %cst_4 = arith.constant dense<0.000000e+00> : vector<32x128xf32>
    %7 = tpu.matmul %6, %3, %cst_4 {dimension_numbers = #tpu.dot_dimension_numbers<[1], [0], [0], [1], [0, 0, 1, 1], [], []>, precision = #tpu.contract_precision<fp32>} : vector<32x2xf32>, vector<2x128xf32>, vector<32x128xf32> -> vector<32x128xf32>
    %c0_5 = arith.constant 0 : index
    %c0_6 = arith.constant 0 : index
    %c0_7 = arith.constant 0 : index
    %8 = vector.load %arg3[%c0_5, %c0_6, %c0_7] : memref<5x32x2xf32, #tpu.memory_space<vmem>>, vector<1x32x2xf32>
    %9 = vector.shape_cast %8 : vector<1x32x2xf32> to vector<32x2xf32>
    %cst_8 = arith.constant dense<0.000000e+00> : vector<32x128xf32>
    %10 = tpu.matmul %9, %4, %cst_8 {dimension_numbers = #tpu.dot_dimension_numbers<[1], [0], [0], [1], [0, 0, 1, 1], [], []>, precision = #tpu.contract_precision<fp32>} : vector<32x2xf32>, vector<2x128xf32>, vector<32x128xf32> -> vector<32x128xf32>
    %11 = arith.addf %7, %10 : vector<32x128xf32>
    %cst_9 = arith.constant 1.000000e+00 : f32
    %12 = vector.broadcast %cst_9 : f32 to vector<2x128xf32>
    %13 = arith.mulf %12, %0 : vector<2x128xf32>
    %14 = math.sin %13 : vector<2x128xf32>
    %15 = math.cos %13 : vector<2x128xf32>
    %c1 = arith.constant 1 : index
    %c0_10 = arith.constant 0 : index
    %c0_11 = arith.constant 0 : index
    %16 = vector.load %arg2[%c1, %c0_10, %c0_11] : memref<5x32x2xf32, #tpu.memory_space<vmem>>, vector<1x32x2xf32>
    %17 = vector.shape_cast %16 : vector<1x32x2xf32> to vector<32x2xf32>
    %cst_12 = arith.constant dense<0.000000e+00> : vector<32x128xf32>
    %18 = tpu.matmul %17, %14, %cst_12 {dimension_numbers = #tpu.dot_dimension_numbers<[1], [0], [0], [1], [0, 0, 1, 1], [], []>, precision = #tpu.contract_precision<fp32>} : vector<32x2xf32>, vector<2x128xf32>, vector<32x128xf32> -> vector<32x128xf32>
    %c1_13 = arith.constant 1 : index
    %c0_14 = arith.constant 0 : index
    %c0_15 = arith.constant 0 : index
    %19 = vector.load %arg3[%c1_13, %c0_14, %c0_15] : memref<5x32x2xf32, #tpu.memory_space<vmem>>, vector<1x32x2xf32>
    %20 = vector.shape_cast %19 : vector<1x32x2xf32> to vector<32x2xf32>
    %cst_16 = arith.constant dense<0.000000e+00> : vector<32x128xf32>
    %21 = tpu.matmul %20, %15, %cst_16 {dimension_numbers = #tpu.dot_dimension_numbers<[1], [0], [0], [1], [0, 0, 1, 1], [], []>, precision = #tpu.contract_precision<fp32>} : vector<32x2xf32>, vector<2x128xf32>, vector<32x128xf32> -> vector<32x128xf32>
    %22 = arith.addf %18, %21 : vector<32x128xf32>
    %23 = arith.addf %11, %22 : vector<32x128xf32>
    %cst_17 = arith.constant 2.000000e+00 : f32
    %24 = vector.broadcast %cst_17 : f32 to vector<2x128xf32>
    %25 = arith.mulf %24, %0 : vector<2x128xf32>
    %26 = math.sin %25 : vector<2x128xf32>
    %27 = math.cos %25 : vector<2x128xf32>
    %c2 = arith.constant 2 : index
    %c0_18 = arith.constant 0 : index
    %c0_19 = arith.constant 0 : index
    %28 = vector.load %arg2[%c2, %c0_18, %c0_19] : memref<5x32x2xf32, #tpu.memory_space<vmem>>, vector<1x32x2xf32>
    %29 = vector.shape_cast %28 : vector<1x32x2xf32> to vector<32x2xf32>
    %cst_20 = arith.constant dense<0.000000e+00> : vector<32x128xf32>
    %30 = tpu.matmul %29, %26, %cst_20 {dimension_numbers = #tpu.dot_dimension_numbers<[1], [0], [0], [1], [0, 0, 1, 1], [], []>, precision = #tpu.contract_precision<fp32>} : vector<32x2xf32>, vector<2x128xf32>, vector<32x128xf32> -> vector<32x128xf32>
    %c2_21 = arith.constant 2 : index
    %c0_22 = arith.constant 0 : index
    %c0_23 = arith.constant 0 : index
    %31 = vector.load %arg3[%c2_21, %c0_22, %c0_23] : memref<5x32x2xf32, #tpu.memory_space<vmem>>, vector<1x32x2xf32>
    %32 = vector.shape_cast %31 : vector<1x32x2xf32> to vector<32x2xf32>
    %cst_24 = arith.constant dense<0.000000e+00> : vector<32x128xf32>
    %33 = tpu.matmul %32, %27, %cst_24 {dimension_numbers = #tpu.dot_dimension_numbers<[1], [0], [0], [1], [0, 0, 1, 1], [], []>, precision = #tpu.contract_precision<fp32>} : vector<32x2xf32>, vector<2x128xf32>, vector<32x128xf32> -> vector<32x128xf32>
    %34 = arith.addf %30, %33 : vector<32x128xf32>
    %35 = arith.addf %23, %34 : vector<32x128xf32>
    %cst_25 = arith.constant 4.000000e+00 : f32
    %36 = vector.broadcast %cst_25 : f32 to vector<2x128xf32>
    %37 = arith.mulf %36, %0 : vector<2x128xf32>
    %38 = math.sin %37 : vector<2x128xf32>
    %39 = math.cos %37 : vector<2x128xf32>
    %c3 = arith.constant 3 : index
    %c0_26 = arith.constant 0 : index
    %c0_27 = arith.constant 0 : index
    %40 = vector.load %arg2[%c3, %c0_26, %c0_27] : memref<5x32x2xf32, #tpu.memory_space<vmem>>, vector<1x32x2xf32>
    %41 = vector.shape_cast %40 : vector<1x32x2xf32> to vector<32x2xf32>
    %cst_28 = arith.constant dense<0.000000e+00> : vector<32x128xf32>
    %42 = tpu.matmul %41, %38, %cst_28 {dimension_numbers = #tpu.dot_dimension_numbers<[1], [0], [0], [1], [0, 0, 1, 1], [], []>, precision = #tpu.contract_precision<fp32>} : vector<32x2xf32>, vector<2x128xf32>, vector<32x128xf32> -> vector<32x128xf32>
    %c3_29 = arith.constant 3 : index
    %c0_30 = arith.constant 0 : index
    %c0_31 = arith.constant 0 : index
    %43 = vector.load %arg3[%c3_29, %c0_30, %c0_31] : memref<5x32x2xf32, #tpu.memory_space<vmem>>, vector<1x32x2xf32>
    %44 = vector.shape_cast %43 : vector<1x32x2xf32> to vector<32x2xf32>
    %cst_32 = arith.constant dense<0.000000e+00> : vector<32x128xf32>
    %45 = tpu.matmul %44, %39, %cst_32 {dimension_numbers = #tpu.dot_dimension_numbers<[1], [0], [0], [1], [0, 0, 1, 1], [], []>, precision = #tpu.contract_precision<fp32>} : vector<32x2xf32>, vector<2x128xf32>, vector<32x128xf32> -> vector<32x128xf32>
    %46 = arith.addf %42, %45 : vector<32x128xf32>
    %47 = arith.addf %35, %46 : vector<32x128xf32>
    %cst_33 = arith.constant 8.000000e+00 : f32
    %48 = vector.broadcast %cst_33 : f32 to vector<2x128xf32>
    %49 = arith.mulf %48, %0 : vector<2x128xf32>
    %50 = math.sin %49 : vector<2x128xf32>
    %51 = math.cos %49 : vector<2x128xf32>
    %c4 = arith.constant 4 : index
    %c0_34 = arith.constant 0 : index
    %c0_35 = arith.constant 0 : index
    %52 = vector.load %arg2[%c4, %c0_34, %c0_35] : memref<5x32x2xf32, #tpu.memory_space<vmem>>, vector<1x32x2xf32>
    %53 = vector.shape_cast %52 : vector<1x32x2xf32> to vector<32x2xf32>
    %cst_36 = arith.constant dense<0.000000e+00> : vector<32x128xf32>
    %54 = tpu.matmul %53, %50, %cst_36 {dimension_numbers = #tpu.dot_dimension_numbers<[1], [0], [0], [1], [0, 0, 1, 1], [], []>, precision = #tpu.contract_precision<fp32>} : vector<32x2xf32>, vector<2x128xf32>, vector<32x128xf32> -> vector<32x128xf32>
    %c4_37 = arith.constant 4 : index
    %c0_38 = arith.constant 0 : index
    %c0_39 = arith.constant 0 : index
    %55 = vector.load %arg3[%c4_37, %c0_38, %c0_39] : memref<5x32x2xf32, #tpu.memory_space<vmem>>, vector<1x32x2xf32>
    %56 = vector.shape_cast %55 : vector<1x32x2xf32> to vector<32x2xf32>
    %cst_40 = arith.constant dense<0.000000e+00> : vector<32x128xf32>
    %57 = tpu.matmul %56, %51, %cst_40 {dimension_numbers = #tpu.dot_dimension_numbers<[1], [0], [0], [1], [0, 0, 1, 1], [], []>, precision = #tpu.contract_precision<fp32>} : vector<32x2xf32>, vector<2x128xf32>, vector<32x128xf32> -> vector<32x128xf32>
    %58 = arith.addf %54, %57 : vector<32x128xf32>
    %59 = arith.addf %47, %58 : vector<32x128xf32>
    %c0_41 = arith.constant 0 : index
    %c0_42 = arith.constant 0 : index
    %60 = vector.load %arg4[%c0_41, %c0_42] : memref<32x1xf32, #tpu.memory_space<vmem>>, vector<32x1xf32>
    %61 = vector.broadcast %60 : vector<32x1xf32> to vector<32x128xf32>
    %62 = arith.addf %59, %61 : vector<32x128xf32>
    %cst_43 = arith.constant 2.000000e-01 : f32
    %63 = vector.broadcast %cst_43 : f32 to vector<32x128xf32>
    %64 = arith.mulf %63, %62 : vector<32x128xf32>
    %65 = arith.maximumf %62, %64 : vector<32x128xf32>
    %c0_44 = arith.constant 0 : index
    %c0_45 = arith.constant 0 : index
    %66 = vector.load %arg5[%c0_44, %c0_45] : memref<32x32xf32, #tpu.memory_space<vmem>>, vector<32x32xf32>
    %cst_46 = arith.constant dense<0.000000e+00> : vector<32x128xf32>
    %67 = tpu.matmul %66, %65, %cst_46 {dimension_numbers = #tpu.dot_dimension_numbers<[1], [0], [0], [1], [0, 0, 1, 1], [], []>, precision = #tpu.contract_precision<fp32>} : vector<32x32xf32>, vector<32x128xf32>, vector<32x128xf32> -> vector<32x128xf32>
    %c0_47 = arith.constant 0 : index
    %c0_48 = arith.constant 0 : index
    %68 = vector.load %arg6[%c0_47, %c0_48] : memref<32x1xf32, #tpu.memory_space<vmem>>, vector<32x1xf32>
    %69 = vector.broadcast %68 : vector<32x1xf32> to vector<32x128xf32>
    %70 = arith.addf %67, %69 : vector<32x128xf32>
    %cst_49 = arith.constant 2.000000e-01 : f32
    %71 = vector.broadcast %cst_49 : f32 to vector<32x128xf32>
    %72 = arith.mulf %71, %70 : vector<32x128xf32>
    %73 = arith.maximumf %70, %72 : vector<32x128xf32>
    %c0_50 = arith.constant 0 : index
    %c0_51 = arith.constant 0 : index
    %74 = vector.load %arg7[%c0_50, %c0_51] : memref<32x32xf32, #tpu.memory_space<vmem>>, vector<32x32xf32>
    %cst_52 = arith.constant dense<0.000000e+00> : vector<32x128xf32>
    %75 = tpu.matmul %74, %73, %cst_52 {dimension_numbers = #tpu.dot_dimension_numbers<[1], [0], [0], [1], [0, 0, 1, 1], [], []>, precision = #tpu.contract_precision<fp32>} : vector<32x32xf32>, vector<32x128xf32>, vector<32x128xf32> -> vector<32x128xf32>
    %c0_53 = arith.constant 0 : index
    %c0_54 = arith.constant 0 : index
    %76 = vector.load %arg8[%c0_53, %c0_54] : memref<32x1xf32, #tpu.memory_space<vmem>>, vector<32x1xf32>
    %77 = vector.broadcast %76 : vector<32x1xf32> to vector<32x128xf32>
    %78 = arith.addf %75, %77 : vector<32x128xf32>
    %cst_55 = arith.constant 2.000000e-01 : f32
    %79 = vector.broadcast %cst_55 : f32 to vector<32x128xf32>
    %80 = arith.mulf %79, %78 : vector<32x128xf32>
    %81 = arith.maximumf %78, %80 : vector<32x128xf32>
    %c0_56 = arith.constant 0 : index
    %c0_57 = arith.constant 0 : index
    %82 = vector.load %arg9[%c0_56, %c0_57] : memref<2x32xf32, #tpu.memory_space<vmem>>, vector<2x32xf32>
    %cst_58 = arith.constant dense<0.000000e+00> : vector<2x128xf32>
    %83 = tpu.matmul %82, %81, %cst_58 {dimension_numbers = #tpu.dot_dimension_numbers<[1], [0], [0], [1], [0, 0, 1, 1], [], []>, precision = #tpu.contract_precision<fp32>} : vector<2x32xf32>, vector<32x128xf32>, vector<2x128xf32> -> vector<2x128xf32>
    %c0_59 = arith.constant 0 : index
    %c0_60 = arith.constant 0 : index
    %84 = vector.load %arg10[%c0_59, %c0_60] : memref<2x1xf32, #tpu.memory_space<vmem>>, vector<2x1xf32>
    %85 = vector.broadcast %84 : vector<2x1xf32> to vector<2x128xf32>
    %86 = arith.addf %83, %85 : vector<2x128xf32>
    %c0_61 = arith.constant 0 : index
    %c0_62 = arith.constant 0 : index
    %87 = vector.load %arg11[%c0_61, %c0_62] : memref<2x128xf32, #tpu.memory_space<vmem>>, vector<2x128xf32>
    tpu.vector_store %arg11[%c0_61, %c0_62], %86 {strides = array<i32>} : memref<2x128xf32, #tpu.memory_space<vmem>>, vector<2x128xf32>,
    return
  }
  func.func @transform_0(%arg0: i32) -> (i32, i32) {
    %c0_i32 = arith.constant 0 : i32
    %c0_i32_0 = arith.constant 0 : i32
    return %c0_i32, %arg0 : i32, i32
  }
  func.func @transform_1(%arg0: i32) -> (i32, i32, i32) {
    %c0_i32 = arith.constant 0 : i32
    %c0_i32_0 = arith.constant 0 : i32
    %c0_i32_1 = arith.constant 0 : i32
    %c0_i32_2 = arith.constant 0 : i32
    return %c0_i32, %c0_i32_0, %c0_i32_1 : i32, i32, i32
  }
  func.func @transform_2(%arg0: i32) -> (i32, i32, i32) {
    %c0_i32 = arith.constant 0 : i32
    %c0_i32_0 = arith.constant 0 : i32
    %c0_i32_1 = arith.constant 0 : i32
    %c0_i32_2 = arith.constant 0 : i32
    return %c0_i32, %c0_i32_0, %c0_i32_1 : i32, i32, i32
  }
  func.func @transform_3(%arg0: i32) -> (i32, i32) {
    %c0_i32 = arith.constant 0 : i32
    %c0_i32_0 = arith.constant 0 : i32
    %c0_i32_1 = arith.constant 0 : i32
    return %c0_i32, %c0_i32_0 : i32, i32
  }
  func.func @transform_4(%arg0: i32) -> (i32, i32) {
    %c0_i32 = arith.constant 0 : i32
    %c0_i32_0 = arith.constant 0 : i32
    %c0_i32_1 = arith.constant 0 : i32
    return %c0_i32, %c0_i32_0 : i32, i32
  }
  func.func @transform_5(%arg0: i32) -> (i32, i32) {
    %c0_i32 = arith.constant 0 : i32
    %c0_i32_0 = arith.constant 0 : i32
    %c0_i32_1 = arith.constant 0 : i32
    return %c0_i32, %c0_i32_0 : i32, i32
  }
  func.func @transform_6(%arg0: i32) -> (i32, i32) {
    %c0_i32 = arith.constant 0 : i32
    %c0_i32_0 = arith.constant 0 : i32
    %c0_i32_1 = arith.constant 0 : i32
    return %c0_i32, %c0_i32_0 : i32, i32
  }
  func.func @transform_7(%arg0: i32) -> (i32, i32) {
    %c0_i32 = arith.constant 0 : i32
    %c0_i32_0 = arith.constant 0 : i32
    %c0_i32_1 = arith.constant 0 : i32
    return %c0_i32, %c0_i32_0 : i32, i32
  }
  func.func @transform_8(%arg0: i32) -> (i32, i32) {
    %c0_i32 = arith.constant 0 : i32
    %c0_i32_0 = arith.constant 0 : i32
    %c0_i32_1 = arith.constant 0 : i32
    return %c0_i32, %c0_i32_0 : i32, i32
  }
  func.func @transform_9(%arg0: i32) -> (i32, i32) {
    %c0_i32 = arith.constant 0 : i32
    %c0_i32_0 = arith.constant 0 : i32
    %c0_i32_1 = arith.constant 0 : i32
    return %c0_i32, %c0_i32_0 : i32, i32
  }
  func.func @transform_10(%arg0: i32) -> (i32, i32) {
    %c0_i32 = arith.constant 0 : i32
    %c0_i32_0 = arith.constant 0 : i32
    return %c0_i32, %arg0 : i32, i32
  }
}

</mosaic_0001>

<bundles_post_ra>
// kernel: posenc_mlp.1
= control target key start
LH: loop header
LB: loop body
LE: loop exit
PB: predicated region body
PF: predicated region fallthrough
CT: control target
= control target key end

     0   :  { %vm252_vm0 = vcmask 15360   ;;  %v10166_v20 = vmov 683565275   ;;  %v12248_v22 = vmov 2475754826   ;;  %s12229_s0 = inlined_call_operand.vmem [shape: f32[2,128], index: 0, kind: input, shape index: {}]   ;;  %s12230_s2 = inlined_call_operand.vmem [shape: f32[5,32,2], index: 2, kind: input, shape index: {}]   ;;  %s12231_s1 = inlined_call_operand.vmem [shape: f32[5,32,2], index: 1, kind: input, shape index: {}]   ;;  %s12232_s3 = inlined_call_operand.vmem [shape: f32[32,1], index: 3, kind: input, shape index: {}]   ;;  %s12233_s5 = inlined_call_operand.vmem [shape: f32[32,1], index: 5, kind: input, shape index: {}]   ;;  %s12234_s7 = inlined_call_operand.vmem [shape: f32[32,1], index: 7, kind: input, shape index: {}]   ;;  %s12235_s9 = inlined_call_operand.vmem [shape: f32[2,1], index: 9, kind: input, shape index: {}]   ;;  %s12236_s4 = inlined_call_operand.vmem [shape: f32[32,32], index: 4, kind: input, shape index: {}]   ;;  %s12237_s6 = inlined_call_operand.vmem [shape: f32[32,32], index: 6, kind: input, shape index: {}]   ;;  %s12238_s8 = inlined_call_operand.vmem [shape: f32[2,32], index: 8, kind: input, shape index: {}]   ;;  %s12239_s10 = inlined_call_operand.vmem [shape: f32[2,128], index: 10, kind: output, shape index: {}]  }
   0x1   :  { %v10233_v0 = vld [vmem:[%s12229_s0] sm:$0x3]  ;;  %v12250_v24 = vmov 2131351028   ;;  %v12240_v26 = vmov 2102212464  }
   0x2   :  { %v10236_v1 = vmul.f32 0.5, %v10233_v0  ;;  %v248_v2 = vld [vmem:[%s12230_s2] sm:$0xff]  ;;  %v12243_v28 = vmov 920167782   ;;  %v10171_v35 = vmov 1326507024  }
   0x3   :  { %v254_v3 = vsel %vm252_vm0, %v248_v2, 0  ;;  %v1437_v59 = vand.u32 2139095040, %v10233_v0 }
   0x4   :  { %v40_v4 = vand.u32 2139095040, %v10236_v1  ;;  %v10243_v5 = vand.u32 4294901760, %v254_v3  ;;  %v37_v7 = vand.u32 2147483647, %v10236_v1  ;;  %vm39_vm14 = vcmp.lt.s32.totalorder %v10236_v1, 0 }
   0x5   :  { %v1438_v62 = vshrl.u32 %v1437_v59, 23 }
   0x6   :  { %v41_v6 = vshrl.u32 %v40_v4, 23  ;;  %v10247_v8 = vsub.f32 %v254_v3, %v10243_v5  ;;  %9410 = vmatprep.mubr.f32.mxu1 %v10243_v5  ;;  %v44_v12 = vand.u32 8388607, %v37_v7  ;;  %vm38_vm15 = vcmp.le.f32.partialorder %v37_v7, 0.7853982 }
   0x7   :  { %v8910_v3 = vadd.s32 4294967169, %v1438_v62 }
   0x8   :  { %v8902_v9 = vadd.s32 4294967169, %v41_v6  ;;  %v337_v10 = vand.u32 4294901760, %v10247_v8  ;;  %v45_v17 = vor.u32 8388608, %v44_v12 }
   0x9   :  { %v1444_v6 = vadd.s32 1, %v8910_v3 }
   0xa   :  { %v47_v11 = vadd.s32 1, %v8902_v9  ;;  %v338_v13 = vsub.f32 %v10247_v8, %v337_v10  ;;  %v85_v37 = vshll.u32 %v45_v17, 8 }
   0xb   :  { %vm1445_vm7 = vcmp.gt.s32.totalorder %v1444_v6, 0 }
   0xc   :  { %vm48_vm1 = vcmp.gt.s32.totalorder %v47_v11, 0  ;;  %v339_v15 = vand.u32 4294901760, %v338_v13  ;;  %v1446_v12 = vsel %vm1445_vm7, %v1444_v6, 0 }
   0xd   :  { %v49_v14 = vsel %vm48_vm1, %v47_v11, 0  ;;  %v1434_v11 = vand.u32 2147483647, %v10233_v0 }
   0xe   :  { %v51_v16 = vand.u32 31, %v49_v14  ;;  %v50_v18 = vshrl.u32 %v49_v14, 5  ;;  %9402 = vmatprep.mubr.f32.mxu0 %v339_v15  ;;  %v1448_v14 = vand.u32 31, %v1446_v12 }
  0x10   :  { %v52_v19 = vsub.s32 32, %v51_v16  ;;  %v54_v21 = vshll.u32 %v10166_v20, %v51_v16  ;;  %v57_v23 = vshll.u32 %v12248_v22, %v51_v16  ;;  %v60_v25 = vshll.u32 %v12250_v24, %v51_v16 }
  0x11   :  { %v63_v27 = vshll.u32 %v12240_v26, %v51_v16  ;;  %v66_v29 = vshll.u32 %v12243_v28, %v51_v16  ;;  %vm69_vm2 = vcmp.lt.s32.totalorder %v50_v18, 1  ;;  %vm72_vm3 = vcmp.lt.s32.totalorder %v50_v18, 4 }
  0x12   :  { %v53_v30 = vshrl.u32 %v10166_v20, %v52_v19  ;;  %v55_v31 = vshrl.u32 %v12248_v22, %v52_v19  ;;  %v58_v32 = vshrl.u32 %v12250_v24, %v52_v19  ;;  %v61_v33 = vshrl.u32 %v12240_v26, %v52_v19 }
  0x13   :  { %v64_v34 = vshrl.u32 %v12243_v28, %v52_v19  ;;  %v67_v36 = vshrl.u32 %v10171_v35, %v52_v19  ;;  %vm70_vm4 = vcmp.lt.s32.totalorder %v50_v18, 2  ;;  %vm71_vm5 = vcmp.lt.s32.totalorder %v50_v18, 3 }
  0x14   :  { %v56_v38 = vor.u32 %v55_v31, %v54_v21  ;;  %v59_v39 = vor.u32 %v58_v32, %v57_v23  ;;  %v62_v40 = vor.u32 %v61_v33, %v60_v25  ;;  %v1441_v16 = vand.u32 8388607, %v1434_v11 }
  0x15   :  { %v65_v41 = vor.u32 %v64_v34, %v63_v27  ;;  %v68_v42 = vor.u32 %v67_v36, %v66_v29  ;;  %v1449_v17 = vsub.s32 32, %v1448_v14  ;;  %v1451_v18 = vshll.u32 %v10166_v20, %v1448_v14 }
  0x16   :  { %v73_v43 = vsel %vm69_vm2, %v53_v30, %v56_v38  ;;  %v74_v44 = vsel %vm72_vm3, %v62_v40, 2102212464  ;;  %v77_v45 = vsel %vm69_vm2, %v56_v38, %v59_v39  ;;  %v81_v46 = vsel %vm69_vm2, %v59_v39, %v62_v40 }
  0x17   :  { %v75_v47 = vsel %vm71_vm5, %v59_v39, %v74_v44  ;;  %v78_v48 = vsel %vm72_vm3, %v65_v41, 920167782  ;;  %v82_v49 = vsel %vm72_vm3, %v68_v42, 1326507024  ;;  %v1454_v19 = vshll.u32 %v12248_v22, %v1448_v14 }
  0x18   :  { %v79_v50 = vsel %vm71_vm5, %v62_v40, %v78_v48  ;;  %v83_v51 = vsel %vm71_vm5, %v65_v41, %v82_v49  ;;  %v76_v52 = vsel %vm70_vm4, %v73_v43, %v75_v47  ;;  %v1457_v21 = vshll.u32 %v12250_v24, %v1448_v14  ;;  %v249_v48 = vld [vmem:[%s12230_s2 + $0x8] sm:$0xff]  ;;  %v250_v49 = vld [vmem:[%s12230_s2 + $0x10] sm:$0xff] }
  0x19   :  { %v80_v53 = vsel %vm70_vm4, %v77_v45, %v79_v50  ;;  %v84_v54 = vsel %vm70_vm4, %v81_v46, %v83_v51  ;;  %v92_v60 = vmul.u32 %v85_v37, %v76_v52  ;;  %v1447_v25 = vshrl.u32 %v1446_v12, 5  ;;  %v251_v52 = vld [vmem:[%s12230_s2 + $0x18] sm:$0xff] }
  0x1a   :  { %v10267_v55 = vmul.u32.u64.low %v85_v37, %v84_v54  ;;  %v10268_v56 = vmul.u32.u64.high %v85_v37, %v84_v54, %v10267_v55  ;;  %v10270_v57 = vmul.u32.u64.low %v85_v37, %v80_v53  ;;  %v10271_v58 = vmul.u32.u64.high %v85_v37, %v80_v53, %v10270_v57 }
  0x1b   :  { %v1460_v27 = vshll.u32 %v12240_v26, %v1448_v14  ;;  %v1452_v29 = vshrl.u32 %v12248_v22, %v1449_v17  ;;  %v1455_v30 = vshrl.u32 %v12250_v24, %v1449_v17  ;;  %v1458_v31 = vshrl.u32 %v12240_v26, %v1449_v17 }
  0x1c   :  { %vm94_vm6 = vc.u32 %v10268_v56, %v10270_v57  ;;  %v95_v61 = vadd.s32 1, %v10271_v58  ;;  %v1461_v32 = vshrl.u32 %v12243_v28, %v1449_v17  ;;  %v1442_v34 = vor.u32 8388608, %v1441_v16 }
  0x1d   :  { %v1450_v36 = vshrl.u32 %v10166_v20, %v1449_v17  ;;  %v1453_v37 = vor.u32 %v1452_v29, %v1451_v18  ;;  %v1456_v38 = vor.u32 %v1455_v30, %v1454_v19  ;;  %v1459_v39 = vor.u32 %v1458_v31, %v1457_v21 }
  0x1e   :  { %v96_v63 = vsel %vm94_vm6, %v95_v61, %v10271_v58  ;;  %v1462_v41 = vor.u32 %v1461_v32, %v1460_v27  ;;  %v1463_v42 = vshll.u32 %v12243_v28, %v1448_v14  ;;  %v1464_v43 = vshrl.u32 %v10171_v35, %v1449_v17 }
  0x1f   :  { %v97_v2 = vadd.s32 %v96_v63, %v92_v60  ;;  %v93_v44 = vadd.s32 %v10270_v57, %v10268_v56  ;;  %vm1466_vm8 = vcmp.lt.s32.totalorder %v1447_v25, 1  ;;  %vm1468_vm9 = vcmp.lt.s32.totalorder %v1447_v25, 3 }
  0x20   :  { %v1465_v46 = vor.u32 %v1464_v43, %v1463_v42  ;;  %v1482_v47 = vshll.u32 %v1442_v34, 8  ;;  %vm1467_vm10 = vcmp.lt.s32.totalorder %v1447_v25, 2  ;;  %vm1469_vm11 = vcmp.lt.s32.totalorder %v1447_v25, 4 }
  0x21   :  { %v98_v4 = vadd.s32 536870912, %v97_v2  ;;  %v1470_v50 = vsel %vm1466_vm8, %v1450_v36, %v1453_v37  ;;  %v1474_v51 = vsel %vm1466_vm8, %v1453_v37, %v1456_v38  ;;  %v1471_v53 = vsel %vm1469_vm11, %v1459_v39, 2102212464 }
  0x22   :  { %v1475_v54 = vsel %vm1469_vm11, %v1462_v41, 920167782  ;;  %v1478_v55 = vsel %vm1466_vm8, %v1456_v38, %v1459_v39  ;;  %v1472_v57 = vsel %vm1468_vm9, %v1456_v38, %v1471_v53  ;;  %v1479_v59 = vsel %vm1469_vm11, %v1465_v46, 1326507024 }
  0x23   :  { %v10277_v9 = vshrl.u32 %v98_v4, 30  ;;  %v1476_v58 = vsel %vm1468_vm9, %v1459_v39, %v1475_v54  ;;  %v257_v63 = vsel %vm252_vm0, %v249_v48, 0  ;;  %v263_v3 = vsel %vm252_vm0, %v251_v52, 0  ;;  %v244_v48 = vld [vmem:[%s12231_s1] sm:$0xff] }
  0x24   :  { %v1477_v4 = vsel %vm1467_vm10, %v1474_v51, %v1476_v58  ;;  %v1480_v6 = vsel %vm1468_vm9, %v1462_v41, %v1479_v59  ;;  %v1473_v14 = vsel %vm1467_vm10, %v1470_v50, %v1472_v57  ;;  %v10320_v27 = vand.u32 4294901760, %v257_v63  ;;  %v245_v51 = vld [vmem:[%s12231_s1 + $0x8] sm:$0xff] }
  0x25   :  { %v100_v13 = vshll.u32 %v10277_v9, 30  ;;  %v1481_v16 = vsel %vm1467_vm10, %v1478_v55, %v1480_v6  ;;  %v10324_v32 = vand.u32 4294901760, %v263_v3  ;;  %v123_v25 = vsub.s32 4, %v10277_v9 }
  0x26   :  { %v10313_v17 = vmul.u32.u64.low %v1482_v47, %v1481_v16  ;;  %v10314_v18 = vmul.u32.u64.high %v1482_v47, %v1481_v16, %v10313_v17  ;;  %v10331_v36 = vmul.f32 2.0, %v10233_v0  ;;  %v10334_v38 = vsub.f32 %v257_v63, %v10320_v27 }
  0x27   :  { %v101_v15 = vsub.s32 %v97_v2, %v100_v13  ;;  %v260_v2 = vsel %vm252_vm0, %v250_v49, 0  ;;  %v10342_v42 = vsub.f32 %v263_v3, %v10324_v32  ;;  %v10362_v58 = vsel %vm252_vm0, %v244_v48, 0 }
  0x28   :  { %v10322_v29 = vand.u32 4294901760, %v260_v2  ;;  %v10395_v16 = vand.u32 4294901760, %v10362_v58  ;;  %vm129_vm8 = vweird.f32 %v10236_v1  ;;  %vm265_vm9 = vcmask 1041408  }
  0x29   :  { %v103_v23 = vsub.s32 0, %v101_v15  ;;  %v367_v7 = vand.u32 4294901760, %v10342_v42 }
  0x2a   :  { %v10337_v39 = vsub.f32 %v260_v2, %v10322_v29  ;;  %v246_v2 = vld [vmem:[%s12231_s1 + $0x10] sm:$0xff] }
  0x2b   :  { %v8903_v33 = vmin.u32 %v103_v23, %v101_v15 }
  0x2c   :  { %v357_v50 = vand.u32 4294901760, %v10337_v39 }
  0x2d   :  { %v105_v40 = vclz %v8903_v33  ;;  %v1489_v33 = vmul.u32 %v1482_v47, %v1473_v14 }
  0x2e   :  { %v10376_v63 = vsub.f32 %v10337_v39, %v357_v50 }
  0x2f   :  { %v8904_v45 = vadd.s32 4294967294, %v105_v40 }
  0x31   :  { %vm8905_vm12 = vcmp.lt.s32.totalorder %v8904_v45, 0 }
  0x32   :  { %v108_v56 = vsel %vm8905_vm12, 0, %v8904_v45  ;;  %v2839_v45 = vand.u32 2139095040, %v10331_v36 }
  0x33   :  { %v109_v60 = vsub.s32 32, %v108_v56  ;;  %v110_v61 = vshll.u32 %v101_v15, %v108_v56  ;;  %v113_v62 = vsub.s32 4294967266, %v108_v56 }
  0x34   :  { %v10316_v15 = vmul.u32.u64.low %v1482_v47, %v1477_v4  ;;  %v10317_v19 = vmul.u32.u64.high %v1482_v47, %v1477_v4, %v10316_v15  ;;  %v347_v47 = vand.u32 4294901760, %v10334_v38  ;;  %v2840_v52 = vshrl.u32 %v2839_v45, 23 }
  0x35   :  { %v111_v12 = vshrl.u32 %v93_v44, %v109_v60  ;;  %v114_v13 = vadd.s32 127, %v113_v62  ;;  %v124_v44 = vsel %vm39_vm14, %v123_v25, %v10277_v9  ;;  %v12242_v9 = vand.u32 2147483647, %v10331_v36 }
  0x36   :  { %vm1491_vm13 = vc.u32 %v10314_v18, %v10316_v15  ;;  %v1492_v34 = vadd.s32 1, %v10317_v19  ;;  %v126_v54 = vsel %vm38_vm15, 0, %v124_v44  ;;  %v8926_v59 = vadd.s32 4294967169, %v2840_v52 }
  0x37   :  { %v112_v21 = vor.u32 %v111_v12, %v110_v61  ;;  %v115_v23 = vshll.u32 %v114_v13, 23  ;;  %v130_v57 = vadd.s32 3, %v126_v54  ;;  %v10367_v60 = vsub.f32 %v10334_v38, %v347_v47 }
  0x38   :  { %v1493_v40 = vsel %vm1491_vm13, %v1492_v34, %v10317_v19  ;;  %v10370_v61 = vsel %vm252_vm0, %v245_v51, 0  ;;  %v2843_v3 = vand.u32 8388607, %v12242_v9  ;;  %v2846_v4 = vadd.s32 1, %v8926_v59 }
  0x39   :  { %v116_v30 = vor.u32 4788187, %v115_v23  ;;  %v119_v31 = vcvt.s32.f32 %v112_v21  ;;  %v1494_v43 = vadd.s32 %v1493_v40, %v1489_v33  ;;  %v10383_v6 = vand.u32 3, %v126_v54 }
  0x3a   :  { %v10388_v12 = vsub.f32 %v10342_v42, %v367_v7  ;;  %v10392_v14 = vand.u32 3, %v130_v57  ;;  %vm2847_vm1 = vcmp.gt.s32.totalorder %v2846_v4, 0  ;;  %v10398_v17 = vand.u32 4294901760, %v10370_v61 }
  0x3b   :  { %v117_v37 = vand.u32 2147483647, %v116_v30  ;;  %v1495_v49 = vadd.s32 536870912, %v1494_v43  ;;  %v10401_v19 = vsel %vm252_vm0, %v246_v2, 0  ;;  %v2848_v23 = vsel %vm2847_vm1, %v2846_v4, 0 }
  0x3c   :  { %v349_v30 = vand.u32 4294901760, %v10367_v60  ;;  %v2844_v33 = vor.u32 8388608, %v2843_v3  ;;  %v2850_v25 = vand.u32 31, %v2848_v23  ;;  %vm236_vm2 = vcmp.eq.s32.totalorder %v10383_v6, 0 }
  0x3d   :  { %v120_v41 = vmul.f32 %v119_v31, %v117_v37  ;;  %v10358_v55 = vshrl.u32 %v1495_v49, 30  ;;  %v359_v31 = vand.u32 4294901760, %v10376_v63  ;;  %vm239_vm3 = vcmp.eq.s32.totalorder %v10383_v6, 2 }
  0x3e   :  { %v369_v34 = vand.u32 4294901760, %v10388_v12  ;;  %vm235_vm4 = vcmp.lt.s32.totalorder %v10383_v6, 2  ;;  %vm132_vm5 = vcmp.lt.s32.totalorder %v10392_v14, 2  ;;  %vm133_vm6 = vcmp.eq.s32.totalorder %v10392_v14, 0  ;;  %v8924_v12 = vld [vmem:[%s12230_s2 + $0x30] sm:$0xff] }
  0x3f   :  { %v121_v46 = vxor.u32 2147483648, %v120_v41  ;;  %v1497_v62 = vshll.u32 %v10358_v55, 30  ;;  %vm136_vm7 = vcmp.eq.s32.totalorder %v10392_v14, 2  ;;  %v2851_v40 = vsub.s32 32, %v2850_v25 }
  0x40   :  { %v10417_v44 = vshrl.u32 %v2848_v23, 5  ;;  %v2853_v45 = vshll.u32 %v10166_v20, %v2850_v25  ;;  %v2859_v48 = vshll.u32 %v12250_v24, %v2850_v25  ;;  %v2862_v49 = vshll.u32 %v12240_v26, %v2850_v25 }
  0x41   :  { %v122_v53 = vsel %vm39_vm14, %v121_v46, %v120_v41  ;;  %v10390_v13 = vsub.s32 %v1494_v43, %v1497_v62  ;;  %v1490_v41 = vadd.s32 %v10316_v15, %v10314_v18  ;;  %v2856_v46 = vshll.u32 %v12248_v22, %v2850_v25 }
  0x42   :  { %v125_v56 = vsel %vm38_vm15, %v10236_v1, %v122_v53  ;;  %v10423_v51 = vshll.u32 %v2844_v33, 8  ;;  %v2854_v53 = vshrl.u32 %v12248_v22, %v2851_v40  ;;  %v2857_v54 = vshrl.u32 %v12250_v24, %v2851_v40 }
  0x43   :  { %10145 = vcosq.f32 %v125_v56  ;;  %v1500_v21 = vsub.s32 0, %v10390_v13  ;;  %v2860_v18 = vshrl.u32 %v12240_v26, %v2851_v40  ;;  %v2852_v15 = vshrl.u32 %v10166_v20, %v2851_v40 }
  0x44   :  { %10147 = vsinq.f32 %v125_v56  ;;  %v2863_v56 = vshrl.u32 %v12243_v28, %v2851_v40  ;;  %v2865_v57 = vshll.u32 %v12243_v28, %v2850_v25  ;;  %v2866_v59 = vshrl.u32 %v10171_v35, %v2851_v40 }
  0x45   :  { %v8911_v37 = vmin.u32 %v1500_v21, %v10390_v13  ;;  %v2855_v62 = vor.u32 %v2854_v53, %v2853_v45  ;;  %vm2868_vm11 = vcmp.lt.s32.totalorder %v10417_v44, 1  ;;  %vm2869_vm12 = vcmp.lt.s32.totalorder %v10417_v44, 2 }
  0x46   :  { %v2858_v4 = vor.u32 %v2857_v54, %v2856_v46  ;;  %v2861_v21 = vor.u32 %v2860_v18, %v2859_v48  ;;  %v2864_v23 = vor.u32 %v2863_v56, %v2862_v49  ;;  %v2867_v28 = vor.u32 %v2866_v59, %v2865_v57 }
  0x47   :  { %v1502_v43 = vclz %v8911_v37  ;;  %vm2870_vm13 = vcmp.lt.s32.totalorder %v10417_v44, 3  ;;  %vm2871_vm14 = vcmp.lt.s32.totalorder %v10417_v44, 4  ;;  %v2872_v1 = vsel %vm2868_vm11, %v2852_v15, %v2855_v62 }
  0x48   :  { %v2877_v53 = vsel %vm2871_vm14, %v2864_v23, 920167782  ;;  %v2873_v59 = vsel %vm2871_vm14, %v2861_v21, 2102212464  ;;  %vm1436_vm15 = vcmp.lt.s32.totalorder %v10233_v0, 0  ;;  %v10514_v44 = vsub.f32 %v10362_v58, %v10395_v16 }
  0x49   :  { %v8912_v52 = vadd.s32 4294967294, %v1502_v43  ;;  %vm10508_vm1 = vcmp.le.f32.partialorder %v1434_v11, 0.7853982  ;;  %v8922_v11 = vld [vmem:[%s12230_s2 + $0x20] sm:$0xff] }
  0x4b   :  { %vm8913_vm10 = vcmp.lt.s32.totalorder %v8912_v52, 0 }
  0x4c   :  { %v1505_v3 = vsel %vm8913_vm10, 0, %v8912_v52  ;;  %v2876_v52 = vsel %vm2868_vm11, %v2855_v62, %v2858_v4  ;;  %v247_v62 = vld [vmem:[%s12231_s1 + $0x18] sm:$0xff] }
  0x4d   :  { %v1506_v43 = vsub.s32 32, %v1505_v3  ;;  %v1507_v26 = vshll.u32 %v10390_v13, %v1505_v3  ;;  %v1510_v9 = vsub.s32 4294967266, %v1505_v3  ;;  %v854_v63 = vsel %vm252_vm0, %v247_v62, 0 }
  0x4f   :  { %v1508_v46 = vshrl.u32 %v1490_v41, %v1506_v43  ;;  %v1511_v48 = vadd.s32 127, %v1510_v9 }
  0x50   :  { %v10146_v2 = vpop.eup %10145 }
  0x51   :  { %v10148_v33 = vpop.eup %10147  ;;  %v137_v37 = vxor.u32 2147483648, %v10146_v2  ;;  %v1509_v41 = vor.u32 %v1508_v46, %v1507_v26  ;;  %v1512_v9 = vshll.u32 %v1511_v48, 23  ;;  %v2881_v46 = vsel %vm2871_vm14, %v2867_v28, 1326507024 }
  0x52   :  { %v134_v25 = vxor.u32 2147483648, %v10148_v33  ;;  %v2882_v15 = vsel %vm2870_vm13, %v2864_v23, %v2881_v46 }
  0x53   :  { %v241_v40 = vsel %vm239_vm3, %v137_v37, %v10148_v33  ;;  %v138_v45 = vsel %vm136_vm7, %v137_v37, %v10148_v33  ;;  %v1513_v14 = vor.u32 4788187, %v1512_v9  ;;  %v1516_v33 = vcvt.s32.f32 %v1509_v41 }
  0x54   :  { %v238_v49 = vsel %vm236_vm2, %v10146_v2, %v134_v25  ;;  %v135_v13 = vsel %vm133_vm6, %v10146_v2, %v134_v25  ;;  %v2878_v2 = vsel %vm2870_vm13, %v2861_v21, %v2877_v53  ;;  %v10466_v37 = vand.u32 4294901760, %v10401_v19 }
  0x55   :  { %v242_v54 = vsel %vm235_vm4, %v238_v49, %v241_v40  ;;  %v139_v18 = vsel %vm132_vm5, %v135_v13, %v138_v45  ;;  %v2879_v43 = vsel %vm2869_vm12, %v2876_v52, %v2878_v2  ;;  %v1514_v25 = vand.u32 2147483647, %v1513_v14 }
  0x56   :  { %v243_v56 = vsel %vm129_vm8, nan, %v242_v54  ;;  %v140_v57 = vsel %vm129_vm8, nan, %v139_v18  ;;  %v2874_v40 = vsel %vm2870_vm13, %v2858_v4, %v2873_v59  ;;  %v2880_v45 = vsel %vm2868_vm11, %v2858_v4, %v2861_v21 }
  0x57   :  { %v267_v6 = vsel %vm265_vm9, %v243_v56, 0  ;;  %v857_v3 = vsel %vm265_vm9, %v140_v57, 0  ;;  %v1517_v4 = vmul.f32 %v1516_v33, %v1514_v25  ;;  %v2883_v28 = vsel %vm2869_vm12, %v2880_v45, %v2882_v15  ;;  %v8925_v15 = vld [vmem:[%s12230_s2 + $0x38] sm:$0xff] }
  0x58   :  { %v10463_v26 = vand.u32 4294901760, %v267_v6  ;;  %v10480_v49 = vand.u32 4294901760, %v857_v3  ;;  %v10492_v21 = vmul.u32.u64.low %v10423_v51, %v2879_v43  ;;  %v10493_v13 = vmul.u32.u64.high %v10423_v51, %v2879_v43, %v10492_v21 }
  0x59   :  { %v2875_v23 = vsel %vm2869_vm12, %v2872_v1, %v2874_v40  ;;  %v10501_v53 = vmul.u32.u64.low %v10423_v51, %v2883_v28  ;;  %v10502_v54 = vmul.u32.u64.high %v10423_v51, %v2883_v28, %v10501_v53  ;;  %v1518_v60 = vxor.u32 2147483648, %v1517_v4 }
  0x5a   :  { %9400 = vmatprep.subr.mxu0 %v10463_v26  ;;  %v407_v48 = vsub.f32 %v267_v6, %v10463_v26  ;;  %v10518_v41 = vsub.f32 %v10370_v61, %v10398_v17  ;;  %v2891_v56 = vmul.u32 %v10423_v51, %v2875_v23  ;;  %v2894_v58 = vadd.s32 1, %v10493_v13  ;;  %v8923_v51 = vld [vmem:[%s12230_s2 + $0x28] sm:$0xff] }
  0x5b   :  { %9401 = vmatpush3.msra.mxu0 %v10463_v26  ;;  %v1519_v9 = vsel %vm1436_vm15, %v1518_v60, %v1517_v4  ;;  %v10535_v57 = vsub.f32 %v10401_v19, %v10466_v37  ;;  %v1520_v59 = vsub.s32 4, %v10358_v55  ;;  %v1652_v19 = vsel %vm252_vm0, %v8922_v11, 0 }
  0x5c   :  { %9403 = vmatmul.mubr.f32.vlgmr.msra.gmra.mxu0 %v349_v30  ;;  %v408_v52 = vand.u32 4294901760, %v407_v48  ;;  %9416 = vmatprep.subr.mxu0 %v407_v48  ;;  %v1522_v2 = vsel %vm10508_vm1, %v10233_v0, %v1519_v9  ;;  %vm2893_vm2 = vc.u32 %v10502_v54, %v10492_v21  ;;  %v1655_v14 = vsel %vm252_vm0, %v8923_v51, 0 }
  0x5d   :  { %9405 = vmatprep.mubr.f32.mxu0 %v359_v31  ;;  %9417 = vmatpush3.msra.mxu0 %v407_v48  ;;  %v10525_v31 = vsub.f32 %v857_v3, %v10480_v49  ;;  %10149 = vcosq.f32 %v1522_v2  ;;  %v2895_v6 = vsel %vm2893_vm2, %v2894_v58, %v10493_v13  ;;  %v1658_v33 = vsel %vm252_vm0, %v8924_v12, 0 }
  0x5e   :  { %v409_v30 = vsub.f32 %v407_v48, %v408_v52  ;;  %9432 = vmatprep.subr.mxu0 %v408_v52  ;;  %10151 = vsinq.f32 %v1522_v2  ;;  %v2896_v1 = vadd.s32 %v2895_v6, %v2891_v56  ;;  %v927_v43 = vand.u32 4294901760, %v10514_v44 }
  0x5f   :  { %v10555_v3 = vand.u32 4294901760, %v10525_v31  ;;  %v937_v25 = vand.u32 4294901760, %v10518_v41  ;;  %v1521_v40 = vsel %vm1436_vm15, %v1520_v59, %v10358_v55  ;;  %v10566_v45 = vand.u32 4294901760, %v1652_v19 }
  0x60   :  { %9406 = vmatmul.mubr.f32.gmra.mxu0 %v369_v34  ;;  %v410_v61 = vand.u32 4294901760, %v409_v30  ;;  %v10548_v34 = vand.u32 4294901760, %v854_v63  ;;  %v947_v46 = vand.u32 4294901760, %v10535_v57  ;;  %v2897_v62 = vadd.s32 536870912, %v2896_v1 }
  0x61   :  { %9418 = vmatprep.mubr.f32.mxu0 %v10247_v8  ;;  %v10579_v55 = vand.u32 4294901760, %v1655_v14  ;;  %v10581_v4 = vand.u32 4294901760, %v1658_v33  ;;  %v10584_v28 = vmul.f32 4.0, %v10233_v0  ;;  %v999_v13 = vsub.f32 %v10525_v31, %v10555_v3 }
  0x62   :  { %9408 = vmatprep.subr.mxu1 %v410_v61  ;;  %v10572_v48 = vsub.f32 %v854_v63, %v10548_v34  ;;  %v1523_v23 = vsel %vm10508_vm1, 0, %v1521_v40  ;;  %v10591_v53 = vshrl.u32 %v2897_v62, 30  ;;  %v928_v60 = vsub.f32 %v10514_v44, %v927_v43  ;;  %v8918_v40 = vld [vmem:[%s12231_s1 + $0x20] sm:$0xff] }
  0x63   :  { %9409 = vmatpush3.msra.mxu1 %v410_v61  ;;  %v10604_v30 = vsub.f32 %v1652_v19, %v10566_v45  ;;  %v1661_v18 = vsel %vm252_vm0, %v8925_v15, 0  ;;  %v10613_v63 = vsub.f32 %v10535_v57, %v947_v46  ;;  %v1631_v56 = vand.u32 3, %v1523_v23 }
  0x64   :  { %9411 = vmatmul.mubr.f32.vlgmr.msra.gmra.mxu1 %v10320_v27  ;;  %9424 = vmatprep.subr.mxu1 %v10463_v26  ;;  %v957_v11 = vand.u32 4294901760, %v10572_v48  ;;  %v2899_v9 = vshll.u32 %v10591_v53, 30  ;;  %v10619_v58 = vsub.f32 %v1655_v14, %v10579_v55  ;;  %v10622_v61 = vsub.f32 %v1658_v33, %v10581_v4 }
  0x65   :  { %9425 = vmatpush3.msra.mxu1 %v10463_v26  ;;  %9419 = vmatmul.mubr.f32.vlgmr.msra.gmra.mxu0 %v10334_v38  ;;  %v4241_v8 = vand.u32 2139095040, %v10584_v28  ;;  %v10625_v59 = vand.u32 4294901760, %v1661_v18  ;;  %v929_v51 = vand.u32 4294901760, %v928_v60  ;;  %v12252_v19 = vand.u32 4294901760, %v10604_v30 }
  0x66   :  { %9413 = vmatprep.mubr.f32.mxu1 %v10322_v29  ;;  %9421 = vmatprep.mubr.f32.mxu0 %v10337_v39  ;;  %v10627_v2 = vsub.s32 %v2896_v1, %v2899_v9  ;;  %v949_v14 = vand.u32 4294901760, %v10613_v63  ;;  %v10639_v33 = vsub.f32 %v10572_v48, %v957_v11  ;;  %vm1526_vm3 = vweird.f32 %v10233_v0 }
  0x67   :  { %9433 = vmatpush3.msra.mxu0 %v408_v52  ;;  %9440 = vmatprep.subr.mxu1 %v10463_v26  ;;  %v10601_v52 = vsub.f32 %v10518_v41, %v937_v25  ;;  %v4242_v6 = vshrl.u32 %v4241_v8, 23  ;;  %vm1636_vm4 = vcmp.eq.s32.totalorder %v1631_v56, 2  ;;  %v12245_v1 = vand.u32 4294901760, %v10622_v61 }
  0x68   :  { %9414 = vmatmul.mubr.f32.gmra.mxu1 %v10324_v32  ;;  %9448 = vmatprep.subr.mxu0 %v10480_v49  ;;  %v2902_v38 = vsub.s32 0, %v10627_v2  ;;  %vm1633_vm5 = vcmp.eq.s32.totalorder %v1631_v56, 0  ;;  %vm1632_vm6 = vcmp.lt.s32.totalorder %v1631_v56, 2  ;;  %v1527_v63 = vadd.s32 3, %v1523_v23  ;;  %v8919_v56 = vld [vmem:[%s12231_s1 + $0x28] sm:$0xff] }
  0x69   :  { %9422 = vmatmul.mubr.f32.gmra.mxu0 %v10342_v42  ;;  %9426 = vmatprep.mubr.f32.mxu1 %v337_v10  ;;  %v1000_v10 = vand.u32 4294901760, %v999_v13  ;;  %v939_v12 = vand.u32 4294901760, %v10601_v52  ;;  %v8942_v15 = vadd.s32 4294967169, %v4242_v6  ;;  %v10668_v52 = vsub.f32 %v10604_v30, %v12252_v19 }
  0x6a   :  { %9434 = vmatprep.mubr.f32.mxu0 %v10243_v5  ;;  %v8927_v13 = vmin.u32 %v2902_v38, %v10627_v2  ;;  %v959_v8 = vand.u32 4294901760, %v10639_v33  ;;  %v12247_v6 = vand.u32 2147483647, %v10584_v28  ;;  %vm2838_vm13 = vcmp.lt.s32.totalorder %v10331_v36, 0 }
  0x6b   :  { %v4248_v9 = vadd.s32 1, %v8942_v15  ;;  %v12263_v19 = vmov 920167782   ;;  %v2922_v0 = vsub.s32 4, %v10591_v53 }
  0x6c   :  { %9427 = vmatmul.mubr.f32.vlgmr.msra.gmra.mxu1 %v347_v47  ;;  %v10643_v47 = vpop.eup %10149 }
  0x6d   :  { %9441 = vmatpush3.msra.mxu1 %v10463_v26  ;;  %9435 = vmatmul.mubr.f32.vlgmr.msra.gmra.mxu0 %v10320_v27  ;;  %v12246_v26 = vand.u32 4294901760, %v10619_v58  ;;  %v10653_v62 = vpop.eup %10151  ;;  %v1534_v39 = vxor.u32 2147483648, %v10643_v47  ;;  %vm4249_vm7 = vcmp.gt.s32.totalorder %v4248_v9, 0 }
  0x6e   :  { %9429 = vmatprep.mubr.f32.mxu1 %v357_v50  ;;  %9437 = vmatprep.mubr.f32.mxu0 %v10322_v29  ;;  %v10658_v50 = vsub.f32 %v1661_v18, %v10625_v59  ;;  %v1531_v60 = vxor.u32 2147483648, %v10653_v62  ;;  %v2904_v18 = vclz %v8927_v13 }
  0x6f   :  { %9449 = vmatpush3.msra.mxu0 %v10480_v49  ;;  %9456 = vmatprep.subr.mxu1 %v1000_v10  ;;  %v1638_v42 = vsel %vm1636_vm4, %v1534_v39, %v10653_v62 }
  0x70   :  { %9430 = vmatmul.mubr.f32.gmra.mxu1 %v367_v7  ;;  %9464 = vmatprep.subr.mxu0 %v10525_v31  ;;  %v10677_v7 = vsel %vm252_vm0, %v8918_v40, 0  ;;  %v1635_v23 = vsel %vm1633_vm5, %v10643_v47, %v1531_v60  ;;  %v10693_v40 = vsub.f32 %v10622_v61, %v12245_v1  ;;  %v8928_v33 = vadd.s32 4294967294, %v2904_v18 }
  0x71   :  { %9438 = vmatmul.mubr.f32.gmra.mxu0 %v10324_v32  ;;  %9442 = vmatprep.mubr.f32.mxu1 %v10243_v5  ;;  %v10687_v5 = vsub.f32 %v10619_v58, %v12246_v26  ;;  %v1639_v38 = vsel %vm1632_vm6, %v1635_v23, %v1638_v42  ;;  %v10703_v42 = vand.u32 3, %v1527_v63  ;;  %v2892_v1 = vadd.s32 %v10492_v21, %v10502_v54 }
  0x72   :  { %9450 = vmatprep.mubr.f32.mxu0 %v929_v51  ;;  %v1764_v51 = vand.u32 4294901760, %v10658_v50  ;;  %v1640_v15 = vsel %vm1526_vm3, nan, %v1639_v38  ;;  %vm8929_vm8 = vcmp.lt.s32.totalorder %v8928_v33, 0  ;;  %v4250_v26 = vsel %vm4249_vm7, %v4248_v9, 0 }
  0x73   :  { %v1664_v23 = vsel %vm265_vm9, %v1640_v15, 0  ;;  %v10712_v18 = vsel %vm252_vm0, %v8919_v56, 0  ;;  %v2907_v63 = vsel %vm8929_vm8, 0, %v8928_v33  ;;  %vm1529_vm10 = vcmp.lt.s32.totalorder %v10703_v42, 2 }
  0x74   :  { %9443 = vmatmul.mubr.f32.vlgmr.msra.gmra.mxu1 %v10320_v27  ;;  %v10709_v27 = vand.u32 4294901760, %v1664_v23  ;;  %v2908_v21 = vsub.s32 32, %v2907_v63  ;;  %v2909_v54 = vshll.u32 %v10627_v2, %v2907_v63  ;;  %vm1530_vm11 = vcmp.eq.s32.totalorder %v10703_v42, 0 }
  0x75   :  { %9457 = vmatpush3.msra.mxu1 %v1000_v10  ;;  %9451 = vmatmul.mubr.f32.vlgmr.msra.gmra.mxu0 %v939_v12  ;;  %v10716_v10 = vand.u32 8388607, %v12247_v6  ;;  %v2912_v12 = vsub.s32 4294967266, %v2907_v63  ;;  %vm1533_vm12 = vcmp.eq.s32.totalorder %v10703_v42, 2  ;;  %v10730_v9 = vshrl.u32 %v4250_v26, 5 }
  0x76   :  { %9445 = vmatprep.mubr.f32.mxu1 %v10322_v29  ;;  %9453 = vmatprep.mubr.f32.mxu0 %v949_v14  ;;  %v4252_v29 = vand.u32 31, %v4250_v26  ;;  %v10724_v14 = vsub.f32 %v1664_v23, %v10709_v27  ;;  %v12259_v15 = vand.u32 2147483647, %v10331_v36  ;;  %vm2928_vm8 = vweird.f32 %v10331_v36 }
  0x77   :  { %9465 = vmatpush3.msra.mxu0 %v10525_v31  ;;  %9472 = vmatprep.subr.mxu1 %v10480_v49  ;;  %v2910_v31 = vshrl.u32 %v2892_v1, %v2908_v21  ;;  %v2913_v2 = vadd.s32 127, %v2912_v12  ;;  %v4246_v63 = vor.u32 8388608, %v10716_v10  ;;  %v1532_v12 = vsel %vm1530_vm11, %v10643_v47, %v1531_v60  ;;  %v10165_v1 = vld [vmem:[%s12229_s0] sm:$0x3] }
  0x78   :  { %9446 = vmatmul.mubr.f32.gmra.mxu1 %v10324_v32  ;;  %9480 = vmatprep.subr.mxu0 %v10555_v3  ;;  %v4253_v38 = vsub.s32 32, %v4252_v29  ;;  %v10734_v32 = vand.u32 4294901760, %v10724_v14  ;;  %v4255_v56 = vshll.u32 %v10166_v20, %v4252_v29  ;;  %v4258_v33 = vshll.u32 %v12248_v22, %v4252_v29 }
  0x79   :  { %9454 = vmatmul.mubr.f32.gmra.mxu0 %v959_v8  ;;  %9458 = vmatprep.mubr.f32.mxu1 %v10395_v16  ;;  %v4261_v8 = vshll.u32 %v12250_v24, %v4252_v29  ;;  %vm10742_vm14 = vcmp.le.f32.partialorder %v12259_v15, 0.7853982  ;;  %v2911_v26 = vor.u32 %v2910_v31, %v2909_v54  ;;  %v2914_v23 = vshll.u32 %v2913_v2, 23 }
  0x7a   :  { %9466 = vmatprep.mubr.f32.mxu0 %v10514_v44  ;;  %v4256_v21 = vshrl.u32 %v12248_v22, %v4253_v38  ;;  %v1535_v15 = vsel %vm1533_vm12, %v1534_v39, %v10653_v62  ;;  %v4259_v54 = vshrl.u32 %v12250_v24, %v4253_v38  ;;  %v12262_v31 = vmov 2102212464  }
  0x7b   :  { %v4262_v10 = vshrl.u32 %v12262_v31, %v4253_v38  ;;  %v1806_v2 = vsub.f32 %v10724_v14, %v10734_v32  ;;  %v2915_v6 = vor.u32 4788187, %v2914_v23  ;;  %v2918_v22 = vcvt.s32.f32 %v2911_v26 }
  0x7c   :  { %9459 = vmatmul.mubr.f32.vlgmr.msra.gmra.mxu1 %v10398_v17  ;;  %v4264_v60 = vshll.u32 %v12262_v31, %v4252_v29  ;;  %v4257_v47 = vor.u32 %v4256_v21, %v4255_v56  ;;  %v4260_v62 = vor.u32 %v4259_v54, %v4258_v33  ;;  %vm4270_vm15 = vcmp.lt.s32.totalorder %v10730_v9, 1 }
  0x7d   :  { %9473 = vmatpush3.msra.mxu1 %v10480_v49  ;;  %9467 = vmatmul.mubr.f32.vlgmr.msra.gmra.mxu0 %v10518_v41  ;;  %v4263_v39 = vor.u32 %v4262_v10, %v4261_v8  ;;  %v2916_v24 = vand.u32 2147483647, %v2915_v6  ;;  %v4265_v13 = vshrl.u32 %v12263_v19, %v4253_v38  ;;  %v4267_v26 = vshll.u32 %v12263_v19, %v4252_v29 }
  0x7e   :  { %9461 = vmatprep.mubr.f32.mxu1 %v10466_v37  ;;  %9469 = vmatprep.mubr.f32.mxu0 %v10535_v57  ;;  %v4268_v23 = vshrl.u32 %v10171_v35, %v4253_v38  ;;  %v1536_v56 = vsel %vm1529_vm10, %v1532_v12, %v1535_v15  ;;  %v4254_v33 = vshrl.u32 %v10166_v20, %v4253_v38  ;;  %vm4272_vm1 = vcmp.lt.s32.totalorder %v10730_v9, 3  ;;  %v8921_v57 = vld [vmem:[%s12231_s1 + $0x38] sm:$0xff] }
  0x7f   :  { %9481 = vmatpush3.msra.mxu0 %v10555_v3  ;;  %9488 = vmatprep.subr.mxu1 %v10480_v49  ;;  %vm4273_vm2 = vcmp.lt.s32.totalorder %v10730_v9, 4  ;;  %v2919_v3 = vmul.f32 %v2918_v22, %v2916_v24  ;;  %v4266_v6 = vor.u32 %v4265_v13, %v4264_v60  ;;  %vm4271_vm4 = vcmp.lt.s32.totalorder %v10730_v9, 2 }
  0x80   :  { %9462 = vmatmul.mubr.f32.gmra.mxu1 %v10548_v34  ;;  %9496 = vmatprep.subr.mxu0 %v10709_v27  ;;  %v4269_v29 = vor.u32 %v4268_v23, %v4267_v26  ;;  %v4275_v8 = vsel %vm4273_vm2, %v4263_v39, 2102212464  ;;  %v4278_v42 = vsel %vm4270_vm15, %v4257_v47, %v4260_v62  ;;  %v4282_v38 = vsel %vm4270_vm15, %v4260_v62, %v4263_v39 }
  0x81   :  { %9470 = vmatmul.mubr.f32.gmra.mxu0 %v10572_v48  ;;  %9474 = vmatprep.mubr.f32.mxu1 %v927_v43  ;;  %v4286_v21 = vshll.u32 %v4246_v63, 8  ;;  %v1807_v12 = vand.u32 4294901760, %v1806_v2  ;;  %v2920_v15 = vxor.u32 2147483648, %v2919_v3  ;;  %v4279_v54 = vsel %vm4273_vm2, %v4266_v6, 920167782 }
  0x82   :  { %9482 = vmatprep.mubr.f32.mxu0 %v10395_v16  ;;  %v4283_v44 = vsel %vm4273_vm2, %v4269_v29, 1326507024  ;;  %v4274_v22 = vsel %vm4270_vm15, %v4254_v33, %v4257_v47  ;;  %v4276_v24 = vsel %vm4272_vm1, %v4260_v62, %v4275_v8  ;;  %v4280_v43 = vsel %vm4272_vm1, %v4263_v39, %v4279_v54  ;;  %v8938_v54 = vld [vmem:[%s12230_s2 + $0x40] sm:$0xff] }
  0x83   :  { %v4284_v13 = vsel %vm4272_vm1, %v4266_v6, %v4283_v44  ;;  %v1537_v41 = vsel %vm1526_vm3, nan, %v1536_v56  ;;  %v4281_v63 = vsel %vm4271_vm4, %v4278_v42, %v4280_v43  ;;  %v1746_v26 = vand.u32 4294901760, %v10687_v5 }
  0x84   :  { %9475 = vmatmul.mubr.f32.vlgmr.msra.gmra.mxu1 %v937_v25  ;;  %v2921_v25 = vsel %vm2838_vm13, %v2920_v15, %v2919_v3  ;;  %v4285_v10 = vsel %vm4271_vm4, %v4282_v38, %v4284_v13  ;;  %v10829_v62 = vmul.u32.u64.low %v4286_v21, %v4281_v63  ;;  %v10830_v39 = vmul.u32.u64.high %v4286_v21, %v4281_v63, %v10829_v62 }
  0x85   :  { %9489 = vmatpush3.msra.mxu1 %v10480_v49  ;;  %9483 = vmatmul.mubr.f32.vlgmr.msra.gmra.mxu0 %v10398_v17  ;;  %v8920_v49 = vld [vmem:[%s12231_s1 + $0x30] sm:$0xff]  ;;  %v2924_v2 = vsel %vm10742_vm14, %v10331_v36, %v2921_v25  ;;  %v10820_v60 = vmul.u32.u64.low %v4286_v21, %v4285_v10  ;;  %v10821_v47 = vmul.u32.u64.high %v4286_v21, %v4285_v10, %v10820_v60  ;;  %v2254_v23 = vsel %vm265_vm9, %v1537_v41, 0 }
  0x86   :  { %9477 = vmatprep.mubr.f32.mxu1 %v947_v46  ;;  %9485 = vmatprep.mubr.f32.mxu0 %v10466_v37  ;;  %10153 = vcosq.f32 %v2924_v2  ;;  %v4277_v46 = vsel %vm4271_vm4, %v4274_v22, %v4276_v24  ;;  %v10839_v56 = vand.u32 4294901760, %v10677_v7  ;;  %v1756_v9 = vand.u32 4294901760, %v10693_v40 }
  0x87   :  { %9497 = vmatpush3.msra.mxu0 %v10709_v27  ;;  %9504 = vmatprep.subr.mxu1 %v1807_v12  ;;  %10155 = vsinq.f32 %v2924_v2  ;;  %v1765_v48 = vsub.f32 %v10658_v50, %v1764_v51  ;;  %v2248_v5 = vsel %vm252_vm0, %v8920_v49, 0  ;;  %v12264_v33 = vand.u32 4294901760, %v10668_v52 }
  0x88   :  { %9478 = vmatmul.mubr.f32.gmra.mxu1 %v957_v11  ;;  %9512 = vmatprep.subr.mxu0 %v10724_v14  ;;  %v10848_v11 = vand.u32 4294901760, %v10712_v18  ;;  %v2251_v3 = vsel %vm252_vm0, %v8921_v57, 0  ;;  %v4293_v6 = vmul.u32 %v4286_v21, %v4277_v46  ;;  %vm4295_vm3 = vc.u32 %v10821_v47, %v10829_v62  ;;  %v8939_v57 = vld [vmem:[%s12230_s2 + $0x48] sm:$0xff] }
  0x89   :  { %9486 = vmatmul.mubr.f32.gmra.mxu0 %v10548_v34  ;;  %9490 = vmatprep.mubr.f32.mxu1 %v10395_v16  ;;  %v2923_v16 = vsel %vm2838_vm13, %v2922_v0, %v10591_v53  ;;  %v10859_v40 = vand.u32 4294901760, %v2254_v23  ;;  %v4296_v29 = vadd.s32 1, %v10830_v39  ;;  %v10865_v52 = vsub.f32 %v10677_v7, %v10839_v56 }
  0x8a   :  { %9498 = vmatprep.mubr.f32.mxu0 %v12264_v33  ;;  %v10867_v8 = vand.u32 4294901760, %v2248_v5  ;;  %v1766_v42 = vand.u32 4294901760, %v1765_v48  ;;  %v10869_v53 = vand.u32 4294901760, %v2251_v3  ;;  %v10873_v38 = vsel %vm10742_vm14, 0, %v2923_v16  ;;  %v8940_v33 = vld [vmem:[%s12230_s2 + $0x50] sm:$0xff] }
  0x8b   :  { %v4297_v21 = vsel %vm4295_vm3, %v4296_v29, %v10830_v39  ;;  %v10889_v15 = vmul.f32 8.0, %v10165_v1  ;;  %v3054_v13 = vsel %vm252_vm0, %v8938_v54, 0  ;;  %v12265_v29 = vand.u32 4294901760, %v10604_v30 }
  0x8c   :  { %9491 = vmatmul.mubr.f32.vlgmr.msra.gmra.mxu1 %v10398_v17  ;;  %v10879_v17 = vsub.f32 %v10712_v18, %v10848_v11  ;;  %v4298_v7 = vadd.s32 %v4297_v21, %v4293_v6  ;;  %v10895_v18 = vsub.f32 %v2248_v5, %v10867_v8  ;;  %v10903_v22 = vsub.f32 %v2251_v3, %v10869_v53 }
  0x8d   :  { %9505 = vmatpush3.msra.mxu1 %v1807_v12  ;;  %9499 = vmatmul.mubr.f32.vlgmr.msra.gmra.mxu0 %v1746_v26  ;;  %v10884_v12 = vsub.f32 %v2254_v23, %v10859_v40  ;;  %v5643_v41 = vand.u32 2139095040, %v10889_v15  ;;  %v10952_v5 = vand.u32 4294901760, %v3054_v13  ;;  %v3057_v3 = vsel %vm252_vm0, %v8939_v57, 0 }
  0x8e   :  { %9493 = vmatprep.mubr.f32.mxu1 %v10466_v37  ;;  %9501 = vmatprep.mubr.f32.mxu0 %v1756_v9  ;;  %v2324_v37 = vand.u32 4294901760, %v10865_v52  ;;  %v4299_v44 = vadd.s32 536870912, %v4298_v7  ;;  %v12255_v10 = vand.u32 4294901760, %v10895_v18  ;;  %v12254_v2 = vand.u32 4294901760, %v10903_v22 }
  0x8f   :  { %9513 = vmatpush3.msra.mxu0 %v10724_v14  ;;  %9520 = vmatprep.subr.mxu1 %v10709_v27  ;;  %v3033_v14 = vand.u32 3, %v10873_v38  ;;  %v10910_v43 = vand.u32 4294901760, %v10884_v12  ;;  %v5644_v46 = vshrl.u32 %v5643_v41, 23  ;;  %v12253_v6 = vand.u32 2147483647, %v10889_v15 }
  0x90   :  { %9494 = vmatmul.mubr.f32.gmra.mxu1 %v10548_v34  ;;  %9528 = vmatprep.subr.mxu0 %v10734_v32  ;;  %v12256_v34 = vand.u32 4294901760, %v10879_v17  ;;  %v10907_v24 = vshrl.u32 %v4299_v44, 30  ;;  %v10920_v63 = vsub.f32 %v10865_v52, %v2324_v37  ;;  %v10977_v21 = vsub.f32 %v10903_v22, %v12254_v2 }
  0x91   :  { %9502 = vmatmul.mubr.f32.gmra.mxu0 %v1766_v42  ;;  %9506 = vmatprep.mubr.f32.mxu1 %v10566_v45  ;;  %vm3038_vm5 = vcmp.eq.s32.totalorder %v3033_v14, 2  ;;  %vm3035_vm6 = vcmp.eq.s32.totalorder %v3033_v14, 0  ;;  %vm3034_vm7 = vcmp.lt.s32.totalorder %v3033_v14, 2  ;;  %v2396_v9 = vsub.f32 %v10884_v12, %v10910_v43  ;;  %v8941_v14 = vld [vmem:[%s12230_s2 + $0x58] sm:$0xff] }
  0x92   :  { %9514 = vmatprep.mubr.f32.mxu0 %v10604_v30  ;;  %v4301_v49 = vshll.u32 %v10907_v24, 30  ;;  %v10938_v39 = vsub.f32 %v10879_v17, %v12256_v34  ;;  %v10972_v42 = vsub.f32 %v10895_v18, %v12255_v10  ;;  %v8958_v1 = vadd.s32 4294967169, %v5644_v46 }
  0x93   :  { %v10914_v25 = vpop.eup %10153  ;;  %v3060_v30 = vsel %vm252_vm0, %v8940_v33, 0  ;;  %v2929_v44 = vadd.s32 3, %v10873_v38  ;;  %v10987_v57 = vsub.f32 %v3054_v13, %v10952_v5  ;;  %v12266_v46 = vand.u32 4294901760, %v10619_v58 }
  0x94   :  { %9507 = vmatmul.mubr.f32.vlgmr.msra.gmra.mxu1 %v10579_v55  ;;  %v10924_v0 = vpop.eup %10155  ;;  %v2936_v60 = vxor.u32 2147483648, %v10914_v25  ;;  %v10941_v23 = vsub.s32 %v4298_v7, %v4301_v49  ;;  %v2397_v49 = vand.u32 4294901760, %v2396_v9  ;;  %v2336_v33 = vand.u32 4294901760, %v10938_v39 }
  0x95   :  { %9521 = vmatpush3.msra.mxu1 %v10709_v27  ;;  %9515 = vmatmul.mubr.f32.vlgmr.msra.gmra.mxu0 %v10619_v58  ;;  %v2933_v26 = vxor.u32 2147483648, %v10924_v0  ;;  %v5647_v9 = vand.u32 8388607, %v12253_v6  ;;  %v2346_v13 = vand.u32 4294901760, %v10972_v42  ;;  %v5650_v58 = vadd.s32 1, %v8958_v1 }
  0x96   :  { %9509 = vmatprep.mubr.f32.mxu1 %v10581_v4  ;;  %9517 = vmatprep.mubr.f32.mxu0 %v10622_v61  ;;  %v3040_v48 = vsel %vm3038_vm5, %v2936_v60, %v10924_v0  ;;  %v4304_v16 = vsub.s32 0, %v10941_v23  ;;  %v11011_v39 = vsel %vm252_vm0, %v8941_v14, 0  ;;  %v3136_v42 = vand.u32 4294901760, %v10987_v57 }
  0x97   :  { %9529 = vmatpush3.msra.mxu0 %v10734_v32  ;;  %9536 = vmatprep.subr.mxu1 %v10709_v27  ;;  %v3037_v32 = vsel %vm3035_vm6, %v10914_v25, %v2933_v26  ;;  %vm5651_vm10 = vcmp.gt.s32.totalorder %v5650_v58, 0  ;;  %v12269_v6 = vmov 2131351028   ;;  %vm4240_vm14 = vcmp.lt.s32.totalorder %v10584_v28, 0 }
  0x98   :  { %9510 = vmatmul.mubr.f32.gmra.mxu1 %v10625_v59  ;;  %9544 = vmatprep.subr.mxu0 %v10859_v40  ;;  %v3041_v7 = vsel %vm3034_vm7, %v3037_v32, %v3040_v48  ;;  %v8943_v41 = vmin.u32 %v4304_v16, %v10941_v23  ;;  %v2326_v48 = vand.u32 4294901760, %v10920_v63  ;;  %v11004_v16 = vand.u32 4294901760, %v3060_v30 }
  0x99   :  { %9518 = vmatmul.mubr.f32.gmra.mxu0 %v10658_v50  ;;  %9522 = vmatprep.mubr.f32.mxu1 %v12265_v29  ;;  %v3042_v54 = vsel %vm2928_vm8, nan, %v3041_v7  ;;  %v10989_v29 = vand.u32 4294901760, %v3057_v3  ;;  %v12267_v7 = vand.u32 4294901760, %v10622_v61  ;;  %v2356_v63 = vand.u32 4294901760, %v10977_v21 }
  0x9a   :  { %9530 = vmatprep.mubr.f32.mxu0 %v10566_v45  ;;  %v4306_v38 = vclz %v8943_v41  ;;  %v3066_v32 = vsel %vm265_vm9, %v3042_v54, 0  ;;  %v4294_v61 = vadd.s32 %v10829_v62, %v10821_v47  ;;  %v5652_v14 = vsel %vm5651_vm10, %v5650_v58, 0 }
  0x9b   :  { %v11018_v1 = vsub.f32 %v3057_v3, %v10989_v29  ;;  %v11025_v54 = vand.u32 4294901760, %v3066_v32  ;;  %v11030_v3 = vsub.f32 %v3060_v30, %v11004_v16  ;;  %v11033_v47 = vand.u32 4294901760, %v11011_v39 }
  0x9c   :  { %9523 = vmatmul.mubr.f32.vlgmr.msra.gmra.mxu1 %v12266_v46  ;;  %v8944_v41 = vadd.s32 4294967294, %v4306_v38  ;;  %v5654_v50 = vand.u32 31, %v5652_v14  ;;  %v11037_v38 = vshrl.u32 %v5652_v14, 5  ;;  %v12268_v58 = vmov 2475754826  }
  0x9d   :  { %9537 = vmatpush3.msra.mxu1 %v10709_v27  ;;  %9531 = vmatmul.mubr.f32.vlgmr.msra.gmra.mxu0 %v10579_v55  ;;  %v11013_v27 = vand.u32 3, %v2929_v44  ;;  %v5648_v44 = vor.u32 8388608, %v5647_v9 }
  0x9e   :  { %9525 = vmatprep.mubr.f32.mxu1 %v12267_v7  ;;  %9533 = vmatprep.mubr.f32.mxu0 %v10581_v4  ;;  %vm8945_vm11 = vcmp.lt.s32.totalorder %v8944_v41, 0  ;;  %v5657_v30 = vshll.u32 %v10166_v20, %v5654_v50  ;;  %v5660_v7 = vshll.u32 %v12268_v58, %v5654_v50  ;;  %v5663_v2 = vshll.u32 %v12269_v6, %v5654_v50 }
  0x9f   :  { %9545 = vmatpush3.msra.mxu0 %v10859_v40  ;;  %9552 = vmatprep.subr.mxu1 %v2397_v49  ;;  %v4309_v62 = vsel %vm8945_vm11, 0, %v8944_v41  ;;  %vm2935_vm12 = vcmp.eq.s32.totalorder %v11013_v27, 2  ;;  %vm2932_vm13 = vcmp.eq.s32.totalorder %v11013_v27, 0  ;;  %v11044_v41 = vsub.f32 %v3066_v32, %v11025_v54 }
  0xa0   :  { %9526 = vmatmul.mubr.f32.gmra.mxu1 %v1764_v51  ;;  %9560 = vmatprep.subr.mxu0 %v10884_v12  ;;  %v4310_v51 = vsub.s32 32, %v4309_v62  ;;  %v4311_v46 = vshll.u32 %v10941_v23, %v4309_v62  ;;  %v4314_v9 = vsub.s32 4294967266, %v4309_v62  ;;  %v11047_v10 = vshll.u32 %v5648_v44, 8 }
  0xa1   :  { %9534 = vmatmul.mubr.f32.gmra.mxu0 %v10625_v59  ;;  %9538 = vmatprep.mubr.f32.mxu1 %v10566_v45  ;;  %v5655_v45 = vsub.s32 32, %v5654_v50  ;;  %vm5672_vm15 = vcmp.lt.s32.totalorder %v11037_v38, 1  ;;  %v5669_v44 = vshll.u32 %v12263_v19, %v5654_v50  ;;  %vm5674_vm2 = vcmp.lt.s32.totalorder %v11037_v38, 3 }
  0xa2   :  { %9546 = vmatprep.mubr.f32.mxu0 %v2326_v48  ;;  %v4312_v48 = vshrl.u32 %v4294_v61, %v4310_v51  ;;  %v4315_v23 = vadd.s32 127, %v4314_v9  ;;  %v5666_v61 = vshll.u32 %v12262_v31, %v5654_v50  ;;  %vm5673_vm4 = vcmp.lt.s32.totalorder %v11037_v38, 2 }
  0xa3   :  { %v5656_v14 = vshrl.u32 %v10166_v20, %v5655_v45  ;;  %v5658_v62 = vshrl.u32 %v12268_v58, %v5655_v45  ;;  %v5661_v34 = vshrl.u32 %v12269_v6, %v5655_v45  ;;  %v5664_v32 = vshrl.u32 %v12262_v31, %v5655_v45  ;;  %v8937_v6 = vld [vmem:[%s12231_s1 + $0x58] sm:$0xff] }
  0xa4   :  { %9539 = vmatmul.mubr.f32.vlgmr.msra.gmra.mxu1 %v10579_v55  ;;  %v4313_v55 = vor.u32 %v4312_v48, %v4311_v46  ;;  %v12270_v20 = vand.u32 2147483647, %v10584_v28  ;;  %v11069_v31 = vand.u32 4294901760, %v11044_v41  ;;  %v5670_v51 = vshrl.u32 %v10171_v35, %v5655_v45 }
  0xa5   :  { %9553 = vmatpush3.msra.mxu1 %v2397_v49  ;;  %9547 = vmatmul.mubr.f32.vlgmr.msra.gmra.mxu0 %v2336_v33  ;;  %v5659_v49 = vor.u32 %v5658_v62, %v5657_v30  ;;  %v5662_v33 = vor.u32 %v5661_v34, %v5660_v7  ;;  %vm5675_vm3 = vcmp.lt.s32.totalorder %v11037_v38, 4  ;;  %vm2931_vm5 = vcmp.lt.s32.totalorder %v11013_v27, 2 }
  0xa6   :  { %9541 = vmatprep.mubr.f32.mxu1 %v10581_v4  ;;  %9549 = vmatprep.mubr.f32.mxu0 %v2346_v13  ;;  %vm11061_vm1 = vcmp.le.f32.partialorder %v12270_v20, 0.7853982  ;;  %v4316_v4 = vshll.u32 %v4315_v23, 23  ;;  %v5667_v13 = vshrl.u32 %v12263_v19, %v5655_v45  ;;  %v4320_v46 = vcvt.s32.f32 %v4313_v55 }
  0xa7   :  { %9561 = vmatpush3.msra.mxu0 %v10884_v12  ;;  %9568 = vmatprep.subr.mxu1 %v10859_v40  ;;  %v5665_v12 = vor.u32 %v5664_v32, %v5663_v2  ;;  %v5680_v35 = vsel %vm5672_vm15, %v5659_v49, %v5662_v33  ;;  %v5676_v2 = vsel %vm5672_vm15, %v5656_v14, %v5659_v49  ;;  %v3146_v38 = vand.u32 4294901760, %v11018_v1 }
  0xa8   :  { %9542 = vmatmul.mubr.f32.gmra.mxu1 %v10625_v59  ;;  %9576 = vmatprep.subr.mxu0 %v10910_v43  ;;  %v4317_v34 = vor.u32 4788187, %v4316_v4  ;;  %v5668_v9 = vor.u32 %v5667_v13, %v5666_v61  ;;  %v5671_v59 = vor.u32 %v5670_v51, %v5669_v44  ;;  %v2937_v7 = vsel %vm2935_vm12, %v2936_v60, %v10924_v0 }
  0xa9   :  { %9550 = vmatmul.mubr.f32.gmra.mxu0 %v2356_v63  ;;  %9554 = vmatprep.mubr.f32.mxu1 %v10839_v56  ;;  %v5677_v21 = vsel %vm5675_vm3, %v5665_v12, 2102212464  ;;  %v5684_v30 = vsel %vm5672_vm15, %v5662_v33, %v5665_v12  ;;  %v2934_v14 = vsel %vm2932_vm13, %v10914_v25, %v2933_v26  ;;  %v3208_v32 = vsub.f32 %v11044_v41, %v11069_v31 }
  0xaa   :  { %9562 = vmatprep.mubr.f32.mxu0 %v10865_v52  ;;  %v4318_v19 = vand.u32 2147483647, %v4317_v34  ;;  %v5681_v63 = vsel %vm5675_vm3, %v5668_v9, 920167782  ;;  %v5678_v50 = vsel %vm5674_vm2, %v5662_v33, %v5677_v21  ;;  %v5685_v58 = vsel %vm5675_vm3, %v5671_v59, 1326507024 }
  0xab   :  { %v5682_v45 = vsel %vm5674_vm2, %v5665_v12, %v5681_v63  ;;  %v5686_v62 = vsel %vm5674_vm2, %v5668_v9, %v5685_v58  ;;  %v5679_v61 = vsel %vm5673_vm4, %v5676_v2, %v5678_v50  ;;  %v3156_v4 = vand.u32 4294901760, %v11030_v3  ;;  %v8934_v9 = vld [vmem:[%s12231_s1 + $0x40] sm:$0xff]  ;;  %v8936_v58 = vld [vmem:[%s12231_s1 + $0x50] sm:$0xff] }
  0xac   :  { %9555 = vmatmul.mubr.f32.vlgmr.msra.gmra.mxu1 %v10848_v11  ;;  %v4321_v48 = vmul.f32 %v4320_v46, %v4318_v19  ;;  %v5683_v23 = vsel %vm5673_vm4, %v5680_v35, %v5682_v45  ;;  %v5687_v25 = vsel %vm5673_vm4, %v5684_v30, %v5686_v62  ;;  %v11139_v49 = vsub.f32 %v11011_v39, %v11033_v47 }
  0xad   :  { %9569 = vmatpush3.msra.mxu1 %v10859_v40  ;;  %9563 = vmatmul.mubr.f32.vlgmr.msra.gmra.mxu0 %v10879_v17  ;;  %v11111_v55 = vmul.u32.u64.low %v11047_v10, %v5683_v23  ;;  %v11112_v60 = vmul.u32.u64.high %v11047_v10, %v5683_v23, %v11111_v55  ;;  %v11129_v26 = vmul.u32.u64.low %v11047_v10, %v5687_v25  ;;  %v11130_v20 = vmul.u32.u64.high %v11047_v10, %v5687_v25, %v11129_v26 }
  0xae   :  { %9557 = vmatprep.mubr.f32.mxu1 %v10867_v8  ;;  %9565 = vmatprep.mubr.f32.mxu0 %v10895_v18  ;;  %v4322_v0 = vxor.u32 2147483648, %v4321_v48  ;;  %v2938_v13 = vsel %vm2931_vm5, %v2934_v14, %v2937_v7  ;;  %v3209_v44 = vand.u32 4294901760, %v3208_v32  ;;  %v12273_v39 = vand.u32 4294901760, %v10879_v17 }
  0xaf   :  { %9577 = vmatpush3.msra.mxu0 %v10910_v43  ;;  %9584 = vmatprep.subr.mxu1 %v10859_v40  ;;  %v3137_v43 = vsub.f32 %v10987_v57, %v3136_v42  ;;  %v5698_v12 = vadd.s32 1, %v11112_v60  ;;  %vm5697_vm6 = vc.u32 %v11130_v20, %v11111_v55  ;;  %v3147_v27 = vsub.f32 %v11018_v1, %v3146_v38 }
  0xb0   :  { %9558 = vmatmul.mubr.f32.gmra.mxu1 %v10869_v53  ;;  %9592 = vmatprep.subr.mxu0 %v11025_v54  ;;  %v4323_v33 = vsel %vm4240_vm14, %v4322_v0, %v4321_v48  ;;  %v2939_v51 = vsel %vm2928_vm8, nan, %v2938_v13  ;;  %v12274_v34 = vand.u32 4294901760, %v10895_v18  ;;  %v4324_v59 = vsub.s32 4, %v10907_v24 }
  0xb1   :  { %9566 = vmatmul.mubr.f32.gmra.mxu0 %v10903_v22  ;;  %9570 = vmatprep.mubr.f32.mxu1 %v2324_v37  ;;  %v4326_v52 = vsel %vm11061_vm1, %v10584_v28, %v4323_v33  ;;  %v5695_v37 = vmul.u32 %v11047_v10, %v5679_v61  ;;  %v3166_v10 = vand.u32 4294901760, %v11139_v49  ;;  %v5699_v17 = vsel %vm5697_vm6, %v5698_v12, %v11112_v60 }
  0xb2   :  { %9578 = vmatprep.mubr.f32.mxu0 %v10839_v56  ;;  %10157 = vcosq.f32 %v4326_v52  ;;  %v3138_v46 = vand.u32 4294901760, %v3137_v43  ;;  %v12275_v18 = vand.u32 4294901760, %v10903_v22  ;;  %v3656_v35 = vsel %vm265_vm9, %v2939_v51, 0 }
  0xb3   :  { %10159 = vsinq.f32 %v4326_v52  ;;  %v5700_v36 = vadd.s32 %v5699_v17, %v5695_v37  ;;  %v3148_v2 = vand.u32 4294901760, %v3147_v27  ;;  %v3167_v21 = vsub.f32 %v11139_v49, %v3166_v10 }
  0xb4   :  { %9571 = vmatmul.mubr.f32.vlgmr.msra.gmra.mxu1 %v12273_v39  ;;  %v3644_v63 = vsel %vm252_vm0, %v8934_v9, 0  ;;  %v4325_v22 = vsel %vm4240_vm14, %v4324_v59, %v10907_v24  ;;  %v11190_v30 = vand.u32 4294901760, %v3656_v35  ;;  %v3650_v62 = vsel %vm252_vm0, %v8936_v58, 0 }
  0xb5   :  { %9585 = vmatpush3.msra.mxu1 %v10859_v40  ;;  %9579 = vmatmul.mubr.f32.vlgmr.msra.gmra.mxu0 %v10848_v11  ;;  %v3157_v40 = vsub.f32 %v11030_v3, %v3156_v4  ;;  %v5701_v19 = vadd.s32 536870912, %v5700_v36  ;;  %v11199_v7 = vand.u32 4294901760, %v3644_v63  ;;  %v3168_v24 = vand.u32 4294901760, %v3167_v21 }
  0xb6   :  { %9573 = vmatprep.mubr.f32.mxu1 %v12274_v34  ;;  %9581 = vmatprep.mubr.f32.mxu0 %v10867_v8  ;;  %v11204_v23 = vsel %vm11061_vm1, 0, %v4325_v22  ;;  %v11233_v43 = vand.u32 4294901760, %v3650_v62  ;;  %vm4330_vm12 = vweird.f32 %v10584_v28  ;;  %vm5642_vm13 = vcmp.lt.s32.totalorder %v10889_v15, 0 }
  0xb7   :  { %9593 = vmatpush3.msra.mxu0 %v11025_v54  ;;  %9600 = vmatprep.subr.mxu1 %v3209_v44  ;;  %v3158_v50 = vand.u32 4294901760, %v3157_v40  ;;  %v11188_v45 = vshrl.u32 %v5701_v19, 30  ;;  %v5696_v40 = vadd.s32 %v11111_v55, %v11130_v20  ;;  %vm5732_vm6 = vweird.f32 %v10889_v15 }
  0xb8   :  { %9574 = vmatmul.mubr.f32.gmra.mxu1 %v12275_v18  ;;  %9608 = vmatprep.subr.mxu0 %v11044_v41  ;;  %v11251_v39 = vsub.f32 %v3650_v62, %v11233_v43  ;;  %v8955_v62 = vld [vmem:[%s12230_s2 + $0x68] sm:$0xff] }
  0xb9   :  { %9582 = vmatmul.mubr.f32.gmra.mxu0 %v10869_v53  ;;  %9586 = vmatprep.mubr.f32.mxu1 %v10839_v56  ;;  %v8935_v56 = vld [vmem:[%s12231_s1 + $0x48] sm:$0xff]  ;;  %v5703_v48 = vshll.u32 %v11188_v45, 30 }
  0xba   :  { %9594 = vmatprep.mubr.f32.mxu0 %v3138_v46  ;;  %v3647_v14 = vsel %vm252_vm0, %v8935_v56, 0  ;;  %v3746_v59 = vand.u32 4294901760, %v11251_v39 }
  0xbb   :  { %v11209_v60 = vsub.s32 %v5700_v36, %v5703_v48  ;;  %v11231_v25 = vand.u32 4294901760, %v3647_v14 }
  0xbc   :  { %9587 = vmatmul.mubr.f32.vlgmr.msra.gmra.mxu1 %v10848_v11  ;;  %v11214_v11 = vsub.f32 %v3656_v35, %v11190_v30 }
  0xbd   :  { %9601 = vmatpush3.msra.mxu1 %v3209_v44  ;;  %9595 = vmatmul.mubr.f32.vlgmr.msra.gmra.mxu0 %v3148_v2  ;;  %v5706_v0 = vsub.s32 0, %v11209_v60  ;;  %v11248_v44 = vsub.f32 %v3647_v14, %v11231_v25 }
  0xbe   :  { %9589 = vmatprep.mubr.f32.mxu1 %v10867_v8  ;;  %9597 = vmatprep.mubr.f32.mxu0 %v3158_v50  ;;  %v11224_v8 = vsub.f32 %v3644_v63, %v11199_v7  ;;  %v11239_v33 = vand.u32 4294901760, %v11214_v11 }
  0xbf   :  { %9609 = vmatpush3.msra.mxu0 %v11044_v41  ;;  %9616 = vmatprep.subr.mxu1 %v11025_v54  ;;  %v11219_v32 = vpop.eup %10157  ;;  %v4435_v41 = vand.u32 3, %v11204_v23  ;;  %v8959_v26 = vmin.u32 %v5706_v0, %v11209_v60  ;;  %v3736_v9 = vand.u32 4294901760, %v11248_v44 }
  0xc0   :  { %9590 = vmatmul.mubr.f32.gmra.mxu1 %v10869_v53  ;;  %9624 = vmatprep.subr.mxu0 %v11069_v31  ;;  %v11228_v61 = vpop.eup %10159  ;;  %v3653_v53 = vsel %vm252_vm0, %v8937_v6, 0  ;;  %v4338_v52 = vxor.u32 2147483648, %v11219_v32  ;;  %v3726_v37 = vand.u32 4294901760, %v11224_v8  ;;  %v3798_v17 = vsub.f32 %v11214_v11, %v11239_v33  ;;  %v8956_v6 = vld [vmem:[%s12230_s2 + $0x70] sm:$0xff] }
  0xc1   :  { %9598 = vmatmul.mubr.f32.gmra.mxu0 %v3168_v24  ;;  %9602 = vmatprep.mubr.f32.mxu1 %v10952_v5  ;;  %v4335_v13 = vxor.u32 2147483648, %v11228_v61  ;;  %vm4437_vm7 = vcmp.eq.s32.totalorder %v4435_v41, 0  ;;  %vm4440_vm8 = vcmp.eq.s32.totalorder %v4435_v41, 2  ;;  %v5708_v12 = vclz %v8959_v26 }
  0xc2   :  { %9610 = vmatprep.mubr.f32.mxu0 %v10987_v57  ;;  %v11253_v27 = vand.u32 4294901760, %v3653_v53  ;;  %vm4436_vm10 = vcmp.lt.s32.totalorder %v4435_v41, 2  ;;  %v4442_v46 = vsel %vm4440_vm8, %v4338_v52, %v11228_v61  ;;  %v3799_v19 = vand.u32 4294901760, %v3798_v17 }
  0xc3   :  { %v8960_v51 = vadd.s32 4294967294, %v5708_v12  ;;  %v4439_v34 = vsel %vm4437_vm7, %v11219_v32, %v4335_v13  ;;  %v3737_v2 = vsub.f32 %v11248_v44, %v3736_v9  ;;  %v4459_v26 = vsel %vm252_vm0, %v8955_v62, 0  ;;  %v8957_v12 = vld [vmem:[%s12230_s2 + $0x78] sm:$0xff] }
  0xc4   :  { %9603 = vmatmul.mubr.f32.vlgmr.msra.gmra.mxu1 %v10989_v29  ;;  %v11280_v36 = vsub.f32 %v3653_v53, %v11253_v27  ;;  %v4443_v55 = vsel %vm4436_vm10, %v4439_v34, %v4442_v46  ;;  %v4465_v46 = vsel %vm252_vm0, %v8957_v12, 0 }
  0xc5   :  { %9617 = vmatpush3.msra.mxu1 %v11025_v54  ;;  %9611 = vmatmul.mubr.f32.vlgmr.msra.gmra.mxu0 %v11018_v1  ;;  %vm8961_vm11 = vcmp.lt.s32.totalorder %v8960_v51, 0  ;;  %v4444_v63 = vsel %vm4330_vm12, nan, %v4443_v55  ;;  %v3738_v56 = vand.u32 4294901760, %v3737_v2 }
  0xc6   :  { %9605 = vmatprep.mubr.f32.mxu1 %v11004_v16  ;;  %9613 = vmatprep.mubr.f32.mxu0 %v11030_v3  ;;  %v5711_v18 = vsel %vm8961_vm11, 0, %v8960_v51  ;;  %v3756_v21 = vand.u32 4294901760, %v11280_v36  ;;  %v4468_v3 = vsel %vm265_vm9, %v4444_v63, 0 }
  0xc7   :  { %9625 = vmatpush3.msra.mxu0 %v11069_v31  ;;  %9632 = vmatprep.subr.mxu1 %v11025_v54  ;;  %v3727_v31 = vsub.f32 %v11224_v8, %v3726_v37  ;;  %v5712_v20 = vsub.s32 32, %v5711_v18  ;;  %v5713_v35 = vshll.u32 %v11209_v60, %v5711_v18  ;;  %v5716_v57 = vsub.s32 4294967266, %v5711_v18 }
  0xc8   :  { %9606 = vmatmul.mubr.f32.gmra.mxu1 %v11033_v47  ;;  %9640 = vmatprep.subr.mxu0 %v11190_v30  ;;  %v3757_v58 = vsub.f32 %v11280_v36, %v3756_v21  ;;  %v11315_v24 = vand.u32 4294901760, %v4468_v3  ;;  %v4331_v60 = vadd.s32 3, %v11204_v23  ;;  %v4462_v23 = vsel %vm252_vm0, %v8956_v6, 0 }
  0xc9   :  { %9614 = vmatmul.mubr.f32.gmra.mxu0 %v11139_v49  ;;  %9618 = vmatprep.mubr.f32.mxu1 %v3136_v42  ;;  %v5714_v42 = vshrl.u32 %v5696_v40, %v5712_v20  ;;  %v5717_v50 = vadd.s32 127, %v5716_v57  ;;  %v3728_v1 = vand.u32 4294901760, %v3727_v31  ;;  %v11349_v34 = vand.u32 4294901760, %v4462_v23 }
  0xca   :  { %9626 = vmatprep.mubr.f32.mxu0 %v10952_v5  ;;  %v3758_v41 = vand.u32 4294901760, %v3757_v58  ;;  %v4332_v51 = vand.u32 3, %v4331_v60  ;;  %v12276_v31 = vand.u32 2147483647, %v10889_v15  ;;  %v11369_v20 = vand.u32 4294901760, %v4465_v46 }
  0xcb   :  { %v5718_v22 = vshll.u32 %v5717_v50, 23 }
  0xcc   :  { %9619 = vmatmul.mubr.f32.vlgmr.msra.gmra.mxu1 %v3146_v38  ;;  %v5715_v38 = vor.u32 %v5714_v42, %v5713_v35  ;;  %vm4337_vm14 = vcmp.eq.s32.totalorder %v4332_v51, 2  ;;  %vm4334_vm15 = vcmp.eq.s32.totalorder %v4332_v51, 0  ;;  %vm11358_vm1 = vcmp.le.f32.partialorder %v12276_v31, 0.7853982 }
  0xcd   :  { %9633 = vmatpush3.msra.mxu1 %v11025_v54  ;;  %9627 = vmatmul.mubr.f32.vlgmr.msra.gmra.mxu0 %v10989_v29  ;;  %v3747_v54 = vsub.f32 %v11251_v39, %v3746_v59  ;;  %v5719_v48 = vor.u32 4788187, %v5718_v22  ;;  %v4339_v57 = vsel %vm4337_vm14, %v4338_v52, %v11228_v61  ;;  %vm4333_vm2 = vcmp.lt.s32.totalorder %v4332_v51, 2 }
  0xce   :  { %9621 = vmatprep.mubr.f32.mxu1 %v3156_v4  ;;  %9629 = vmatprep.mubr.f32.mxu0 %v11004_v16  ;;  %v8954_v4 = vld [vmem:[%s12230_s2 + $0x60] sm:$0xff]  ;;  %v5722_v49 = vcvt.s32.f32 %v5715_v38  ;;  %v4336_v2 = vsel %vm4334_vm15, %v11219_v32, %v4335_v13  ;;  %v11398_v61 = vsub.f32 %v4465_v46, %v11369_v20 }
  0xcf   :  { %9641 = vmatpush3.msra.mxu0 %v11190_v30  ;;  %9648 = vmatprep.subr.mxu1 %v3799_v19  ;;  %v4456_v14 = vsel %vm252_vm0, %v8954_v4, 0  ;;  %v4340_v52 = vsel %vm4333_vm2, %v4336_v2, %v4339_v57 }
  0xd0   :  { %9622 = vmatmul.mubr.f32.gmra.mxu1 %v3166_v10  ;;  %9656 = vmatprep.subr.mxu0 %v11214_v11  ;;  %v3748_v10 = vand.u32 4294901760, %v3747_v54  ;;  %v11327_v53 = vand.u32 4294901760, %v4456_v14 }
  0xd1   :  { %9630 = vmatmul.mubr.f32.gmra.mxu0 %v11033_v47  ;;  %9634 = vmatprep.mubr.f32.mxu1 %v10952_v5  ;;  %v5720_v5 = vand.u32 2147483647, %v5719_v48 }
  0xd2   :  { %9642 = vmatprep.mubr.f32.mxu0 %v3728_v1  ;;  %v11347_v17 = vsub.f32 %v4456_v14, %v11327_v53  ;;  %v4341_v1 = vsel %vm4330_vm12, nan, %v4340_v52  ;;  %v10172_v52 = vmov 0  }
  0xd3   :  { %v5723_v0 = vmul.f32 %v5722_v49, %v5720_v5  ;;  %v5058_v28 = vsel %vm265_vm9, %v4341_v1, 0  ;;  %10143 = vset.pattern.permute.xlu0 %v10172_v52  ;;  %10144 = vset.pattern.permute.xlu1 %v10172_v52 }
  0xd4   :  { %9635 = vmatmul.mubr.f32.vlgmr.msra.gmra.mxu1 %v10989_v29  ;;  %v11333_v29 = vsub.f32 %v4468_v3, %v11315_v24  ;;  %v4538_v35 = vand.u32 4294901760, %v11347_v17  ;;  %v11438_v38 = vand.u32 4294901760, %v5058_v28  ;;  %v8951_v3 = vld [vmem:[%s12231_s1 + $0x68] sm:$0xff] }
  0xd5   :  { %9649 = vmatpush3.msra.mxu1 %v3799_v19  ;;  %9643 = vmatmul.mubr.f32.vlgmr.msra.gmra.mxu0 %v3738_v56  ;;  %v11375_v19 = vsub.f32 %v4462_v23, %v11349_v34  ;;  %v5049_v58 = vsel %vm252_vm0, %v8951_v3, 0 }
  0xd6   :  { %9637 = vmatprep.mubr.f32.mxu1 %v11004_v16  ;;  %9645 = vmatprep.mubr.f32.mxu0 %v3748_v10  ;;  %v5724_v16 = vxor.u32 2147483648, %v5723_v0  ;;  %v4539_v32 = vsub.f32 %v11347_v17, %v4538_v35  ;;  %v11473_v62 = vand.u32 4294901760, %v5049_v58 }
  0xd7   :  { %9657 = vmatpush3.msra.mxu0 %v11214_v11  ;;  %9664 = vmatprep.subr.mxu1 %v11190_v30  ;;  %v11342_v11 = vand.u32 4294901760, %v4459_v26  ;;  %v4558_v13 = vand.u32 4294901760, %v11375_v19 }
  0xd8   :  { %9638 = vmatmul.mubr.f32.gmra.mxu1 %v11033_v47  ;;  %9672 = vmatprep.subr.mxu0 %v11239_v33  ;;  %v11353_v47 = vand.u32 4294901760, %v11333_v29  ;;  %v5725_v18 = vsel %vm5642_vm13, %v5724_v16, %v5723_v0 }
  0xd9   :  { %9646 = vmatmul.mubr.f32.gmra.mxu0 %v3758_v41  ;;  %9650 = vmatprep.mubr.f32.mxu1 %v11199_v7  ;;  %v11367_v55 = vsub.f32 %v4459_v26, %v11342_v11  ;;  %v5728_v63 = vsel %vm11358_vm1, %v10889_v15, %v5725_v18  ;;  %v11491_v26 = vsub.f32 %v5049_v58, %v11473_v62 }
  0xda   :  { %9658 = vmatprep.mubr.f32.mxu0 %v11224_v8  ;;  %v4610_v42 = vsub.f32 %v11333_v29, %v11353_v47  ;;  %10161 = vcosq.f32 %v5728_v63 }
  0xdb   :  { %10163 = vsinq.f32 %v5728_v63 }
  0xdc   :  { %9651 = vmatmul.mubr.f32.vlgmr.msra.gmra.mxu1 %v11231_v25  ;;  %v4611_v50 = vand.u32 4294901760, %v4610_v42 }
  0xdd   :  { %9665 = vmatpush3.msra.mxu1 %v11190_v30  ;;  %9659 = vmatmul.mubr.f32.vlgmr.msra.gmra.mxu0 %v11248_v44  ;;  %v4540_v44 = vand.u32 4294901760, %v4539_v32 }
  0xde   :  { %9653 = vmatprep.mubr.f32.mxu1 %v11233_v43  ;;  %9661 = vmatprep.mubr.f32.mxu0 %v11251_v39  ;;  %v8950_v39 = vld [vmem:[%s12231_s1 + $0x60] sm:$0xff] }
  0xdf   :  { %9673 = vmatpush3.msra.mxu0 %v11239_v33  ;;  %9680 = vmatprep.subr.mxu1 %v11190_v30  ;;  %v4548_v33 = vand.u32 4294901760, %v11367_v55  ;;  %v5046_v22 = vsel %vm252_vm0, %v8950_v39, 0  ;;  %v8973_v39 = vld [vmem:[%s12230_s2 + $0x98] sm:$0xff] }
  0xe0   :  { %9654 = vmatmul.mubr.f32.gmra.mxu1 %v11253_v27  ;;  %9688 = vmatprep.subr.mxu0 %v11315_v24  ;;  %v11453_v56 = vand.u32 4294901760, %v5046_v22 }
  0xe1   :  { %9662 = vmatmul.mubr.f32.gmra.mxu0 %v11280_v36  ;;  %9666 = vmatprep.mubr.f32.mxu1 %v3726_v37  ;;  %v4549_v8 = vsub.f32 %v11367_v55, %v4548_v33  ;;  %v4568_v37 = vand.u32 4294901760, %v11398_v61 }
  0xe2   :  { %9674 = vmatprep.mubr.f32.mxu0 %v11199_v7  ;;  %v11477_v60 = vsub.f32 %v5046_v22, %v11453_v56 }
  0xe3   :  { %v4569_v54 = vsub.f32 %v11398_v61, %v4568_v37 }
  0xe4   :  { %9667 = vmatmul.mubr.f32.vlgmr.msra.gmra.mxu1 %v3736_v9  ;;  %v5726_v9 = vsub.s32 4, %v11188_v45  ;;  %v5128_v23 = vand.u32 4294901760, %v11477_v60 }
  0xe5   :  { %9681 = vmatpush3.msra.mxu1 %v11190_v30  ;;  %9675 = vmatmul.mubr.f32.vlgmr.msra.gmra.mxu0 %v11231_v25  ;;  %v4559_v30 = vsub.f32 %v11375_v19, %v4558_v13  ;;  %v4570_v4 = vand.u32 4294901760, %v4569_v54  ;;  %v7042_v54 = vld [vmem:[%s12232_s3 + $0x8] sm:$0xff] }
  0xe6   :  { %9669 = vmatprep.mubr.f32.mxu1 %v3746_v59  ;;  %9677 = vmatprep.mubr.f32.mxu0 %v11233_v43  ;;  %v4550_v59 = vand.u32 4294901760, %v4549_v8  ;;  %v5129_v40 = vsub.f32 %v11477_v60, %v5128_v23 }
  0xe7   :  { %9689 = vmatpush3.msra.mxu0 %v11315_v24  ;;  %9696 = vmatprep.subr.mxu1 %v4611_v50  ;;  %v4560_v36 = vand.u32 4294901760, %v4559_v30  ;;  %v11456_v48 = vpop.eup %10161 }
  0xe8   :  { %9670 = vmatmul.mubr.f32.gmra.mxu1 %v3756_v21  ;;  %9704 = vmatprep.subr.mxu0 %v11333_v29  ;;  %v5727_v21 = vsel %vm5642_vm13, %v5726_v9, %v11188_v45  ;;  %v11467_v10 = vpop.eup %10163  ;;  %v5740_v0 = vxor.u32 2147483648, %v11456_v48 }
  0xe9   :  { %9678 = vmatmul.mubr.f32.gmra.mxu0 %v11253_v27  ;;  %9682 = vmatprep.mubr.f32.mxu1 %v11199_v7  ;;  %v8952_v7 = vld [vmem:[%s12231_s1 + $0x70] sm:$0xff]  ;;  %v11450_v45 = vsel %vm11358_vm1, 0, %v5727_v21  ;;  %v5737_v41 = vxor.u32 2147483648, %v11467_v10 }
  0xea   :  { %9690 = vmatprep.mubr.f32.mxu0 %v4540_v44  ;;  %v5052_v49 = vsel %vm252_vm0, %v8952_v7, 0  ;;  %v5837_v14 = vand.u32 3, %v11450_v45  ;;  %v5733_v1 = vadd.s32 3, %v11450_v45  ;;  %7052 = vperm.xlu1 %10144, %v7042_v54  }
  0xeb   :  { %v11479_v5 = vand.u32 4294901760, %v5052_v49 }
  0xec   :  { %9683 = vmatmul.mubr.f32.vlgmr.msra.gmra.mxu1 %v11231_v25  ;;  %v11461_v25 = vsub.f32 %v5058_v28, %v11438_v38  ;;  %vm5839_vm4 = vcmp.eq.s32.totalorder %v5837_v14, 0  ;;  %vm5842_vm3 = vcmp.eq.s32.totalorder %v5837_v14, 2  ;;  %vm5838_vm5 = vcmp.lt.s32.totalorder %v5837_v14, 2  ;;  %v7084_v14 = vld [vmem:[%s12233_s5 + $0x18] sm:$0xff] }
  0xed   :  { %9697 = vmatpush3.msra.mxu1 %v4611_v50  ;;  %9691 = vmatmul.mubr.f32.vlgmr.msra.gmra.mxu0 %v4550_v59  ;;  %v11499_v12 = vsub.f32 %v5052_v49, %v11479_v5  ;;  %v5841_v16 = vsel %vm5839_vm4, %v11456_v48, %v5737_v41  ;;  %v5844_v46 = vsel %vm5842_vm3, %v5740_v0, %v11467_v10  ;;  %v5734_v59 = vand.u32 3, %v5733_v1 }
  0xee   :  { %9685 = vmatprep.mubr.f32.mxu1 %v11233_v43  ;;  %9693 = vmatprep.mubr.f32.mxu0 %v4560_v36  ;;  %v8953_v43 = vld [vmem:[%s12231_s1 + $0x78] sm:$0xff]  ;;  %v5845_v57 = vsel %vm5838_vm5, %v5841_v16, %v5844_v46  ;;  %v7082_v46 = vld [vmem:[%s12233_s5 + $0x8] sm:$0xff] }
  0xef   :  { %9705 = vmatpush3.msra.mxu0 %v11333_v29  ;;  %9712 = vmatprep.subr.mxu1 %v11315_v24  ;;  %v5055_v6 = vsel %vm252_vm0, %v8953_v43, 0  ;;  %v5148_v18 = vand.u32 4294901760, %v11499_v12  ;;  %v5846_v2 = vsel %vm5732_vm6, nan, %v5845_v57  ;;  %vm5736_vm7 = vcmp.eq.s32.totalorder %v5734_v59, 0 }
  0xf0   :  { %9686 = vmatmul.mubr.f32.gmra.mxu1 %v11253_v27  ;;  %9720 = vmatprep.subr.mxu0 %v11353_v47  ;;  %v11483_v27 = vand.u32 4294901760, %v11461_v25  ;;  %v11493_v29 = vand.u32 4294901760, %v5055_v6  ;;  %v5870_v63 = vsel %vm265_vm9, %v5846_v2, 0  ;;  %vm5739_vm8 = vcmp.eq.s32.totalorder %v5734_v59, 2 }
  0xf1   :  { %9694 = vmatmul.mubr.f32.gmra.mxu0 %v4570_v4  ;;  %9698 = vmatprep.mubr.f32.mxu1 %v11327_v53  ;;  %v11558_v50 = vand.u32 4294901760, %v5870_v63  ;;  %vm5735_vm10 = vcmp.lt.s32.totalorder %v5734_v59, 2  ;;  %v5738_v49 = vsel %vm5736_vm7, %v11456_v48, %v5737_v41  ;;  %v5741_v43 = vsel %vm5739_vm8, %v5740_v0, %v11467_v10 }
  0xf2   :  { %9706 = vmatprep.mubr.f32.mxu0 %v11347_v17  ;;  %v5200_v51 = vsub.f32 %v11461_v25, %v11483_v27  ;;  %v11518_v31 = vsub.f32 %v5055_v6, %v11493_v29  ;;  %v7041_v6 = vld [vmem:[%s12232_s3] sm:$0xff]  ;;  %v5742_v0 = vsel %vm5735_vm10, %v5738_v49, %v5741_v43  ;;  %v7745_v43 = vld [vmem:[%s12234_s7 + $0x8] sm:$0xff] }
  0xf3   :  { %7047 = vperm.xlu1 %10144, %v7041_v6   ;;  %v5743_v16 = vsel %vm5732_vm6, nan, %v5742_v0  ;;  %v7746_v6 = vld [vmem:[%s12234_s7 + $0x10] sm:$0xff] }
  0xf4   :  { %9699 = vmatmul.mubr.f32.vlgmr.msra.gmra.mxu1 %v11342_v11  ;;  %v5201_v42 = vand.u32 4294901760, %v5200_v51  ;;  %v6460_v15 = vsel %vm265_vm9, %v5743_v16, 0  ;;  %vm10174_vm9 = vmmov 0  }
  0xf5   :  { %9713 = vmatpush3.msra.mxu1 %v11315_v24  ;;  %9707 = vmatmul.mubr.f32.vlgmr.msra.gmra.mxu0 %v11367_v55  ;;  %v5130_v55 = vand.u32 4294901760, %v5129_v40  ;;  %v11682_v57 = vand.u32 4294901760, %v6460_v15 }
  0xf6   :  { %9701 = vmatprep.mubr.f32.mxu1 %v11349_v34  ;;  %9709 = vmatprep.mubr.f32.mxu0 %v11375_v19  ;;  %v8970_v19 = vld [vmem:[%s12230_s2 + $0x80] sm:$0xff] }
  0xf7   :  { %9721 = vmatpush3.msra.mxu0 %v11353_v47  ;;  %9728 = vmatprep.subr.mxu1 %v11315_v24  ;;  %v5138_v47 = vand.u32 4294901760, %v11491_v26  ;;  %v5858_v8 = vsel %vm252_vm0, %v8970_v19, 0 }
  0xf8   :  { %9702 = vmatmul.mubr.f32.gmra.mxu1 %v11369_v20  ;;  %9736 = vmatprep.subr.mxu0 %v11438_v38  ;;  %v11570_v30 = vand.u32 4294901760, %v5858_v8 }
  0xf9   :  { %9710 = vmatmul.mubr.f32.gmra.mxu0 %v11398_v61  ;;  %9714 = vmatprep.mubr.f32.mxu1 %v4538_v35  ;;  %v5139_v17 = vsub.f32 %v11491_v26, %v5138_v47  ;;  %v5158_v35 = vand.u32 4294901760, %v11518_v31 }
  0xfa   :  { %9722 = vmatprep.mubr.f32.mxu0 %v11327_v53  ;;  %v11595_v21 = vsub.f32 %v5858_v8, %v11570_v30 }
  0xfb   :  { %v5140_v32 = vand.u32 4294901760, %v5139_v17  ;;  %v5159_v61 = vsub.f32 %v11518_v31, %v5158_v35  ;;  %v8967_v17 = vld [vmem:[%s12231_s1 + $0x88] sm:$0xff] }
  0xfc   :  { %9715 = vmatmul.mubr.f32.vlgmr.msra.gmra.mxu1 %v4548_v33  ;;  %v7044_v33 = vld [vmem:[%s12232_s3 + $0x18] sm:$0xff]  ;;  %v5940_v45 = vand.u32 4294901760, %v11595_v21 }
  0xfd   :  { %9729 = vmatpush3.msra.mxu1 %v11315_v24  ;;  %9723 = vmatmul.mubr.f32.vlgmr.msra.gmra.mxu0 %v11342_v11  ;;  %v5149_v24 = vsub.f32 %v11499_v12, %v5148_v18  ;;  %v5160_v44 = vand.u32 4294901760, %v5159_v61  ;;  %v7081_v61 = vld [vmem:[%s12233_s5] sm:$0xff] }
  0xfe   :  { %9717 = vmatprep.mubr.f32.mxu1 %v4558_v13  ;;  %9725 = vmatprep.mubr.f32.mxu0 %v11349_v34 }
  0xff   :  { %9737 = vmatpush3.msra.mxu0 %v11438_v38  ;;  %9744 = vmatprep.subr.mxu1 %v5201_v42  ;;  %v5150_v13 = vand.u32 4294901760, %v5149_v24 }
 0x100   :  { %9718 = vmatmul.mubr.f32.gmra.mxu1 %v4568_v37  ;;  %9752 = vmatprep.subr.mxu0 %v11461_v25  ;;  %v8971_v37 = vld [vmem:[%s12230_s2 + $0x88] sm:$0xff] }
 0x101   :  { %9726 = vmatmul.mubr.f32.gmra.mxu0 %v11369_v20  ;;  %9730 = vmatprep.mubr.f32.mxu1 %v11327_v53  ;;  %v8972_v53 = vld [vmem:[%s12230_s2 + $0x90] sm:$0xff]  ;;  %v5861_v9 = vsel %vm252_vm0, %v8971_v37, 0 }
 0x102   :  { %9738 = vmatprep.mubr.f32.mxu0 %v5130_v55  ;;  %7062 = vperm.xlu0 %10143, %v7044_v33   ;;  %v5864_v28 = vsel %vm252_vm0, %v8972_v53, 0  ;;  %v11591_v36 = vand.u32 4294901760, %v5861_v9  ;;  %v8969_v33 = vld [vmem:[%s12231_s1 + $0x98] sm:$0xff] }
 0x103   :  { %v11597_v22 = vand.u32 4294901760, %v5864_v28 }
 0x104   :  { %9731 = vmatmul.mubr.f32.vlgmr.msra.gmra.mxu1 %v11342_v11  ;;  %v11576_v11 = vsub.f32 %v5870_v63, %v11558_v50  ;;  %v11607_v7 = vsub.f32 %v5861_v9, %v11591_v36  ;;  %v6451_v63 = vsel %vm252_vm0, %v8967_v17, 0 }
 0x105   :  { %9745 = vmatpush3.msra.mxu1 %v5201_v42  ;;  %9739 = vmatmul.mubr.f32.vlgmr.msra.gmra.mxu0 %v5140_v32  ;;  %v11615_v58 = vsub.f32 %v5864_v28, %v11597_v22 }
 0x106   :  { %9733 = vmatprep.mubr.f32.mxu1 %v11349_v34  ;;  %9741 = vmatprep.mubr.f32.mxu0 %v5150_v13  ;;  %v7043_v34 = vld [vmem:[%s12232_s3 + $0x10] sm:$0xff]  ;;  %v11601_v3 = vand.u32 4294901760, %v11576_v11  ;;  %v5950_v48 = vand.u32 4294901760, %v11607_v7  ;;  %v11714_v13 = vand.u32 4294901760, %v6451_v63 }
 0x107   :  { %9753 = vmatpush3.msra.mxu0 %v11461_v25  ;;  %9760 = vmatprep.subr.mxu1 %v11438_v38  ;;  %v5960_v41 = vand.u32 4294901760, %v11615_v58 }
 0x108   :  { %9734 = vmatmul.mubr.f32.gmra.mxu1 %v11369_v20  ;;  %9768 = vmatprep.subr.mxu0 %v11483_v27  ;;  %v5867_v20 = vsel %vm252_vm0, %v8973_v39, 0  ;;  %v6012_v25 = vsub.f32 %v11576_v11, %v11601_v3 }
 0x109   :  { %9742 = vmatmul.mubr.f32.gmra.mxu0 %v5160_v44  ;;  %9746 = vmatprep.mubr.f32.mxu1 %v11453_v56  ;;  %v11609_v4 = vand.u32 4294901760, %v5867_v20 }
 0x10a   :  { %9754 = vmatprep.mubr.f32.mxu0 %v11477_v60  ;;  %7057 = vperm.xlu0 %10143, %v7043_v34   ;;  %v6013_v51 = vand.u32 4294901760, %v6012_v25  ;;  %v5951_v60 = vsub.f32 %v11607_v7, %v5950_v48 }
 0x10b   :  { %v11640_v10 = vsub.f32 %v5867_v20, %v11609_v4 }
 0x10c   :  { %9747 = vmatmul.mubr.f32.vlgmr.msra.gmra.mxu1 %v11473_v62  ;;  %v5952_v40 = vand.u32 4294901760, %v5951_v60 }
 0x10d   :  { %9761 = vmatpush3.msra.mxu1 %v11438_v38  ;;  %9755 = vmatmul.mubr.f32.vlgmr.msra.gmra.mxu0 %v11491_v26 }
 0x10e   :  { %9749 = vmatprep.mubr.f32.mxu1 %v11479_v5  ;;  %9757 = vmatprep.mubr.f32.mxu0 %v11499_v12  ;;  %v8966_v12 = vld [vmem:[%s12231_s1 + $0x80] sm:$0xff] }
 0x10f   :  { %9769 = vmatpush3.msra.mxu0 %v11483_v27  ;;  %9776 = vmatprep.subr.mxu1 %v11438_v38  ;;  %v5941_v27 = vsub.f32 %v11595_v21, %v5940_v45  ;;  %v6448_v42 = vsel %vm252_vm0, %v8966_v12, 0 }
 0x110   :  { %9750 = vmatmul.mubr.f32.gmra.mxu1 %v11493_v29  ;;  %9784 = vmatprep.subr.mxu0 %v11558_v50  ;;  %v11693_v24 = vand.u32 4294901760, %v6448_v42 }
 0x111   :  { %9758 = vmatmul.mubr.f32.gmra.mxu0 %v11518_v31  ;;  %9762 = vmatprep.mubr.f32.mxu1 %v5128_v23  ;;  %v5970_v23 = vand.u32 4294901760, %v11640_v10  ;;  %v5942_v26 = vand.u32 4294901760, %v5941_v27 }
 0x112   :  { %9770 = vmatprep.mubr.f32.mxu0 %v11453_v56  ;;  %7102 = vperm.xlu0 %10143, %v7084_v14   ;;  %v11718_v8 = vsub.f32 %v6448_v42, %v11693_v24 }
 0x113   :  { %v5971_v31 = vsub.f32 %v11640_v10, %v5970_v23 }
 0x114   :  { %9763 = vmatmul.mubr.f32.vlgmr.msra.gmra.mxu1 %v5138_v47  ;;  %v7083_v47 = vld [vmem:[%s12233_s5 + $0x10] sm:$0xff]  ;;  %v6530_v34 = vand.u32 4294901760, %v11718_v8 }
 0x115   :  { %9777 = vmatpush3.msra.mxu1 %v11438_v38  ;;  %9771 = vmatmul.mubr.f32.vlgmr.msra.gmra.mxu0 %v11473_v62  ;;  %v5961_v38 = vsub.f32 %v11615_v58, %v5960_v41  ;;  %v5972_v2 = vand.u32 4294901760, %v5971_v31 }
 0x116   :  { %9765 = vmatprep.mubr.f32.mxu1 %v5148_v18  ;;  %9773 = vmatprep.mubr.f32.mxu0 %v11479_v5 }
 0x117   :  { %9785 = vmatpush3.msra.mxu0 %v11558_v50  ;;  %9792 = vmatprep.subr.mxu1 %v6013_v51  ;;  %v5962_v18 = vand.u32 4294901760, %v5961_v38 }
 0x118   :  { %9766 = vmatmul.mubr.f32.gmra.mxu1 %v5158_v35  ;;  %9800 = vmatprep.subr.mxu0 %v11576_v11  ;;  %v8968_v35 = vld [vmem:[%s12231_s1 + $0x90] sm:$0xff] }
 0x119   :  { %9774 = vmatmul.mubr.f32.gmra.mxu0 %v11493_v29  ;;  %9778 = vmatprep.mubr.f32.mxu1 %v11453_v56  ;;  %v6454_v19 = vsel %vm252_vm0, %v8968_v35, 0 }
 0x11a   :  { %9786 = vmatprep.mubr.f32.mxu0 %v5942_v26  ;;  %7092 = vperm.xlu0 %10143, %v7082_v46   ;;  %v11720_v37 = vand.u32 4294901760, %v6454_v19  ;;  %v6531_v26 = vsub.f32 %v11718_v8, %v6530_v34 }
 0x11b   :  { %7097 = vperm.xlu1 %10144, %v7083_v47  }
 0x11c   :  { %9779 = vmatmul.mubr.f32.vlgmr.msra.gmra.mxu1 %v11473_v62  ;;  %v9404_v56 = vpop.f32.mrf.mxu0  ;;  %v11699_v62 = vsub.f32 %v6460_v15, %v11682_v57  ;;  %v11738_v59 = vsub.f32 %v6454_v19, %v11720_v37 }
 0x11d   :  { %9793 = vmatpush3.msra.mxu1 %v6013_v51  ;;  %9787 = vmatmul.mubr.f32.vlgmr.msra.gmra.mxu0 %v5952_v40 }
 0x11e   :  { %9781 = vmatprep.mubr.f32.mxu1 %v11479_v5  ;;  %v341_v55 = vpop.f32.mrf.mxu0  ;;  %9789 = vmatprep.mubr.f32.mxu0 %v5962_v18  ;;  %v7747_v5 = vld [vmem:[%s12234_s7 + $0x18] sm:$0xff]  ;;  %v11724_v53 = vand.u32 4294901760, %v11699_v62  ;;  %v6550_v38 = vand.u32 4294901760, %v11738_v59 }
 0x11f   :  { %9801 = vmatpush3.msra.mxu0 %v11576_v11  ;;  %9808 = vmatprep.subr.mxu1 %v11558_v50  ;;  %v11730_v11 = vsub.f32 %v6451_v63, %v11714_v13 }
 0x120   :  { %9782 = vmatmul.mubr.f32.gmra.mxu1 %v11493_v29  ;;  %v9407_v32 = vpop.f32.mrf.mxu0  ;;  %9816 = vmatprep.subr.mxu0 %v11601_v3  ;;  %v6457_v29 = vsel %vm252_vm0, %v8969_v33, 0  ;;  %v6602_v49 = vsub.f32 %v11699_v62, %v11724_v53  ;;  %vm7105_vm0 = vcmask 261120  }
 0x121   :  { %9790 = vmatmul.mubr.f32.gmra.mxu0 %v5972_v2  ;;  %9794 = vmatprep.mubr.f32.mxu1 %v11570_v30  ;;  %v11732_v28 = vand.u32 4294901760, %v6457_v29  ;;  %v6540_v51 = vand.u32 4294901760, %v11730_v11  ;;  %v7744_v2 = vld [vmem:[%s12234_s7] sm:$0xff] }
 0x122   :  { %v361_v52 = vpop.f32.mrf.mxu0  ;;  %9802 = vmatprep.mubr.f32.mxu0 %v11595_v21  ;;  %7765 = vperm.xlu0 %10143, %v7747_v5   ;;  %v6603_v21 = vand.u32 4294901760, %v6602_v49 }
 0x123   :  { %7087 = vperm.xlu1 %10144, %v7081_v61   ;;  %v11757_v60 = vsub.f32 %v6457_v29, %v11732_v28  ;;  %v6541_v18 = vsub.f32 %v11730_v11, %v6540_v51 }
 0x124   :  { %v9412_v1 = vpop.f32.mrf.mxu1  ;;  %9795 = vmatmul.mubr.f32.vlgmr.msra.gmra.mxu1 %v11591_v36 }
 0x125   :  { %v454_v44 = vadd.f32 %v9412_v1, %v9404_v56  ;;  %9809 = vmatpush3.msra.mxu1 %v11558_v50  ;;  %v9420_v9 = vpop.f32.mrf.mxu0  ;;  %9803 = vmatmul.mubr.f32.vlgmr.msra.gmra.mxu0 %v11607_v7  ;;  %v6560_v42 = vand.u32 4294901760, %v11757_v60  ;;  %v6532_v7 = vand.u32 4294901760, %v6531_v26  ;;  %v6542_v19 = vand.u32 4294901760, %v6541_v18 }
 0x126   :  { %v447_v39 = vpop.f32.mrf.mxu1  ;;  %9797 = vmatprep.mubr.f32.mxu1 %v11597_v22  ;;  %9805 = vmatprep.mubr.f32.mxu0 %v11615_v58  ;;  %v8403_v58 = vld [vmem:[%s12235_s9] sm:$0x3] }
 0x127   :  { %v448_v54 = vadd.f32 %v447_v39, %v341_v55  ;;  %v547_v20 = vadd.f32 %v9420_v9, %v454_v44  ;;  %v539_v25 = vpop.f32.mrf.mxu0  ;;  %9817 = vmatpush3.msra.mxu0 %v11601_v3  ;;  %9824 = vmatprep.subr.mxu1 %v11558_v50  ;;  %v6561_v33 = vsub.f32 %v11757_v60, %v6560_v42 }
 0x128   :  { %v9415_v14 = vpop.f32.mrf.mxu1  ;;  %9798 = vmatmul.mubr.f32.gmra.mxu1 %v11609_v4  ;;  %9832 = vmatprep.subr.mxu0 %v11682_v57 }
 0x129   :  { %v466_v27 = vadd.f32 %v9415_v14, %v9407_v32  ;;  %v540_v3 = vadd.f32 %v539_v25, %v448_v54  ;;  %v9423_v0 = vpop.f32.mrf.mxu0  ;;  %9806 = vmatmul.mubr.f32.gmra.mxu0 %v11640_v10  ;;  %9810 = vmatprep.mubr.f32.mxu1 %v5940_v45  ;;  %v6562_v1 = vand.u32 4294901760, %v6561_v33 }
 0x12a   :  { %v459_v16 = vpop.f32.mrf.mxu1  ;;  %9818 = vmatprep.mubr.f32.mxu0 %v11570_v30  ;;  %7755 = vperm.xlu0 %10143, %v7745_v43  }
 0x12b   :  { %v460_v46 = vadd.f32 %v459_v16, %v361_v52  ;;  %v561_v15 = vadd.f32 %v9423_v0, %v466_v27  ;;  %v553_v12 = vpop.f32.mrf.mxu0  ;;  %7760 = vperm.xlu1 %10144, %v7746_v6  }
 0x12c   :  { %v9428_v45 = vpop.f32.mrf.mxu1  ;;  %9811 = vmatmul.mubr.f32.vlgmr.msra.gmra.mxu1 %v5950_v48 }
 0x12d   :  { %v554_v47 = vadd.f32 %v553_v12, %v460_v46  ;;  %v643_v40 = vadd.f32 %v9428_v45, %v547_v20  ;;  %9825 = vmatpush3.msra.mxu1 %v11558_v50  ;;  %v9436_v31 = vpop.f32.mrf.mxu0  ;;  %9819 = vmatmul.mubr.f32.vlgmr.msra.gmra.mxu0 %v11591_v36  ;;  %v6551_v50 = vsub.f32 %v11738_v59, %v6550_v38 }
 0x12e   :  { %v634_v17 = vpop.f32.mrf.mxu1  ;;  %9813 = vmatprep.mubr.f32.mxu1 %v5960_v41  ;;  %9821 = vmatprep.mubr.f32.mxu0 %v11597_v22 }
 0x12f   :  { %v11778_v48 = vadd.f32 %v634_v17, %v540_v3  ;;  %v739_v56 = vadd.f32 %v9436_v31, %v643_v40  ;;  %v11780_v35 = vpop.f32.mrf.mxu0  ;;  %9833 = vmatpush3.msra.mxu0 %v11682_v57  ;;  %9840 = vmatprep.subr.mxu1 %v6603_v21  ;;  %v6552_v10 = vand.u32 4294901760, %v6551_v50 }
 0x130   :  { %v9431_v41 = vpop.f32.mrf.mxu1  ;;  %9814 = vmatmul.mubr.f32.gmra.mxu1 %v5970_v23  ;;  %9848 = vmatprep.subr.mxu0 %v11699_v62 }
 0x131   :  { %v659_v55 = vadd.f32 %v9431_v41, %v561_v15  ;;  %v9439_v63 = vpop.f32.mrf.mxu0  ;;  %9822 = vmatmul.mubr.f32.gmra.mxu0 %v11609_v4  ;;  %9826 = vmatprep.mubr.f32.mxu1 %v11570_v30 }
 0x132   :  { %v650_v5 = vpop.f32.mrf.mxu1  ;;  %9834 = vmatprep.mubr.f32.mxu0 %v6532_v7  ;;  %8406 = vperm.xlu0 %10143, %v8403_v58  }
 0x133   :  { %v11797_v23 = vadd.f32 %v650_v5, %v554_v47  ;;  %v751_v32 = vadd.f32 %v9439_v63, %v659_v55  ;;  %v11799_v61 = vpop.f32.mrf.mxu0  ;;  %7750 = vperm.xlu1 %10144, %v7744_v2  }
 0x134   :  { %v9444_v52 = vpop.f32.mrf.mxu1  ;;  %9827 = vmatmul.mubr.f32.vlgmr.msra.gmra.mxu1 %v11591_v36 }
 0x135   :  { %v829_v29 = vadd.f32 %v9444_v52, %v739_v56  ;;  %9841 = vmatpush3.msra.mxu1 %v6603_v21  ;;  %v9452_v30 = vpop.f32.mrf.mxu0  ;;  %9835 = vmatmul.mubr.f32.vlgmr.msra.gmra.mxu0 %v6542_v19 }
 0x136   :  { %v11802_v44 = vpop.f32.mrf.mxu1  ;;  %9829 = vmatprep.mubr.f32.mxu1 %v11597_v22  ;;  %9837 = vmatprep.mubr.f32.mxu0 %v6552_v10 }
 0x137   :  { %v942_v9 = vadd.f32 %v9452_v30, %v829_v29  ;;  %v11805_v39 = vpop.f32.mrf.mxu0  ;;  %9849 = vmatpush3.msra.mxu0 %v11699_v62  ;;  %9856 = vmatprep.subr.mxu1 %v11682_v57 }
 0x138   :  { %v9447_v54 = vpop.f32.mrf.mxu1  ;;  %9830 = vmatmul.mubr.f32.gmra.mxu1 %v11609_v4  ;;  %9864 = vmatprep.subr.mxu0 %v11724_v53 }
 0x139   :  { %v841_v36 = vadd.f32 %v9447_v54, %v751_v32  ;;  %v9455_v20 = vpop.f32.mrf.mxu0  ;;  %9838 = vmatmul.mubr.f32.gmra.mxu0 %v6562_v1  ;;  %9842 = vmatprep.mubr.f32.mxu1 %v11693_v24 }
 0x13a   :  { %v11812_v25 = vpop.f32.mrf.mxu1  ;;  %9850 = vmatprep.mubr.f32.mxu0 %v11718_v8 }
 0x13b   :  { %v962_v22 = vadd.f32 %v9455_v20, %v841_v36  ;;  %v11815_v49 = vpop.f32.mrf.mxu0 }
 0x13c   :  { %v9460_v62 = vpop.f32.mrf.mxu1  ;;  %9843 = vmatmul.mubr.f32.vlgmr.msra.gmra.mxu1 %v11714_v13 }
 0x13d   :  { %v1044_v43 = vadd.f32 %v9460_v62, %v942_v9  ;;  %9857 = vmatpush3.msra.mxu1 %v11682_v57  ;;  %v9468_v4 = vpop.f32.mrf.mxu0  ;;  %9851 = vmatmul.mubr.f32.vlgmr.msra.gmra.mxu0 %v11730_v11 }
 0x13e   :  { %v11820_v14 = vpop.f32.mrf.mxu1  ;;  %9845 = vmatprep.mubr.f32.mxu1 %v11720_v37  ;;  %9853 = vmatprep.mubr.f32.mxu0 %v11738_v59 }
 0x13f   :  { %v1137_v6 = vadd.f32 %v9468_v4, %v1044_v43  ;;  %v11824_v27 = vpop.f32.mrf.mxu0  ;;  %9865 = vmatpush3.msra.mxu0 %v11724_v53  ;;  %9872 = vmatprep.subr.mxu1 %v11682_v57 }
 0x140   :  { %v9463_v3 = vpop.f32.mrf.mxu1  ;;  %9846 = vmatmul.mubr.f32.gmra.mxu1 %v11732_v28 }
 0x141   :  { %v1056_v0 = vadd.f32 %v9463_v3, %v962_v22  ;;  %v9471_v16 = vpop.f32.mrf.mxu0  ;;  %9854 = vmatmul.mubr.f32.gmra.mxu0 %v11757_v60  ;;  %9858 = vmatprep.mubr.f32.mxu1 %v6530_v34 }
 0x142   :  { %v11832_v26 = vpop.f32.mrf.mxu1  ;;  %9866 = vmatprep.mubr.f32.mxu0 %v11693_v24 }
 0x143   :  { %v1151_v46 = vadd.f32 %v9471_v16, %v1056_v0  ;;  %v11835_v15 = vpop.f32.mrf.mxu0 }
 0x144   :  { %v9476_v53 = vpop.f32.mrf.mxu1  ;;  %9859 = vmatmul.mubr.f32.vlgmr.msra.gmra.mxu1 %v6540_v51 }
 0x145   :  { %v1233_v12 = vadd.f32 %v9476_v53, %v1137_v6  ;;  %9873 = vmatpush3.msra.mxu1 %v11682_v57  ;;  %v9484_v21 = vpop.f32.mrf.mxu0  ;;  %9867 = vmatmul.mubr.f32.vlgmr.msra.gmra.mxu0 %v11714_v13 }
 0x146   :  { %v11841_v45 = vpop.f32.mrf.mxu1  ;;  %9861 = vmatprep.mubr.f32.mxu1 %v6550_v38  ;;  %9869 = vmatprep.mubr.f32.mxu0 %v11720_v37 }
 0x147   :  { %v1329_v8 = vadd.f32 %v9484_v21, %v1233_v12  ;;  %v11846_v34 = vpop.f32.mrf.mxu0 }
 0x148   :  { %v9479_v47 = vpop.f32.mrf.mxu1  ;;  %9862 = vmatmul.mubr.f32.gmra.mxu1 %v6560_v42 }
 0x149   :  { %v1249_v11 = vadd.f32 %v9479_v47, %v1151_v46  ;;  %v9487_v51 = vpop.f32.mrf.mxu0  ;;  %9870 = vmatmul.mubr.f32.gmra.mxu0 %v11732_v28  ;;  %9874 = vmatprep.mubr.f32.mxu1 %v11693_v24 }
 0x14a   :  { %v11852_v57 = vpop.f32.mrf.mxu1 }
 0x14b   :  { %v1341_v40 = vadd.f32 %v9487_v51, %v1249_v11  ;;  %v11854_v59 = vpop.f32.mrf.mxu0 }
 0x14c   :  { %v9492_v38 = vpop.f32.mrf.mxu1  ;;  %9875 = vmatmul.mubr.f32.vlgmr.msra.gmra.mxu1 %v11714_v13 }
 0x14d   :  { %v11857_v31 = vadd.f32 %v9492_v38, %v1329_v8  ;;  %v9500_v18 = vpop.f32.mrf.mxu0  ;;  %9877 = vmatprep.mubr.f32.mxu1 %v11720_v37 }
 0x14e   :  { %v11860_v60 = vpop.f32.mrf.mxu1 }
 0x14f   :  { %v1738_v42 = vpop.f32.mrf.mxu0 }
 0x150   :  { %v9495_v17 = vpop.f32.mrf.mxu1  ;;  %9878 = vmatmul.mubr.f32.gmra.mxu1 %v11732_v28 }
 0x151   :  { %v11863_v24 = vadd.f32 %v9495_v17, %v1341_v40  ;;  %v9503_v7 = vpop.f32.mrf.mxu0 }
 0x152   :  { %v11865_v50 = vpop.f32.mrf.mxu1 }
 0x153   :  { %v1758_v56 = vpop.f32.mrf.mxu0 }
 0x154   :  { %v9508_v58 = vpop.f32.mrf.mxu1 }
 0x155   :  { %v1851_v41 = vadd.f32 %v9508_v58, %v9500_v18  ;;  %v9516_v13 = vpop.f32.mrf.mxu0 }
 0x156   :  { %v1844_v2 = vpop.f32.mrf.mxu1 }
 0x157   :  { %v1944_v55 = vadd.f32 %v9516_v13, %v1851_v41  ;;  %v1936_v63 = vpop.f32.mrf.mxu0  ;;  %v1845_v1 = vadd.f32 %v1844_v2, %v1738_v42  ;;  %v733_v42 = vadd.f32 %v11780_v35, %v11778_v48 }
 0x158   :  { %v9511_v19 = vpop.f32.mrf.mxu1 }
 0x159   :  { %v1863_v37 = vadd.f32 %v9511_v19, %v9503_v7  ;;  %v9519_v33 = vpop.f32.mrf.mxu0  ;;  %v1937_v4 = vadd.f32 %v1936_v63, %v1845_v1  ;;  %v823_v13 = vadd.f32 %v11802_v44, %v733_v42 }
 0x15a   :  { %v1856_v5 = vpop.f32.mrf.mxu1 }
 0x15b   :  { %v1958_v10 = vadd.f32 %v9519_v33, %v1863_v37  ;;  %v1950_v32 = vpop.f32.mrf.mxu0  ;;  %v1857_v20 = vadd.f32 %v1856_v5, %v1758_v56  ;;  %v745_v33 = vadd.f32 %v11799_v61, %v11797_v23  ;;  %v932_v48 = vadd.f32 %v11805_v39, %v823_v13 }
 0x15c   :  { %v9524_v52 = vpop.f32.mrf.mxu1 }
 0x15d   :  { %v2040_v28 = vadd.f32 %v9524_v52, %v1944_v55  ;;  %v9532_v29 = vpop.f32.mrf.mxu0  ;;  %v1951_v16 = vadd.f32 %v1950_v32, %v1857_v20  ;;  %v835_v52 = vadd.f32 %v11812_v25, %v745_v33 }
 0x15e   :  { %v2031_v30 = vpop.f32.mrf.mxu1 }
 0x15f   :  { %v2136_v9 = vadd.f32 %v9532_v29, %v2040_v28  ;;  %v2129_v54 = vpop.f32.mrf.mxu0  ;;  %v2032_v46 = vadd.f32 %v2031_v30, %v1937_v4  ;;  %v952_v23 = vadd.f32 %v11815_v49, %v835_v52 }
 0x160   :  { %v9527_v36 = vpop.f32.mrf.mxu1 }
 0x161   :  { %v2056_v22 = vadd.f32 %v9527_v36, %v1958_v10  ;;  %v9535_v62 = vpop.f32.mrf.mxu0  ;;  %v2130_v40 = vadd.f32 %v2129_v54, %v2032_v46 }
 0x162   :  { %v2047_v43 = vpop.f32.mrf.mxu1 }
 0x163   :  { %v2148_v6 = vadd.f32 %v9535_v62, %v2056_v22  ;;  %v2141_v3 = vpop.f32.mrf.mxu0  ;;  %v2048_v8 = vadd.f32 %v2047_v43, %v1951_v16 }
 0x164   :  { %v9540_v0 = vpop.f32.mrf.mxu1 }
 0x165   :  { %v2226_v53 = vadd.f32 %v9540_v0, %v2136_v9  ;;  %v9548_v12 = vpop.f32.mrf.mxu0  ;;  %v2142_v7 = vadd.f32 %v2141_v3, %v2048_v8  ;;  %v1038_v9 = vadd.f32 %v11820_v14, %v932_v48 }
 0x166   :  { %v2219_v21 = vpop.f32.mrf.mxu1 }
 0x167   :  { %v2339_v47 = vadd.f32 %v9548_v12, %v2226_v53  ;;  %v2328_v11 = vpop.f32.mrf.mxu0  ;;  %v2220_v56 = vadd.f32 %v2219_v21, %v2130_v40  ;;  %v1130_v25 = vadd.f32 %v11824_v27, %v1038_v9 }
 0x168   :  { %v9543_v51 = vpop.f32.mrf.mxu1 }
 0x169   :  { %v2238_v38 = vadd.f32 %v9543_v51, %v2148_v6  ;;  %v9551_v18 = vpop.f32.mrf.mxu0  ;;  %v2329_v5 = vadd.f32 %v2328_v11, %v2220_v56  ;;  %v1050_v6 = vadd.f32 %v11832_v26, %v952_v23  ;;  %v1225_v14 = vadd.f32 %v11841_v45, %v1130_v25 }
 0x16a   :  { %v2231_v17 = vpop.f32.mrf.mxu1 }
 0x16b   :  { %v2359_v58 = vadd.f32 %v9551_v18, %v2238_v38  ;;  %v2348_v41 = vpop.f32.mrf.mxu0  ;;  %v2232_v55 = vadd.f32 %v2231_v17, %v2142_v7  ;;  %v1144_v49 = vadd.f32 %v11835_v15, %v1050_v6  ;;  %v1323_v27 = vadd.f32 %v11846_v34, %v1225_v14 }
 0x16c   :  { %v9556_v2 = vpop.f32.mrf.mxu1 }
 0x16d   :  { %v2441_v63 = vadd.f32 %v9556_v2, %v2339_v47  ;;  %v9564_v19 = vpop.f32.mrf.mxu0  ;;  %v2349_v28 = vadd.f32 %v2348_v41, %v2232_v55  ;;  %v1241_v26 = vadd.f32 %v11852_v57, %v1144_v49  ;;  %v1413_v45 = vadd.f32 %v11860_v60, %v1323_v27 }
 0x16e   :  { %v2434_v37 = vpop.f32.mrf.mxu1 }
 0x16f   :  { %v2534_v10 = vadd.f32 %v9564_v19, %v2441_v63  ;;  %v2526_v32 = vpop.f32.mrf.mxu0  ;;  %v2435_v29 = vadd.f32 %v2434_v37, %v2329_v5  ;;  %v1335_v41 = vadd.f32 %v11854_v59, %v1241_v26 }
 0x170   :  { %v9559_v35 = vpop.f32.mrf.mxu1 }
 0x171   :  { %v2453_v30 = vadd.f32 %v9559_v35, %v2359_v58  ;;  %v9567_v44 = vpop.f32.mrf.mxu0  ;;  %v2527_v61 = vadd.f32 %v2526_v32, %v2435_v29  ;;  %v1425_v57 = vadd.f32 %v11865_v50, %v1335_v41 }
 0x172   :  { %v2446_v1 = vpop.f32.mrf.mxu1 }
 0x173   :  { %v2447_v54 = vadd.f32 %v2446_v1, %v2349_v28  ;;  %v2548_v36 = vadd.f32 %v9567_v44, %v2453_v30  ;;  %v2540_v20 = vpop.f32.mrf.mxu0 }
 0x174   :  { %v9572_v22 = vpop.f32.mrf.mxu1 }
 0x175   :  { %v2541_v62 = vadd.f32 %v2540_v20, %v2447_v54  ;;  %v2630_v43 = vadd.f32 %v9572_v22, %v2534_v10  ;;  %v9580_v39 = vpop.f32.mrf.mxu0 }
 0x176   :  { %v2621_v4 = vpop.f32.mrf.mxu1 }
 0x177   :  { %v2622_v3 = vadd.f32 %v2621_v4, %v2527_v61  ;;  %v2726_v0 = vadd.f32 %v9580_v39, %v2630_v43  ;;  %v2719_v16 = vpop.f32.mrf.mxu0 }
 0x178   :  { %v9575_v46 = vpop.f32.mrf.mxu1 }
 0x179   :  { %v2646_v53 = vadd.f32 %v9575_v46, %v2548_v36  ;;  %v2720_v12 = vadd.f32 %v2719_v16, %v2622_v3  ;;  %v9583_v21 = vpop.f32.mrf.mxu0 }
 0x17a   :  { %v2637_v8 = vpop.f32.mrf.mxu1 }
 0x17b   :  { %v2638_v47 = vadd.f32 %v2637_v8, %v2541_v62  ;;  %v2738_v11 = vadd.f32 %v9583_v21, %v2646_v53  ;;  %v2731_v51 = vpop.f32.mrf.mxu0 }
 0x17c   :  { %v9588_v40 = vpop.f32.mrf.mxu1 }
 0x17d   :  { %v2732_v38 = vadd.f32 %v2731_v51, %v2638_v47  ;;  %v2816_v18 = vadd.f32 %v9588_v40, %v2726_v0  ;;  %v9596_v42 = vpop.f32.mrf.mxu0 }
 0x17e   :  { %v2809_v17 = vpop.f32.mrf.mxu1 }
 0x17f   :  { %v11884_v7 = vadd.f32 %v2816_v18, %v11857_v31  ;;  %v2810_v56 = vadd.f32 %v2809_v17, %v2720_v12  ;;  %v3140_v58 = vpop.f32.mrf.mxu0 }
 0x180   :  { %v9591_v15 = vpop.f32.mrf.mxu1 }
 0x181   :  { %v11887_v13 = vadd.f32 %v2810_v56, %v1413_v45  ;;  %v2828_v2 = vadd.f32 %v9591_v15, %v2738_v11  ;;  %v9599_v34 = vpop.f32.mrf.mxu0  ;;  %v7077_v11 = vld [vmem:[%s12236_s4] sm:$0xff] }
 0x182   :  { %v2821_v55 = vpop.f32.mrf.mxu1  ;;  %v7107_v26 = vsel %vm7105_vm0, %v7077_v11, 0 }
 0x183   :  { %v11891_v63 = vadd.f32 %v2828_v2, %v11863_v24  ;;  %v2822_v19 = vadd.f32 %v2821_v55, %v2732_v38  ;;  %v3160_v60 = vpop.f32.mrf.mxu0  ;;  %v11899_v18 = vand.u32 4294901760, %v7107_v26 }
 0x184   :  { %v9604_v37 = vpop.f32.mrf.mxu1 }
 0x185   :  { %v11893_v31 = vadd.f32 %v2822_v19, %v1425_v57  ;;  %v3253_v33 = vadd.f32 %v9604_v37, %v9596_v42  ;;  %v9612_v5 = vpop.f32.mrf.mxu0  ;;  %9902 = vmatprep.mubr.f32.mxu1 %v11899_v18 }
 0x186   :  { %v3246_v10 = vpop.f32.mrf.mxu1 }
 0x187   :  { %v3247_v32 = vadd.f32 %v3246_v10, %v3140_v58  ;;  %v3346_v59 = vadd.f32 %v9612_v5, %v3253_v33  ;;  %v3338_v48 = vpop.f32.mrf.mxu0  ;;  %v11902_v58 = vsub.f32 %v7107_v26, %v11899_v18 }
 0x188   :  { %v9607_v35 = vpop.f32.mrf.mxu1 }
 0x189   :  { %v3265_v52 = vadd.f32 %v9607_v35, %v9599_v34  ;;  %v3339_v28 = vadd.f32 %v3338_v48, %v3247_v32  ;;  %v9615_v29 = vpop.f32.mrf.mxu0  ;;  %v7189_v55 = vand.u32 4294901760, %v11902_v58 }
 0x18a   :  { %v3258_v30 = vpop.f32.mrf.mxu1 }
 0x18b   :  { %v3259_v50 = vadd.f32 %v3258_v30, %v3160_v60  ;;  %v3360_v44 = vadd.f32 %v9615_v29, %v3265_v52  ;;  %v3352_v24 = vpop.f32.mrf.mxu0  ;;  %v7190_v33 = vsub.f32 %v11902_v58, %v7189_v55 }
 0x18c   :  { %v9620_v1 = vpop.f32.mrf.mxu1 }
 0x18d   :  { %v3353_v9 = vadd.f32 %v3352_v24, %v3259_v50  ;;  %v3442_v54 = vadd.f32 %v9620_v1, %v3346_v59  ;;  %v9628_v36 = vpop.f32.mrf.mxu0  ;;  %v7191_v48 = vand.u32 4294901760, %v7190_v33 }
 0x18e   :  { %v3433_v20 = vpop.f32.mrf.mxu1 }
 0x18f   :  { %v3434_v22 = vadd.f32 %v3433_v20, %v3339_v28  ;;  %v3538_v23 = vadd.f32 %v9628_v36, %v3442_v54  ;;  %v3531_v61 = vpop.f32.mrf.mxu0  ;;  %9888 = vmatprep.mubr.f32.mxu0 %v7191_v48 }
 0x190   :  { %v9623_v62 = vpop.f32.mrf.mxu1 }
 0x191   :  { %v3458_v43 = vadd.f32 %v9623_v62, %v3360_v44  ;;  %v3532_v39 = vadd.f32 %v3531_v61, %v3434_v22  ;;  %v9631_v4 = vpop.f32.mrf.mxu0 }
 0x192   :  { %v3449_v25 = vpop.f32.mrf.mxu1 }
 0x193   :  { %v3450_v6 = vadd.f32 %v3449_v25, %v3353_v9  ;;  %v3550_v3 = vadd.f32 %v9631_v4, %v3458_v43  ;;  %v3543_v0 = vpop.f32.mrf.mxu0 }
 0x194   :  { %v9636_v16 = vpop.f32.mrf.mxu1 }
 0x195   :  { %v3544_v46 = vadd.f32 %v3543_v0, %v3450_v6  ;;  %v3628_v14 = vadd.f32 %v9636_v16, %v3538_v23  ;;  %v9644_v53 = vpop.f32.mrf.mxu0 }
 0x196   :  { %v3621_v12 = vpop.f32.mrf.mxu1 }
 0x197   :  { %v3622_v21 = vadd.f32 %v3621_v12, %v3532_v39  ;;  %v3741_v8 = vadd.f32 %v9644_v53, %v3628_v14  ;;  %v3730_v49 = vpop.f32.mrf.mxu0 }
 0x198   :  { %v9639_v47 = vpop.f32.mrf.mxu1 }
 0x199   :  { %v3640_v51 = vadd.f32 %v9639_v47, %v3550_v3  ;;  %v3731_v40 = vadd.f32 %v3730_v49, %v3622_v21  ;;  %v9647_v27 = vpop.f32.mrf.mxu0 }
 0x19a   :  { %v3633_v38 = vpop.f32.mrf.mxu1 }
 0x19b   :  { %v3634_v42 = vadd.f32 %v3633_v38, %v3544_v46  ;;  %v3761_v17 = vadd.f32 %v9647_v27, %v3640_v51  ;;  %v3750_v45 = vpop.f32.mrf.mxu0 }
 0x19c   :  { %v9652_v56 = vpop.f32.mrf.mxu1 }
 0x19d   :  { %v3751_v15 = vadd.f32 %v3750_v45, %v3634_v42  ;;  %v3843_v41 = vadd.f32 %v9652_v56, %v3741_v8  ;;  %v9660_v2 = vpop.f32.mrf.mxu0 }
 0x19e   :  { %v3836_v34 = vpop.f32.mrf.mxu1 }
 0x19f   :  { %v3837_v57 = vadd.f32 %v3836_v34, %v3731_v40  ;;  %v3936_v19 = vadd.f32 %v9660_v2, %v3843_v41  ;;  %v3928_v60 = vpop.f32.mrf.mxu0 }
 0x1a0   :  { %v9655_v37 = vpop.f32.mrf.mxu1 }
 0x1a1   :  { %v3855_v5 = vadd.f32 %v9655_v37, %v3761_v17  ;;  %v3929_v10 = vadd.f32 %v3928_v60, %v3837_v57  ;;  %v9663_v32 = vpop.f32.mrf.mxu0 }
 0x1a2   :  { %v3848_v59 = vpop.f32.mrf.mxu1 }
 0x1a3   :  { %v3849_v35 = vadd.f32 %v3848_v59, %v3751_v15  ;;  %v3950_v52 = vadd.f32 %v9663_v32, %v3855_v5  ;;  %v3942_v28 = vpop.f32.mrf.mxu0 }
 0x1a4   :  { %v9668_v29 = vpop.f32.mrf.mxu1 }
 0x1a5   :  { %v3943_v30 = vadd.f32 %v3942_v28, %v3849_v35  ;;  %v4032_v50 = vadd.f32 %v9668_v29, %v3936_v19  ;;  %v9676_v44 = vpop.f32.mrf.mxu0 }
 0x1a6   :  { %v4023_v24 = vpop.f32.mrf.mxu1 }
 0x1a7   :  { %v4024_v1 = vadd.f32 %v4023_v24, %v3929_v10  ;;  %v4128_v9 = vadd.f32 %v9676_v44, %v4032_v50  ;;  %v4121_v54 = vpop.f32.mrf.mxu0 }
 0x1a8   :  { %v9671_v36 = vpop.f32.mrf.mxu1 }
 0x1a9   :  { %v4048_v20 = vadd.f32 %v9671_v36, %v3950_v52  ;;  %v4122_v22 = vadd.f32 %v4121_v54, %v4024_v1  ;;  %v9679_v23 = vpop.f32.mrf.mxu0 }
 0x1aa   :  { %v4039_v61 = vpop.f32.mrf.mxu1 }
 0x1ab   :  { %v4040_v62 = vadd.f32 %v4039_v61, %v3943_v30  ;;  %v4140_v43 = vadd.f32 %v9679_v23, %v4048_v20  ;;  %v4133_v39 = vpop.f32.mrf.mxu0 }
 0x1ac   :  { %v9684_v4 = vpop.f32.mrf.mxu1 }
 0x1ad   :  { %v4134_v25 = vadd.f32 %v4133_v39, %v4040_v62  ;;  %v4218_v6 = vadd.f32 %v9684_v4, %v4128_v9  ;;  %v9692_v3 = vpop.f32.mrf.mxu0 }
 0x1ae   :  { %v4211_v0 = vpop.f32.mrf.mxu1 }
 0x1af   :  { %v11910_v16 = vadd.f32 %v4218_v6, %v11884_v7  ;;  %v4212_v46 = vadd.f32 %v4211_v0, %v4122_v22  ;;  %v4542_v14 = vpop.f32.mrf.mxu0 }
 0x1b0   :  { %v9687_v53 = vpop.f32.mrf.mxu1 }
 0x1b1   :  { %v11913_v12 = vadd.f32 %v4212_v46, %v11887_v13  ;;  %v4230_v21 = vadd.f32 %v9687_v53, %v4140_v43  ;;  %v9695_v8 = vpop.f32.mrf.mxu0 }
 0x1b2   :  { %v4223_v49 = vpop.f32.mrf.mxu1 }
 0x1b3   :  { %v11916_v47 = vadd.f32 %v4230_v21, %v11891_v63  ;;  %v4224_v11 = vadd.f32 %v4223_v49, %v4134_v25  ;;  %v4562_v51 = vpop.f32.mrf.mxu0 }
 0x1b4   :  { %v9700_v40 = vpop.f32.mrf.mxu1 }
 0x1b5   :  { %v11919_v27 = vadd.f32 %v4224_v11, %v11893_v31  ;;  %v4655_v7 = vadd.f32 %v9700_v40, %v9692_v3  ;;  %v9708_v26 = vpop.f32.mrf.mxu0 }
 0x1b6   :  { %v4648_v38 = vpop.f32.mrf.mxu1 }
 0x1b7   :  { %v4649_v42 = vadd.f32 %v4648_v38, %v4542_v14  ;;  %v4748_v17 = vadd.f32 %v9708_v26, %v4655_v7  ;;  %v4740_v45 = vpop.f32.mrf.mxu0 }
 0x1b8   :  { %v9703_v13 = vpop.f32.mrf.mxu1 }
 0x1b9   :  { %v4667_v56 = vadd.f32 %v9703_v13, %v9695_v8  ;;  %v4741_v15 = vadd.f32 %v4740_v45, %v4649_v42  ;;  %v9711_v41 = vpop.f32.mrf.mxu0 }
 0x1ba   :  { %v4660_v2 = vpop.f32.mrf.mxu1 }
 0x1bb   :  { %v4661_v34 = vadd.f32 %v4660_v2, %v4562_v51  ;;  %v4754_v63 = vpop.f32.mrf.mxu0  ;;  %v4762_v50 = vadd.f32 %v9711_v41, %v4667_v56 }
 0x1bc   :  { %v9716_v57 = vpop.f32.mrf.mxu1 }
 0x1bd   :  { %v4844_v19 = vadd.f32 %v9716_v57, %v4748_v17  ;;  %v9724_v60 = vpop.f32.mrf.mxu0  ;;  %v4755_v9 = vadd.f32 %v4754_v63, %v4661_v34 }
 0x1be   :  { %v4835_v37 = vpop.f32.mrf.mxu1 }
 0x1bf   :  { %v4836_v33 = vadd.f32 %v4835_v37, %v4741_v15  ;;  %v4940_v31 = vadd.f32 %v9724_v60, %v4844_v19  ;;  %v4933_v5 = vpop.f32.mrf.mxu0 }
 0x1c0   :  { %v9719_v10 = vpop.f32.mrf.mxu1 }
 0x1c1   :  { %v4934_v32 = vadd.f32 %v4933_v5, %v4836_v33  ;;  %v9727_v59 = vpop.f32.mrf.mxu0  ;;  %v4860_v54 = vadd.f32 %v9719_v10, %v4762_v50 }
 0x1c2   :  { %v4851_v48 = vpop.f32.mrf.mxu1 }
 0x1c3   :  { %v4945_v35 = vpop.f32.mrf.mxu0  ;;  %v4852_v22 = vadd.f32 %v4851_v48, %v4755_v9  ;;  %v4952_v62 = vadd.f32 %v9727_v59, %v4860_v54 }
 0x1c4   :  { %v9732_v52 = vpop.f32.mrf.mxu1 }
 0x1c5   :  { %v5030_v28 = vadd.f32 %v9732_v52, %v4940_v31  ;;  %v9740_v29 = vpop.f32.mrf.mxu0  ;;  %v4946_v4 = vadd.f32 %v4945_v35, %v4852_v22 }
 0x1c6   :  { %v5023_v30 = vpop.f32.mrf.mxu1 }
 0x1c7   :  { %v5024_v44 = vadd.f32 %v5023_v30, %v4934_v32  ;;  %v5132_v24 = vpop.f32.mrf.mxu0  ;;  %v5143_v25 = vadd.f32 %v9740_v29, %v5030_v28 }
 0x1c8   :  { %v9735_v1 = vpop.f32.mrf.mxu1 }
 0x1c9   :  { %v9743_v36 = vpop.f32.mrf.mxu0  ;;  %v5042_v6 = vadd.f32 %v9735_v1, %v4952_v62  ;;  %v5133_v46 = vadd.f32 %v5132_v24, %v5024_v44 }
 0x1ca   :  { %v5035_v20 = vpop.f32.mrf.mxu1 }
 0x1cb   :  { %v5152_v23 = vpop.f32.mrf.mxu0  ;;  %v5036_v14 = vadd.f32 %v5035_v20, %v4946_v4  ;;  %v5163_v49 = vadd.f32 %v9743_v36, %v5042_v6 }
 0x1cc   :  { %v9748_v61 = vpop.f32.mrf.mxu1 }
 0x1cd   :  { %v9756_v43 = vpop.f32.mrf.mxu0  ;;  %v5245_v53 = vadd.f32 %v9748_v61, %v5143_v25  ;;  %v5153_v7 = vadd.f32 %v5152_v23, %v5036_v14 }
 0x1ce   :  { %v5238_v39 = vpop.f32.mrf.mxu1 }
 0x1cf   :  { %v5330_v3 = vpop.f32.mrf.mxu0  ;;  %v5239_v11 = vadd.f32 %v5238_v39, %v5133_v46  ;;  %v5338_v26 = vadd.f32 %v9756_v43, %v5245_v53 }
 0x1d0   :  { %v9751_v0 = vpop.f32.mrf.mxu1 }
 0x1d1   :  { %v9759_v21 = vpop.f32.mrf.mxu0  ;;  %v5257_v38 = vadd.f32 %v9751_v0, %v5163_v49  ;;  %v5331_v45 = vadd.f32 %v5330_v3, %v5239_v11 }
 0x1d2   :  { %v5250_v8 = vpop.f32.mrf.mxu1 }
 0x1d3   :  { %v5344_v51 = vpop.f32.mrf.mxu0  ;;  %v5251_v13 = vadd.f32 %v5250_v8, %v5153_v7  ;;  %v5352_v2 = vadd.f32 %v9759_v21, %v5257_v38 }
 0x1d4   :  { %v9764_v40 = vpop.f32.mrf.mxu1 }
 0x1d5   :  { %v9772_v42 = vpop.f32.mrf.mxu0  ;;  %v5434_v56 = vadd.f32 %v9764_v40, %v5338_v26  ;;  %v5345_v19 = vadd.f32 %v5344_v51, %v5251_v13 }
 0x1d6   :  { %v5425_v17 = vpop.f32.mrf.mxu1 }
 0x1d7   :  { %v5523_v15 = vpop.f32.mrf.mxu0  ;;  %v5426_v34 = vadd.f32 %v5425_v17, %v5331_v45  ;;  %v5530_v60 = vadd.f32 %v9772_v42, %v5434_v56 }
 0x1d8   :  { %v9767_v41 = vpop.f32.mrf.mxu1 }
 0x1d9   :  { %v9775_v63 = vpop.f32.mrf.mxu0  ;;  %v5450_v37 = vadd.f32 %v9767_v41, %v5352_v2  ;;  %v5524_v5 = vadd.f32 %v5523_v15, %v5426_v34 }
 0x1da   :  { %v5441_v57 = vpop.f32.mrf.mxu1 }
 0x1db   :  { %v5535_v33 = vpop.f32.mrf.mxu0  ;;  %v5442_v10 = vadd.f32 %v5441_v57, %v5345_v19  ;;  %v5542_v35 = vadd.f32 %v9775_v63, %v5450_v37 }
 0x1dc   :  { %v9780_v31 = vpop.f32.mrf.mxu1 }
 0x1dd   :  { %v5620_v32 = vadd.f32 %v9780_v31, %v5530_v60  ;;  %v9788_v59 = vpop.f32.mrf.mxu0  ;;  %v5536_v50 = vadd.f32 %v5535_v33, %v5442_v10 }
 0x1de   :  { %v5613_v48 = vpop.f32.mrf.mxu1 }
 0x1df   :  { %v11922_v52 = vadd.f32 %v5620_v32, %v11910_v16  ;;  %v5614_v28 = vadd.f32 %v5613_v48, %v5524_v5  ;;  %v5944_v29 = vpop.f32.mrf.mxu0 }
 0x1e0   :  { %v9783_v30 = vpop.f32.mrf.mxu1 }
 0x1e1   :  { %v11925_v44 = vadd.f32 %v5614_v28, %v11913_v12  ;;  %v5632_v24 = vadd.f32 %v9783_v30, %v5542_v35  ;;  %v9791_v1 = vpop.f32.mrf.mxu0 }
 0x1e2   :  { %v5625_v9 = vpop.f32.mrf.mxu1 }
 0x1e3   :  { %v11928_v54 = vadd.f32 %v5632_v24, %v11916_v47  ;;  %v5626_v36 = vadd.f32 %v5625_v9, %v5536_v50  ;;  %v5964_v20 = vpop.f32.mrf.mxu0 }
 0x1e4   :  { %v9796_v22 = vpop.f32.mrf.mxu1 }
 0x1e5   :  { %v11931_v23 = vadd.f32 %v5626_v36, %v11919_v27  ;;  %v9804_v16 = vpop.f32.mrf.mxu0  ;;  %v6057_v0 = vadd.f32 %v9796_v22, %v9788_v59 }
 0x1e6   :  { %v6050_v61 = vpop.f32.mrf.mxu1 }
 0x1e7   :  { %v6142_v62 = vpop.f32.mrf.mxu0  ;;  %v6051_v14 = vadd.f32 %v6050_v61, %v5944_v29  ;;  %v6150_v8 = vadd.f32 %v9804_v16, %v6057_v0 }
 0x1e8   :  { %v9799_v43 = vpop.f32.mrf.mxu1 }
 0x1e9   :  { %v9807_v39 = vpop.f32.mrf.mxu0  ;;  %v6069_v49 = vadd.f32 %v9799_v43, %v9791_v1  ;;  %v6143_v51 = vadd.f32 %v6142_v62, %v6051_v14 }
 0x1ea   :  { %v6062_v4 = vpop.f32.mrf.mxu1 }
 0x1eb   :  { %v6156_v12 = vpop.f32.mrf.mxu0  ;;  %v6063_v40 = vadd.f32 %v6062_v4, %v5964_v20  ;;  %v6164_v42 = vadd.f32 %v9807_v39, %v6069_v49 }
 0x1ec   :  { %v9812_v25 = vpop.f32.mrf.mxu1 }
 0x1ed   :  { %v9820_v6 = vpop.f32.mrf.mxu0  ;;  %v6246_v7 = vadd.f32 %v9812_v25, %v6150_v8  ;;  %v6157_v56 = vadd.f32 %v6156_v12, %v6063_v40 }
 0x1ee   :  { %v6237_v3 = vpop.f32.mrf.mxu1 }
 0x1ef   :  { %v6335_v46 = vpop.f32.mrf.mxu0  ;;  %v6238_v17 = vadd.f32 %v6237_v3, %v6143_v51  ;;  %v6342_v15 = vadd.f32 %v9820_v6, %v6246_v7 }
 0x1f0   :  { %v9815_v47 = vpop.f32.mrf.mxu1 }
 0x1f1   :  { %v9823_v53 = vpop.f32.mrf.mxu0  ;;  %v6262_v41 = vadd.f32 %v9815_v47, %v6164_v42  ;;  %v6336_v63 = vadd.f32 %v6335_v46, %v6238_v17 }
 0x1f2   :  { %v6253_v21 = vpop.f32.mrf.mxu1 }
 0x1f3   :  { %v6347_v27 = vpop.f32.mrf.mxu0  ;;  %v6254_v57 = vadd.f32 %v6253_v21, %v6157_v56  ;;  %v6354_v33 = vadd.f32 %v9823_v53, %v6262_v41  ;;  %v7078_v53 = vld [vmem:[%s12236_s4 + $0x8] sm:$0xff]  ;;  %v7063_v41 = vpop.permute.xlu0 %7062 }
 0x1f4   :  { %v9828_v11 = vpop.f32.mrf.mxu1 }
 0x1f5   :  { %v9836_v26 = vpop.f32.mrf.mxu0  ;;  %v6432_v19 = vadd.f32 %v9828_v11, %v6342_v15  ;;  %v6348_v32 = vadd.f32 %v6347_v27, %v6254_v57  ;;  %v7053_v27 = vpop.permute.xlu1 %7052  ;;  %v7080_v15 = vld [vmem:[%s12236_s4 + $0x18] sm:$0xff] }
 0x1f6   :  { %v6425_v38 = vpop.f32.mrf.mxu1 }
 0x1f7   :  { %v6534_v45 = vpop.f32.mrf.mxu0  ;;  %v6426_v31 = vadd.f32 %v6425_v38, %v6336_v63  ;;  %v6545_v59 = vadd.f32 %v9836_v26, %v6432_v19  ;;  %v7110_v26 = vsel %vm7105_vm0, %v7078_v53, 0  ;;  %v7079_v38 = vld [vmem:[%s12236_s4 + $0x10] sm:$0xff] }
 0x1f8   :  { %v9831_v13 = vpop.f32.mrf.mxu1  ;;  %v7113_v63 = vsel %vm7105_vm0, %v7079_v38, 0 }
 0x1f9   :  { %v9839_v2 = vpop.f32.mrf.mxu0  ;;  %v6444_v48 = vadd.f32 %v9831_v13, %v6354_v33  ;;  %v6535_v29 = vadd.f32 %v6534_v45, %v6426_v31  ;;  %v7048_v33 = vpop.permute.xlu1 %7047 }
 0x1fa   :  { %v6437_v34 = vpop.f32.mrf.mxu1 }
 0x1fb   :  { %v6554_v60 = vpop.f32.mrf.mxu0  ;;  %v6438_v30 = vadd.f32 %v6437_v34, %v6348_v32  ;;  %v6565_v9 = vadd.f32 %v9839_v2, %v6444_v48  ;;  %v11944_v34 = vand.u32 4294901760, %v7110_v26 }
 0x1fc   :  { %v9844_v37 = vpop.f32.mrf.mxu1 }
 0x1fd   :  { %v9852_v5 = vpop.f32.mrf.mxu0  ;;  %v6647_v50 = vadd.f32 %v9844_v37, %v6545_v59  ;;  %v6555_v16 = vadd.f32 %v6554_v60, %v6438_v30  ;;  %v11951_v48 = vsub.f32 %v7110_v26, %v11944_v34 }
 0x1fe   :  { %v6640_v10 = vpop.f32.mrf.mxu1 }
 0x1ff   :  { %v6732_v35 = vpop.f32.mrf.mxu0  ;;  %v6641_v36 = vadd.f32 %v6640_v10, %v6535_v29  ;;  %v6740_v61 = vadd.f32 %v9852_v5, %v6647_v50  ;;  %v7058_v50 = vpop.permute.xlu0 %7057 }
 0x200   :  { %v9847_v28 = vpop.f32.mrf.mxu1 }
 0x201   :  { %v9855_v24 = vpop.f32.mrf.mxu0  ;;  %v6659_v62 = vadd.f32 %v9847_v28, %v6565_v9  ;;  %v6733_v4 = vadd.f32 %v6732_v35, %v6641_v36  ;;  %v11953_v35 = vand.u32 4294901760, %v7113_v63 }
 0x202   :  { %v6652_v1 = vpop.f32.mrf.mxu1 }
 0x203   :  { %v6746_v20 = vpop.f32.mrf.mxu0  ;;  %v6653_v12 = vadd.f32 %v6652_v1, %v6555_v16  ;;  %v6754_v0 = vadd.f32 %v9855_v24, %v6659_v62 }
 0x204   :  { %v9860_v22 = vpop.f32.mrf.mxu1 }
 0x205   :  { %v9868_v43 = vpop.f32.mrf.mxu0  ;;  %v6836_v25 = vadd.f32 %v9860_v22, %v6740_v61  ;;  %v6747_v21 = vadd.f32 %v6746_v20, %v6653_v12  ;;  %v7199_v61 = vand.u32 4294901760, %v11951_v48 }
 0x206   :  { %v6827_v39 = vpop.f32.mrf.mxu1 }
 0x207   :  { %v6925_v6 = vpop.f32.mrf.mxu0  ;;  %v6828_v46 = vadd.f32 %v6827_v39, %v6733_v4  ;;  %v6932_v8 = vadd.f32 %v9868_v43, %v6836_v25 }
 0x208   :  { %v9863_v3 = vpop.f32.mrf.mxu1 }
 0x209   :  { %v9871_v14 = vpop.f32.mrf.mxu0  ;;  %v6852_v49 = vadd.f32 %v9863_v3, %v6754_v0  ;;  %v6926_v51 = vadd.f32 %v6925_v6, %v6828_v46  ;;  %v7200_v3 = vsub.f32 %v11951_v48, %v7199_v61 }
 0x20a   :  { %v6843_v47 = vpop.f32.mrf.mxu1 }
 0x20b   :  { %v6844_v40 = vadd.f32 %v6843_v47, %v6747_v21  ;;  %v6937_v42 = vpop.f32.mrf.mxu0  ;;  %v6944_v45 = vadd.f32 %v9871_v14, %v6852_v49 }
 0x20c   :  { %v9876_v11 = vpop.f32.mrf.mxu1 }
 0x20d   :  { %v7022_v7 = vadd.f32 %v9876_v11, %v6932_v8  ;;  %v6938_v57 = vadd.f32 %v6937_v42, %v6844_v40  ;;  %v7201_v8 = vand.u32 4294901760, %v7200_v3 }
 0x20e   :  { %v7015_v17 = vpop.f32.mrf.mxu1 }
 0x20f   :  { %v7038_v13 = vadd.f32 %v7022_v7, %v11922_v52  ;;  %v7016_v56 = vadd.f32 %v7015_v17, %v6926_v51  ;;  %v7116_v52 = vsel %vm7105_vm0, %v7080_v15, 0 }
 0x210   :  { %v9879_v2 = vpop.f32.mrf.mxu1  ;;  %v11956_v24 = vand.u32 4294901760, %v7116_v52 }
 0x211   :  { %v7066_v19 = vadd.f32 %v7053_v27, %v7038_v13  ;;  %v7037_v60 = vadd.f32 %v7016_v56, %v11925_v44  ;;  %v7034_v37 = vadd.f32 %v9879_v2, %v6944_v45 }
 0x212   :  { %v7027_v31 = vpop.f32.mrf.mxu1  ;;  %v11967_v43 = vsub.f32 %v7116_v52, %v11956_v24 }
 0x213   :  { %v7070_v5 = vmul.f32 0.2, %v7066_v19  ;;  %v7065_v10 = vadd.f32 %v7048_v33, %v7037_v60  ;;  %v7040_v32 = vadd.f32 %v7034_v37, %v11928_v54  ;;  %v7028_v59 = vadd.f32 %v7027_v31, %v6938_v57  ;;  %v7103_v33 = vpop.permute.xlu0 %7102 }
 0x214   :  { %v11961_v54 = vsub.f32 %v7113_v63, %v11953_v35  ;;  %v7219_v46 = vand.u32 4294901760, %v11967_v43 }
 0x215   :  { %v7074_v28 = vmax.f32 %v7066_v19, %v7070_v5  ;;  %v7069_v29 = vmul.f32 0.2, %v7065_v10  ;;  %v7068_v30 = vadd.f32 %v7063_v41, %v7040_v32  ;;  %v7039_v44 = vadd.f32 %v7028_v59, %v11931_v23  ;;  %v7098_v5 = vpop.permute.xlu1 %7097 }
 0x216   :  { %v7209_v12 = vand.u32 4294901760, %v11961_v54  ;;  %v7220_v11 = vsub.f32 %v11967_v43, %v7219_v46 }
 0x217   :  { %v7073_v1 = vmax.f32 %v7065_v10, %v7069_v29  ;;  %v7072_v9 = vmul.f32 0.2, %v7068_v30  ;;  %v7067_v36 = vadd.f32 %v7058_v50, %v7039_v44  ;;  %v11958_v20 = vand.u32 4294901760, %v7074_v28  ;;  %v7093_v59 = vpop.permute.xlu0 %7092 }
 0x218   :  { %v7210_v53 = vsub.f32 %v11961_v54, %v7209_v12  ;;  %v7221_v17 = vand.u32 4294901760, %v7220_v11 }
 0x219   :  { %v7076_v22 = vmax.f32 %v7068_v30, %v7072_v9  ;;  %v7071_v16 = vmul.f32 0.2, %v7067_v36  ;;  %v11964_v62 = vand.u32 4294901760, %v7073_v1  ;;  %v7267_v4 = vsub.f32 %v7074_v28, %v11958_v20  ;;  %v7088_v28 = vpop.permute.xlu1 %7087 }
 0x21a   :  { %v7211_v26 = vand.u32 4294901760, %v7210_v53 }
 0x21b   :  { %v11969_v23 = vand.u32 4294901760, %v7076_v22  ;;  %v7075_v39 = vmax.f32 %v7067_v36, %v7071_v16  ;;  %v7274_v0 = vsub.f32 %v7073_v1, %v11964_v62  ;;  %v7268_v21 = vand.u32 4294901760, %v7267_v4 }
 0x21d   :  { %v7253_v25 = vsub.f32 %v7076_v22, %v11969_v23  ;;  %v11974_v6 = vand.u32 4294901760, %v7075_v39  ;;  %9880 = vmatprep.subr.mxu0 %v11969_v23  ;;  %v7275_v51 = vand.u32 4294901760, %v7274_v0  ;;  %v7269_v38 = vsub.f32 %v7267_v4, %v7268_v21 }
 0x21e   :  { %9881 = vmatpush3.msra.mxu0 %v11969_v23 }
 0x21f   :  { %v7260_v47 = vsub.f32 %v7075_v39, %v11974_v6  ;;  %9882 = vmatprep.subr.mxu0 %v11974_v6  ;;  %v7254_v14 = vand.u32 4294901760, %v7253_v25  ;;  %v7276_v45 = vsub.f32 %v7274_v0, %v7275_v51  ;;  %v7270_v13 = vand.u32 4294901760, %v7269_v38 }
 0x220   :  { %9883 = vmatpush3.msra.mxu0 %v11974_v6 }
 0x221   :  { %9884 = vmatprep.subr.mxu0 %v11958_v20  ;;  %v7255_v49 = vsub.f32 %v7253_v25, %v7254_v14  ;;  %v7261_v27 = vand.u32 4294901760, %v7260_v47  ;;  %v7277_v56 = vand.u32 4294901760, %v7276_v45 }
 0x222   :  { %9885 = vmatpush3.msra.mxu0 %v11958_v20 }
 0x223   :  { %9886 = vmatprep.subr.mxu0 %v11964_v62  ;;  %v7256_v40 = vand.u32 4294901760, %v7255_v49  ;;  %v7262_v7 = vsub.f32 %v7260_v47, %v7261_v27  ;;  %v7743_v49 = vld [vmem:[%s12237_s6 + $0x18] sm:$0xff] }
 0x224   :  { %9887 = vmatpush3.msra.mxu0 %v11964_v62  ;;  %v7778_v45 = vsel %vm7105_vm0, %v7743_v49, 0 }
 0x225   :  { %9889 = vmatmul.mubr.f32.vlgmr.msra.gmra.mxu0 %v7201_v8  ;;  %9894 = vmatprep.subr.mxu1 %v7256_v40  ;;  %v7263_v42 = vand.u32 4294901760, %v7262_v7 }
 0x226   :  { %9908 = vmatprep.subr.mxu0 %v7253_v25  ;;  %9895 = vmatpush3.msra.mxu1 %v7256_v40 }
 0x227   :  { %9909 = vmatpush3.msra.mxu0 %v7253_v25  ;;  %9896 = vmatprep.subr.mxu1 %v7263_v42 }
 0x228   :  { %9910 = vmatprep.subr.mxu0 %v7260_v47  ;;  %9891 = vmatprep.mubr.f32.mxu0 %v7211_v26 }
 0x229   :  { %9897 = vmatpush3.msra.mxu1 %v7263_v42  ;;  %9911 = vmatpush3.msra.mxu0 %v7260_v47 }
 0x22a   :  { %9892 = vmatmul.mubr.f32.gmra.mxu0 %v7221_v17  ;;  %9898 = vmatprep.subr.mxu1 %v7270_v13 }
 0x22b   :  { %9912 = vmatprep.subr.mxu0 %v7267_v4  ;;  %9899 = vmatpush3.msra.mxu1 %v7270_v13 }
 0x22c   :  { %9913 = vmatpush3.msra.mxu0 %v7267_v4  ;;  %9900 = vmatprep.subr.mxu1 %v7277_v56 }
 0x22d   :  { %9914 = vmatprep.subr.mxu0 %v7274_v0  ;;  %9901 = vmatpush3.msra.mxu1 %v7277_v56 }
 0x22e   :  { %9915 = vmatpush3.msra.mxu0 %v7274_v0  ;;  %9903 = vmatmul.mubr.f32.vlgmr.msra.gmra.mxu1 %v11944_v34 }
 0x22f   :  { %9916 = vmatprep.mubr.f32.mxu0 %v11902_v58  ;;  %9922 = vmatprep.subr.mxu1 %v11969_v23  ;;  %v7740_v58 = vld [vmem:[%s12237_s6] sm:$0xff] }
 0x230   :  { %9936 = vmatprep.subr.mxu0 %v7254_v14  ;;  %9917 = vmatmul.mubr.f32.vlgmr.msra.gmra.mxu0 %v11951_v48 }
 0x231   :  { %9923 = vmatpush3.msra.mxu1 %v11969_v23  ;;  %9937 = vmatpush3.msra.mxu0 %v7254_v14 }
 0x232   :  { %9924 = vmatprep.subr.mxu1 %v11974_v6  ;;  %9938 = vmatprep.subr.mxu0 %v7261_v27 }
 0x233   :  { %9905 = vmatprep.mubr.f32.mxu1 %v11953_v35  ;;  %9925 = vmatpush3.msra.mxu1 %v11974_v6 }
 0x234   :  { %9939 = vmatpush3.msra.mxu0 %v7261_v27  ;;  %9906 = vmatmul.mubr.f32.gmra.mxu1 %v11956_v24 }
 0x235   :  { %9926 = vmatprep.subr.mxu1 %v11958_v20  ;;  %9940 = vmatprep.subr.mxu0 %v7268_v21 }
 0x236   :  { %9919 = vmatprep.mubr.f32.mxu0 %v11961_v54  ;;  %9927 = vmatpush3.msra.mxu1 %v11958_v20 }
 0x237   :  { %9941 = vmatpush3.msra.mxu0 %v7268_v21  ;;  %9928 = vmatprep.subr.mxu1 %v11964_v62 }
 0x238   :  { %9920 = vmatmul.mubr.f32.gmra.mxu0 %v11967_v43  ;;  %9942 = vmatprep.subr.mxu0 %v7275_v51 }
 0x239   :  { %9929 = vmatpush3.msra.mxu1 %v11964_v62  ;;  %9930 = vmatprep.mubr.f32.mxu1 %v7189_v55  ;;  %v7769_v55 = vsel %vm7105_vm0, %v7740_v58, 0 }
 0x23a   :  { %9943 = vmatpush3.msra.mxu0 %v7275_v51  ;;  %9931 = vmatmul.mubr.f32.vlgmr.msra.gmra.mxu1 %v7199_v61  ;;  %v12039_v15 = vand.u32 4294901760, %v7769_v55  ;;  %v7741_v61 = vld [vmem:[%s12237_s6 + $0x8] sm:$0xff] }
 0x23b   :  { %9950 = vmatprep.subr.mxu1 %v11969_v23  ;;  %9944 = vmatprep.mubr.f32.mxu0 %v11899_v18 }
 0x23c   :  { %9951 = vmatpush3.msra.mxu1 %v11969_v23  ;;  %9945 = vmatmul.mubr.f32.vlgmr.msra.gmra.mxu0 %v11944_v34  ;;  %v12042_v41 = vsub.f32 %v7769_v55, %v12039_v15 }
 0x23d   :  { %9952 = vmatprep.subr.mxu1 %v11974_v6  ;;  %9933 = vmatprep.mubr.f32.mxu1 %v7209_v12 }
 0x23e   :  { %9953 = vmatpush3.msra.mxu1 %v11974_v6  ;;  %9947 = vmatprep.mubr.f32.mxu0 %v11953_v35  ;;  %v7772_v6 = vsel %vm7105_vm0, %v7741_v61, 0 }
 0x23f   :  { %9934 = vmatmul.mubr.f32.gmra.mxu1 %v7219_v46  ;;  %9954 = vmatprep.subr.mxu1 %v11958_v20  ;;  %v7742_v46 = vld [vmem:[%s12237_s6 + $0x10] sm:$0xff]  ;;  %v12056_v8 = vand.u32 4294901760, %v7772_v6 }
 0x240   :  { %9955 = vmatpush3.msra.mxu1 %v11958_v20  ;;  %9948 = vmatmul.mubr.f32.gmra.mxu0 %v11956_v24  ;;  %v7775_v40 = vsel %vm7105_vm0, %v7742_v46, 0 }
 0x241   :  { %9956 = vmatprep.subr.mxu1 %v11964_v62  ;;  %9958 = vmatprep.mubr.f32.mxu1 %v11899_v18  ;;  %v7851_v18 = vand.u32 4294901760, %v12042_v41  ;;  %v12064_v56 = vsub.f32 %v7772_v6, %v12056_v8  ;;  %v12066_v58 = vand.u32 4294901760, %v7775_v40 }
 0x242   :  { %9957 = vmatpush3.msra.mxu1 %v11964_v62 }
 0x243   :  { %9959 = vmatmul.mubr.f32.vlgmr.msra.gmra.mxu1 %v11944_v34  ;;  %v7852_v2 = vsub.f32 %v12042_v41, %v7851_v18 }
 0x244   :  { %9961 = vmatprep.mubr.f32.mxu1 %v11953_v35 }
 0x245   :  { %v7853_v34 = vand.u32 4294901760, %v7852_v2 }
 0x247   :  { %9962 = vmatmul.mubr.f32.gmra.mxu1 %v11956_v24  ;;  %9972 = vmatprep.mubr.f32.mxu0 %v7853_v34 }
 0x248   :  { %9986 = vmatprep.mubr.f32.mxu1 %v12039_v15 }
 0x2e5   :  { %v9890_v63 = vpop.f32.mrf.mxu0 }
 0x2e6   :  { %v7204_v48 = vadd.f32 %v9890_v63, %v7093_v59 }
 0x2e7   :  { %v7193_v57 = vpop.f32.mrf.mxu0 }
 0x2e8   :  { %v7194_v29 = vadd.f32 %v7193_v57, %v7088_v28 }
 0x2ea   :  { %v9893_v19 = vpop.f32.mrf.mxu0 }
 0x2eb   :  { %v7224_v50 = vadd.f32 %v9893_v19, %v7103_v33  ;;  %v12068_v19 = vand.u32 4294901760, %v7778_v45 }
 0x2ec   :  { %v7213_v60 = vpop.f32.mrf.mxu0 }
 0x2ed   :  { %v7214_v36 = vadd.f32 %v7213_v60, %v7098_v5 }
 0x2ee   :  { %v9904_v37 = vpop.f32.mrf.mxu1 }
 0x2ef   :  { %v7321_v30 = vadd.f32 %v9904_v37, %v7204_v48  ;;  %v12079_v48 = vsub.f32 %v7778_v45, %v12068_v19 }
 0x2f0   :  { %v7314_v31 = vpop.f32.mrf.mxu1  ;;  %v9918_v52 = vpop.f32.mrf.mxu0 }
 0x2f1   :  { %v7315_v24 = vadd.f32 %v7314_v31, %v7194_v29  ;;  %v7420_v20 = vadd.f32 %v9918_v52, %v7321_v30  ;;  %v12073_v52 = vsub.f32 %v7775_v40, %v12066_v58 }
 0x2f2   :  { %v7412_v32 = vpop.f32.mrf.mxu0 }
 0x2f3   :  { %v7413_v62 = vadd.f32 %v7412_v32, %v7315_v24  ;;  %v7861_v32 = vand.u32 4294901760, %v12064_v56  ;;  %v7871_v30 = vand.u32 4294901760, %v12073_v52 }
 0x2f4   :  { %v9907_v10 = vpop.f32.mrf.mxu1 }
 0x2f5   :  { %v7333_v54 = vadd.f32 %v9907_v10, %v7224_v50  ;;  %v7862_v24 = vsub.f32 %v12064_v56, %v7861_v32 }
 0x2f6   :  { %v7326_v35 = vpop.f32.mrf.mxu1 }
 0x2f7   :  { %v7327_v43 = vadd.f32 %v7326_v35, %v7214_v36 }
 0x2f8   :  { %v9921_v44 = vpop.f32.mrf.mxu0 }
 0x2f9   :  { %v7434_v12 = vadd.f32 %v9921_v44, %v7333_v54  ;;  %v7872_v54 = vsub.f32 %v12073_v52, %v7871_v30 }
 0x2fa   :  { %v7426_v1 = vpop.f32.mrf.mxu0  ;;  %v9932_v9 = vpop.f32.mrf.mxu1 }
 0x2fb   :  { %v7519_v23 = vadd.f32 %v9932_v9, %v7420_v20  ;;  %v7427_v47 = vadd.f32 %v7426_v1, %v7327_v43  ;;  %v7881_v9 = vand.u32 4294901760, %v12079_v48 }
 0x2fc   :  { %v7510_v22 = vpop.f32.mrf.mxu1  ;;  %v9946_v16 = vpop.f32.mrf.mxu0 }
 0x2fd   :  { %v7511_v25 = vadd.f32 %v7510_v22, %v7413_v62  ;;  %v7624_v14 = vadd.f32 %v9946_v16, %v7519_v23  ;;  %v7863_v16 = vand.u32 4294901760, %v7862_v24  ;;  %v7882_v43 = vsub.f32 %v12079_v48, %v7881_v9 }
 0x2fe   :  { %v7617_v39 = vpop.f32.mrf.mxu0 }
 0x2ff   :  { %v9935_v4 = vpop.f32.mrf.mxu1  ;;  %v7618_v27 = vadd.f32 %v7617_v39, %v7511_v25 }
 0x300   :  { %v9949_v0 = vpop.f32.mrf.mxu0  ;;  %v7535_v53 = vadd.f32 %v9935_v4, %v7434_v12  ;;  %v7873_v12 = vand.u32 4294901760, %v7872_v54 }
 0x301   :  { %v7526_v3 = vpop.f32.mrf.mxu1 }
 0x302   :  { %v7527_v11 = vadd.f32 %v7526_v3, %v7427_v47  ;;  %v7629_v7 = vpop.f32.mrf.mxu0  ;;  %v7636_v38 = vadd.f32 %v9949_v0, %v7535_v53  ;;  %v7883_v3 = vand.u32 4294901760, %v7882_v43 }
 0x303   :  { %v9960_v21 = vpop.f32.mrf.mxu1 }
 0x304   :  { %v7717_v51 = vadd.f32 %v9960_v21, %v7624_v14  ;;  %v7630_v55 = vadd.f32 %v7629_v7, %v7527_v11  ;;  %v7761_v11 = vpop.permute.xlu1 %7760 }
 0x305   :  { %v7710_v26 = vpop.f32.mrf.mxu1 }
 0x306   :  { %v7733_v42 = vmul.f32 0.2, %v7717_v51  ;;  %v7711_v17 = vadd.f32 %v7710_v26, %v7618_v27 }
 0x307   :  { %v9963_v13 = vpop.f32.mrf.mxu1 }
 0x308   :  { %v7737_v2 = vmax.f32 %v7717_v51, %v7733_v42  ;;  %v7732_v34 = vmul.f32 0.2, %v7711_v17  ;;  %v7729_v63 = vadd.f32 %v9963_v13, %v7636_v38  ;;  %v7751_v42 = vpop.permute.xlu1 %7750 }
 0x309   :  { %v7722_v57 = vpop.f32.mrf.mxu1 }
 0x30a   :  { %v7736_v60 = vmax.f32 %v7711_v17, %v7732_v34  ;;  %v7735_v37 = vmul.f32 0.2, %v7729_v63  ;;  %v7723_v33 = vadd.f32 %v7722_v57, %v7630_v55  ;;  %v12070_v31 = vand.u32 4294901760, %v7737_v2 }
 0x30c   :  { %v7739_v5 = vmax.f32 %v7729_v63, %v7735_v37  ;;  %v7734_v10 = vmul.f32 0.2, %v7723_v33  ;;  %v12076_v59 = vand.u32 4294901760, %v7736_v60  ;;  %v7929_v29 = vsub.f32 %v7737_v2, %v12070_v31  ;;  %v8402_v37 = vld [vmem:[%s12238_s8] sm:$0x3] }
 0x30e   :  { %v12081_v35 = vand.u32 4294901760, %v7739_v5  ;;  %v7738_v28 = vmax.f32 %v7723_v33, %v7734_v10  ;;  %v7936_v1 = vsub.f32 %v7736_v60, %v12076_v59  ;;  %v7930_v22 = vand.u32 4294901760, %v7929_v29 }
 0x310   :  { %v7915_v44 = vsub.f32 %v7739_v5, %v12081_v35  ;;  %v12086_v50 = vand.u32 4294901760, %v7738_v28  ;;  %9964 = vmatprep.subr.mxu0 %v12081_v35  ;;  %v7937_v23 = vand.u32 4294901760, %v7936_v1  ;;  %v7931_v25 = vsub.f32 %v7929_v29, %v7930_v22 }
 0x311   :  { %9965 = vmatpush3.msra.mxu0 %v12081_v35 }
 0x312   :  { %v7922_v36 = vsub.f32 %v7738_v28, %v12086_v50  ;;  %9966 = vmatprep.subr.mxu0 %v12086_v50  ;;  %v7916_v20 = vand.u32 4294901760, %v7915_v44  ;;  %v7938_v0 = vsub.f32 %v7936_v1, %v7937_v23  ;;  %v7932_v46 = vand.u32 4294901760, %v7931_v25 }
 0x313   :  { %9967 = vmatpush3.msra.mxu0 %v12086_v50 }
 0x314   :  { %9968 = vmatprep.subr.mxu0 %v12070_v31  ;;  %v7917_v61 = vsub.f32 %v7915_v44, %v7916_v20  ;;  %v7923_v62 = vand.u32 4294901760, %v7922_v36  ;;  %v7939_v47 = vand.u32 4294901760, %v7938_v0 }
 0x315   :  { %9969 = vmatpush3.msra.mxu0 %v12070_v31 }
 0x316   :  { %9970 = vmatprep.subr.mxu0 %v12076_v59  ;;  %v7918_v39 = vand.u32 4294901760, %v7917_v61  ;;  %v7924_v4 = vsub.f32 %v7922_v36, %v7923_v62 }
 0x317   :  { %9971 = vmatpush3.msra.mxu0 %v12076_v59 }
 0x318   :  { %9973 = vmatmul.mubr.f32.vlgmr.msra.gmra.mxu0 %v7863_v16  ;;  %9978 = vmatprep.subr.mxu1 %v7918_v39  ;;  %v7925_v6 = vand.u32 4294901760, %v7924_v4 }
 0x319   :  { %9992 = vmatprep.subr.mxu0 %v7915_v44  ;;  %9979 = vmatpush3.msra.mxu1 %v7918_v39 }
 0x31a   :  { %9993 = vmatpush3.msra.mxu0 %v7915_v44  ;;  %9980 = vmatprep.subr.mxu1 %v7925_v6 }
 0x31b   :  { %9994 = vmatprep.subr.mxu0 %v7922_v36  ;;  %9975 = vmatprep.mubr.f32.mxu0 %v7873_v12 }
 0x31c   :  { %9981 = vmatpush3.msra.mxu1 %v7925_v6  ;;  %9995 = vmatpush3.msra.mxu0 %v7922_v36 }
 0x31d   :  { %9976 = vmatmul.mubr.f32.gmra.mxu0 %v7883_v3  ;;  %9982 = vmatprep.subr.mxu1 %v7932_v46 }
 0x31e   :  { %9996 = vmatprep.subr.mxu0 %v7929_v29  ;;  %9983 = vmatpush3.msra.mxu1 %v7932_v46 }
 0x31f   :  { %9997 = vmatpush3.msra.mxu0 %v7929_v29  ;;  %9984 = vmatprep.subr.mxu1 %v7939_v47 }
 0x320   :  { %9998 = vmatprep.subr.mxu0 %v7936_v1  ;;  %9985 = vmatpush3.msra.mxu1 %v7939_v47 }
 0x321   :  { %9999 = vmatpush3.msra.mxu0 %v7936_v1  ;;  %9987 = vmatmul.mubr.f32.vlgmr.msra.gmra.mxu1 %v12056_v8 }
 0x322   :  { %10000 = vmatprep.mubr.f32.mxu0 %v12042_v41  ;;  %10006 = vmatprep.subr.mxu1 %v12081_v35  ;;  %v10173_v41 = vmov 0.0  }
 0x323   :  { %10020 = vmatprep.subr.mxu0 %v7916_v20  ;;  %10001 = vmatmul.mubr.f32.vlgmr.msra.gmra.mxu0 %v12064_v56 }
 0x324   :  { %10007 = vmatpush3.msra.mxu1 %v12081_v35  ;;  %10021 = vmatpush3.msra.mxu0 %v7916_v20 }
 0x325   :  { %10008 = vmatprep.subr.mxu1 %v12086_v50  ;;  %10022 = vmatprep.subr.mxu0 %v7923_v62 }
 0x326   :  { %9989 = vmatprep.mubr.f32.mxu1 %v12066_v58  ;;  %10009 = vmatpush3.msra.mxu1 %v12086_v50 }
 0x327   :  { %10023 = vmatpush3.msra.mxu0 %v7923_v62  ;;  %9990 = vmatmul.mubr.f32.gmra.mxu1 %v12068_v19 }
 0x328   :  { %10010 = vmatprep.subr.mxu1 %v12070_v31  ;;  %10024 = vmatprep.subr.mxu0 %v7930_v22 }
 0x329   :  { %10003 = vmatprep.mubr.f32.mxu0 %v12073_v52  ;;  %10011 = vmatpush3.msra.mxu1 %v12070_v31 }
 0x32a   :  { %10025 = vmatpush3.msra.mxu0 %v7930_v22  ;;  %10012 = vmatprep.subr.mxu1 %v12076_v59 }
 0x32b   :  { %10004 = vmatmul.mubr.f32.gmra.mxu0 %v12079_v48  ;;  %10026 = vmatprep.subr.mxu0 %v7937_v23  ;;  %v8410_v48 = vsel %vm7105_vm0, %v8402_v37, 0 }
 0x32c   :  { %10013 = vmatpush3.msra.mxu1 %v12076_v59  ;;  %10014 = vmatprep.mubr.f32.mxu1 %v7851_v18  ;;  %v12157_v24 = vand.u32 4294901760, %v8410_v48 }
 0x32d   :  { %10027 = vmatpush3.msra.mxu0 %v7937_v23  ;;  %10015 = vmatmul.mubr.f32.vlgmr.msra.gmra.mxu1 %v7861_v32 }
 0x32e   :  { %10034 = vmatprep.subr.mxu1 %v12081_v35  ;;  %10028 = vmatprep.mubr.f32.mxu0 %v12039_v15  ;;  %v12160_v43 = vsub.f32 %v8410_v48, %v12157_v24 }
 0x32f   :  { %10035 = vmatpush3.msra.mxu1 %v12081_v35  ;;  %10029 = vmatmul.mubr.f32.vlgmr.msra.gmra.mxu0 %v12056_v8 }
 0x330   :  { %10036 = vmatprep.subr.mxu1 %v12086_v50  ;;  %10017 = vmatprep.mubr.f32.mxu1 %v7871_v30  ;;  %v8483_v47 = vand.u32 4294901760, %v12160_v43 }
 0x331   :  { %10037 = vmatpush3.msra.mxu1 %v12086_v50  ;;  %10031 = vmatprep.mubr.f32.mxu0 %v12066_v58 }
 0x332   :  { %10018 = vmatmul.mubr.f32.gmra.mxu1 %v7881_v9  ;;  %10038 = vmatprep.subr.mxu1 %v12070_v31 }
 0x333   :  { %10039 = vmatpush3.msra.mxu1 %v12070_v31  ;;  %10032 = vmatmul.mubr.f32.gmra.mxu0 %v12068_v19 }
 0x334   :  { %10040 = vmatprep.subr.mxu1 %v12076_v59  ;;  %10042 = vmatprep.mubr.f32.mxu1 %v12039_v15 }
 0x335   :  { %10041 = vmatpush3.msra.mxu1 %v12076_v59  ;;  %10048 = vmatprep.subr.mxu0 %v10173_v41 }
 0x336   :  { %10043 = vmatmul.mubr.f32.vlgmr.msra.gmra.mxu1 %v12056_v8  ;;  %10059 = vmatprep.subr.mxu1 %v10173_v41  ;;  %v7766_v8 = vpop.permute.xlu0 %7765 }
 0x337   :  { %10045 = vmatprep.mubr.f32.mxu1 %v12066_v58  ;;  %10056 = vmatprep.mubr.msk.f32.mxu0 %vm10174_vm9, %v10173_v41 }
 0x33a   :  { %10046 = vmatmul.mubr.f32.gmra.mxu1 %v12068_v19  ;;  %v7756_v7 = vpop.permute.xlu0 %7755 }
 0x33b   :  { %10067 = vmatprep.mubr.msk.f32.mxu1 %vm10174_vm9, %v10173_v41 }
 0x3d8   :  { %v9974_v15 = vpop.f32.mrf.mxu0 }
 0x3d9   :  { %v7866_v26 = vadd.f32 %v9974_v15, %v7756_v7 }
 0x3da   :  { %v7855_v18 = vpop.f32.mrf.mxu0 }
 0x3db   :  { %v7856_v17 = vadd.f32 %v7855_v18, %v7751_v42 }
 0x3dd   :  { %v9977_v14 = vpop.f32.mrf.mxu0 }
 0x3de   :  { %v7886_v56 = vadd.f32 %v9977_v14, %v7766_v8 }
 0x3df   :  { %v7875_v53 = vpop.f32.mrf.mxu0 }
 0x3e0   :  { %v7876_v34 = vadd.f32 %v7875_v53, %v7761_v11 }
 0x3e1   :  { %v9988_v21 = vpop.f32.mrf.mxu1 }
 0x3e2   :  { %v7983_v45 = vadd.f32 %v9988_v21, %v7866_v26 }
 0x3e3   :  { %v7976_v49 = vpop.f32.mrf.mxu1  ;;  %v10002_v27 = vpop.f32.mrf.mxu0 }
 0x3e4   :  { %v7977_v58 = vadd.f32 %v7976_v49, %v7856_v17  ;;  %v8082_v63 = vadd.f32 %v10002_v27, %v7983_v45  ;;  %v8484_v49 = vsub.f32 %v12160_v43, %v8483_v47 }
 0x3e5   :  { %v8074_v40 = vpop.f32.mrf.mxu0 }
 0x3e6   :  { %v8075_v33 = vadd.f32 %v8074_v40, %v7977_v58 }
 0x3e7   :  { %v9991_v51 = vpop.f32.mrf.mxu1 }
 0x3e8   :  { %v7995_v57 = vadd.f32 %v9991_v51, %v7886_v56 }
 0x3e9   :  { %v7988_v38 = vpop.f32.mrf.mxu1 }
 0x3ea   :  { %v7989_v31 = vadd.f32 %v7988_v38, %v7876_v34  ;;  %v8485_v38 = vand.u32 4294901760, %v8484_v49 }
 0x3eb   :  { %v10005_v13 = vpop.f32.mrf.mxu0 }
 0x3ec   :  { %v8096_v32 = vadd.f32 %v10005_v13, %v7995_v57 }
 0x3ed   :  { %v8088_v55 = vpop.f32.mrf.mxu0  ;;  %v10016_v2 = vpop.f32.mrf.mxu1 }
 0x3ee   :  { %v8181_v52 = vadd.f32 %v10016_v2, %v8082_v63  ;;  %v8089_v29 = vadd.f32 %v8088_v55, %v7989_v31  ;;  %v8407_v31 = vpop.permute.xlu0 %8406 }
 0x3ef   :  { %v8172_v19 = vpop.f32.mrf.mxu1  ;;  %v10030_v60 = vpop.f32.mrf.mxu0 }
 0x3f0   :  { %v8173_v59 = vadd.f32 %v8172_v19, %v8075_v33  ;;  %v8286_v30 = vadd.f32 %v10030_v60, %v8181_v52 }
 0x3f1   :  { %v8279_v5 = vpop.f32.mrf.mxu0 }
 0x3f2   :  { %v10019_v10 = vpop.f32.mrf.mxu1  ;;  %v8280_v1 = vadd.f32 %v8279_v5, %v8173_v59 }
 0x3f3   :  { %v10033_v28 = vpop.f32.mrf.mxu0  ;;  %v8197_v44 = vadd.f32 %v10019_v10, %v8096_v32 }
 0x3f4   :  { %v8188_v35 = vpop.f32.mrf.mxu1 }
 0x3f5   :  { %v8189_v9 = vadd.f32 %v8188_v35, %v8089_v29  ;;  %v8291_v20 = vpop.f32.mrf.mxu0  ;;  %v8298_v22 = vadd.f32 %v10033_v28, %v8197_v44 }
 0x3f6   :  { %v10044_v50 = vpop.f32.mrf.mxu1 }
 0x3f7   :  { %v8379_v36 = vadd.f32 %v10044_v50, %v8286_v30  ;;  %v8292_v23 = vadd.f32 %v8291_v20, %v8189_v9 }
 0x3f8   :  { %v8372_v54 = vpop.f32.mrf.mxu1 }
 0x3f9   :  { %v8395_v16 = vmul.f32 0.2, %v8379_v36  ;;  %v8373_v61 = vadd.f32 %v8372_v54, %v8280_v1 }
 0x3fa   :  { %v10047_v62 = vpop.f32.mrf.mxu1 }
 0x3fb   :  { %v8399_v39 = vmax.f32 %v8379_v36, %v8395_v16  ;;  %v8394_v4 = vmul.f32 0.2, %v8373_v61  ;;  %v8391_v12 = vadd.f32 %v10047_v62, %v8298_v22 }
 0x3fc   :  { %v8384_v25 = vpop.f32.mrf.mxu1 }
 0x3fd   :  { %v12162_v6 = vand.u32 4294901760, %v8399_v39  ;;  %v8398_v3 = vmax.f32 %v8373_v61, %v8394_v4  ;;  %v8397_v0 = vmul.f32 0.2, %v8391_v12  ;;  %v8385_v46 = vadd.f32 %v8384_v25, %v8292_v23 }
 0x3ff   :  { %v12165_v15 = vand.u32 4294901760, %v8398_v3  ;;  %v8401_v18 = vmax.f32 %v8391_v12, %v8397_v0  ;;  %v8396_v14 = vmul.f32 0.2, %v8385_v46  ;;  %v8531_v53 = vsub.f32 %v8399_v39, %v12162_v6 }
 0x401   :  { %v12168_v21 = vand.u32 4294901760, %v8401_v18  ;;  %v8400_v8 = vmax.f32 %v8385_v46, %v8396_v14  ;;  %v8538_v27 = vsub.f32 %v8398_v3, %v12165_v15  ;;  %v8532_v40 = vand.u32 4294901760, %v8531_v53 }
 0x403   :  { %v8517_v11 = vsub.f32 %v8401_v18, %v12168_v21  ;;  %v12175_v51 = vand.u32 4294901760, %v8400_v8  ;;  %10049 = vmatpush3.msra.mxu0 %v12168_v21  ;;  %v8539_v42 = vand.u32 4294901760, %v8538_v27  ;;  %v8533_v58 = vsub.f32 %v8531_v53, %v8532_v40 }
 0x404   :  { %10050 = vmatprep.subr.mxu0 %v10173_v41 }
 0x405   :  { %v8518_v7 = vand.u32 4294901760, %v8517_v11  ;;  %v8524_v26 = vsub.f32 %v8400_v8, %v12175_v51  ;;  %10051 = vmatpush3.msra.mxu0 %v12175_v51  ;;  %v8540_v2 = vsub.f32 %v8538_v27, %v8539_v42  ;;  %v8534_v34 = vand.u32 4294901760, %v8533_v58 }
 0x406   :  { %10052 = vmatprep.subr.mxu0 %v10173_v41 }
 0x407   :  { %v8525_v17 = vand.u32 4294901760, %v8524_v26  ;;  %10053 = vmatpush3.msra.mxu0 %v12162_v6  ;;  %v8519_v45 = vsub.f32 %v8517_v11, %v8518_v7  ;;  %v8541_v63 = vand.u32 4294901760, %v8540_v2 }
 0x408   :  { %10054 = vmatprep.subr.mxu0 %v10173_v41 }
 0x409   :  { %10055 = vmatpush3.msra.mxu0 %v12165_v15  ;;  %v8520_v13 = vand.u32 4294901760, %v8519_v45  ;;  %v8526_v56 = vsub.f32 %v8524_v26, %v8525_v17 }
 0x40a   :  { %10057 = vmatmul.mubr.f32.vlgmr.msra.gmra.mxu0 %v8485_v38  ;;  %10070 = vmatprep.subr.mxu0 %v10173_v41 }
 0x40b   :  { %10060 = vmatpush3.msra.mxu1 %v8520_v13  ;;  %10071 = vmatpush3.msra.mxu0 %v8517_v11  ;;  %v8527_v55 = vand.u32 4294901760, %v8526_v56 }
 0x40c   :  { %10061 = vmatprep.subr.mxu1 %v10173_v41  ;;  %10072 = vmatprep.subr.mxu0 %v10173_v41 }
 0x40d   :  { %10062 = vmatpush3.msra.mxu1 %v8527_v55  ;;  %10073 = vmatpush3.msra.mxu0 %v8524_v26 }
 0x40e   :  { %10063 = vmatprep.subr.mxu1 %v10173_v41  ;;  %10074 = vmatprep.subr.mxu0 %v10173_v41 }
 0x40f   :  { %10064 = vmatpush3.msra.mxu1 %v8534_v34  ;;  %10075 = vmatpush3.msra.mxu0 %v8531_v53 }
 0x410   :  { %10065 = vmatprep.subr.mxu1 %v10173_v41  ;;  %10076 = vmatprep.subr.mxu0 %v10173_v41 }
 0x411   :  { %10066 = vmatpush3.msra.mxu1 %v8541_v63  ;;  %10077 = vmatpush3.msra.mxu0 %v8538_v27 }
 0x412   :  { %10068 = vmatmul.mubr.f32.vlgmr.msra.gmra.mxu1 %v12157_v24  ;;  %10078 = vmatprep.mubr.msk.f32.mxu0 %vm10174_vm9, %v10173_v41 }
 0x413   :  { %10081 = vmatprep.subr.mxu1 %v10173_v41  ;;  %10092 = vmatprep.subr.mxu0 %v10173_v41 }
 0x414   :  { %10079 = vmatmul.mubr.f32.vlgmr.msra.gmra.mxu0 %v12160_v43  ;;  %10082 = vmatpush3.msra.mxu1 %v12168_v21 }
 0x415   :  { %10093 = vmatpush3.msra.mxu0 %v8518_v7  ;;  %10083 = vmatprep.subr.mxu1 %v10173_v41 }
 0x416   :  { %10094 = vmatprep.subr.mxu0 %v10173_v41  ;;  %10084 = vmatpush3.msra.mxu1 %v12175_v51 }
 0x417   :  { %10095 = vmatpush3.msra.mxu0 %v8525_v17  ;;  %10085 = vmatprep.subr.mxu1 %v10173_v41 }
 0x418   :  { %10096 = vmatprep.subr.mxu0 %v10173_v41  ;;  %10086 = vmatpush3.msra.mxu1 %v12162_v6 }
 0x419   :  { %10097 = vmatpush3.msra.mxu0 %v8532_v40  ;;  %10087 = vmatprep.subr.mxu1 %v10173_v41 }
 0x41a   :  { %10098 = vmatprep.subr.mxu0 %v10173_v41  ;;  %10088 = vmatpush3.msra.mxu1 %v12165_v15 }
 0x41b   :  { %10089 = vmatprep.mubr.msk.f32.mxu1 %vm10174_vm9, %v10173_v41  ;;  %10099 = vmatpush3.msra.mxu0 %v8539_v42 }
 0x41c   :  { %10090 = vmatmul.mubr.f32.vlgmr.msra.gmra.mxu1 %v8483_v47  ;;  %10103 = vmatprep.subr.mxu1 %v10173_v41 }
 0x41d   :  { %10100 = vmatprep.mubr.msk.f32.mxu0 %vm10174_vm9, %v10173_v41  ;;  %10104 = vmatpush3.msra.mxu1 %v12168_v21 }
 0x41e   :  { %10101 = vmatmul.mubr.f32.vlgmr.msra.gmra.mxu0 %v12157_v24  ;;  %10105 = vmatprep.subr.mxu1 %v10173_v41 }
 0x41f   :  { %10106 = vmatpush3.msra.mxu1 %v12175_v51  ;;  %10111 = vmatprep.mubr.msk.f32.mxu1 %vm10174_vm9, %v10173_v41 }
 0x420   :  { %10107 = vmatprep.subr.mxu1 %v10173_v41 }
 0x421   :  { %10108 = vmatpush3.msra.mxu1 %v12162_v6 }
 0x422   :  { %10109 = vmatprep.subr.mxu1 %v10173_v41 }
 0x423   :  { %10110 = vmatpush3.msra.mxu1 %v12165_v15 }
 0x424   :  { %10112 = vmatmul.mubr.f32.vlgmr.msra.gmra.mxu1 %v12157_v24 }
 0x4ca   :  { %v8487_v57 = vpop.f32.mrf.mxu0 }
 0x4cb   :  { %v8488_v5 = vadd.f32 %v8487_v57, %v8407_v31 }
 0x4cc   :  { %v10058_v19 = vpop.f32.mrf.mxu0 }
 0x4d2   :  { %v8578_v60 = vpop.f32.mrf.mxu1 }
 0x4d3   :  { %v8579_v10 = vadd.f32 %v8578_v60, %v8488_v5 }
 0x4d4   :  { %v10069_v37 = vpop.f32.mrf.mxu1  ;;  %v8658_v33 = vpop.f32.mrf.mxu0 }
 0x4d5   :  { %v8659_v59 = vadd.f32 %v8658_v33, %v8579_v10 }
 0x4d6   :  { %v10080_v52 = vpop.f32.mrf.mxu0 }
 0x4dc   :  { %v8735_v32 = vpop.f32.mrf.mxu1 }
 0x4dd   :  { %v8736_v28 = vadd.f32 %v8735_v32, %v8659_v59 }
 0x4de   :  { %v10091_v48 = vpop.f32.mrf.mxu1  ;;  %v8818_v35 = vpop.f32.mrf.mxu0 }
 0x4df   :  { %v8819_v41 = vadd.f32 %v8818_v35, %v8736_v28 }
 0x4e0   :  { %v10102_v29 = vpop.f32.mrf.mxu0 }
 0x4e4   :  { %v8893_v30 = vpop.f32.mrf.mxu1 }
 0x4e5   :  { %v8894_v44 = vadd.f32 %v8893_v30, %v8819_v41 }
 0x4e6   :  { %v10113_v50 = vpop.f32.mrf.mxu1 }
 0x4e7   :  { %8897 = vst [vmem:[%s12239_s10] sm:$0x3] %v8894_v44 }

</bundles_post_ra>
